<compile_context>
chip_gen: v7x
topology: tpu7x:2x2x1
jax: 0.10.0
libtpu: 0.0.40
codegen_flags: <defaults>
</compile_context>

<pallas_src>
import functools

import jax
import jax.numpy as jnp
from jax.experimental import pallas as pl
from jax.experimental.pallas import tpu as pltpu


# ----------------------------- tiling helpers ------------------------------ #

def _pick_tile(dim, candidates):
    for c in candidates:
        if dim >= c and dim % c == 0:
            return c
    return dim  # fall back to the full dimension (always a legal block)


# --------------------- tiled linear (x @ w + b), bf16 I/O ------------------- #

def _linear_kernel(x_ref, w_ref, b_ref, o_ref, acc_ref):
    @pl.when(pl.program_id(2) == 0)
    def _():
        acc_ref[...] = jnp.zeros_like(acc_ref)

    acc_ref[...] += jnp.dot(x_ref[...], w_ref[...],
                            preferred_element_type=jnp.float32)

    @pl.when(pl.program_id(2) == pl.num_programs(2) - 1)
    def _():
        o_ref[...] = (acc_ref[...] + b_ref[...]).astype(o_ref.dtype)


def pallas_linear(x2d, w, b, out_dtype=jnp.bfloat16):
    """x2d: (M,K) bf16, w: (K,N) bf16, b: (1,N) f32 -> (M,N) out_dtype."""
    M, K = x2d.shape
    _, N = w.shape
    tm = _pick_tile(M, (1024, 512, 256, 128, 64, 32, 16, 8))
    tn = _pick_tile(N, (768, 512, 384, 256, 128))
    tk = _pick_tile(K, (512, 256, 128))
    grid = (M // tm, N // tn, K // tk)
    return pl.pallas_call(
        _linear_kernel,
        out_shape=jax.ShapeDtypeStruct((M, N), out_dtype),
        grid_spec=pltpu.PrefetchScalarGridSpec(
            num_scalar_prefetch=0,
            grid=grid,
            in_specs=[
                pl.BlockSpec((tm, tk), lambda i, j, kk: (i, kk)),
                pl.BlockSpec((tk, tn), lambda i, j, kk: (kk, j)),
                pl.BlockSpec((1, tn), lambda i, j, kk: (0, j)),
            ],
            out_specs=pl.BlockSpec((tm, tn), lambda i, j, kk: (i, j)),
            scratch_shapes=[pltpu.VMEM((tm, tn), jnp.float32)],
        ),
        compiler_params=pltpu.CompilerParams(
            dimension_semantics=("parallel", "parallel", "arbitrary")),
    )(x2d, w, b)


# ---------------------- flash attention with rel-pos bias ------------------- #

def _flash_attn_kernel(*refs, nk, use_rel_pos):
    if use_rel_pos:
        q_ref, k_ref, v_ref, rel_ref, e_ref, o_ref, m_ref, l_ref, acc_ref = refs
    else:
        q_ref, k_ref, v_ref, o_ref, m_ref, l_ref, acc_ref = refs

    ki = pl.program_id(2)

    @pl.when(ki == 0)
    def _():
        m_ref[...] = jnp.full_like(m_ref, -1e30)
        l_ref[...] = jnp.zeros_like(l_ref)
        acc_ref[...] = jnp.zeros_like(acc_ref)

    # q already carries the softmax scale (folded into the qkv weights).
    q = q_ref[0]    # (nh, tq, hd) bf16
    k = k_ref[0]    # (nh, tk, hd) bf16
    v = v_ref[0]    # (nh, tk, hd) bf16

    s = jnp.einsum('nqd,nkd->nqk', q, k,
                   preferred_element_type=jnp.float32)       # (nh, tq, tk) f32
    nh, tq, tk = s.shape

    if use_rel_pos:
        # bias[., j] = rel_h[., j // k_w] + rel_w[., j % k_w], via ONE matmul
        # against a precomputed 0/1 selector (tiled along keys by BlockSpec).
        rel = rel_ref[0]                     # (nh, tq, k_h + k_w) bf16
        e_sel = e_ref[...]                   # (k_h + k_w, tk) bf16
        khw = rel.shape[-1]
        bias = jnp.dot(rel.reshape(nh * tq, khw), e_sel,
                       preferred_element_type=jnp.float32).reshape(nh, tq, tk)
        s = s + bias

    # online softmax update
    m_prev = m_ref[...]                                       # (nh, tq, 1)
    m_new = jnp.maximum(m_prev, jnp.max(s, axis=-1, keepdims=True))
    alpha = jnp.exp(m_prev - m_new)
    # TODO(synk): on v6e/v7x a bf16 exp roughly doubles EUP throughput; kept in
    # f32 so the same kernel stays correct/optimal on v5e (no bf16 EUP path).
    p = jnp.exp(s - m_new)
    l_ref[...] = alpha * l_ref[...] + jnp.sum(p, axis=-1, keepdims=True)
    acc_ref[...] = alpha * acc_ref[...] + jnp.einsum(
        'nqk,nkd->nqd', p.astype(jnp.bfloat16), v,
        preferred_element_type=jnp.float32)
    m_ref[...] = m_new

    @pl.when(ki == nk - 1)
    def _():
        inv_l = pl.reciprocal(l_ref[...], approx=True)        # (nh, tq, 1)
        out = (acc_ref[...] * inv_l).astype(o_ref.dtype)      # (nh, tq, hd)
        hd = out.shape[-1]
        # lane-dense (tq, nh*hd) output block; per-head static-slice stores,
        # epilogue only (once per q tile), removes the wrapper HBM transpose.
        for h in range(nh):
            o_ref[0, :, h * hd:(h + 1) * hd] = out[h]


def _flash_vmem_bytes(nh, hd, khw, tq, tk, use_rel_pos):
    """Rough VMEM footprint: double-buffered bf16 blocks + f32 scratch."""
    blocks = (nh * tq * hd            # q
              + 2 * nh * tk * hd      # k, v
              + tq * nh * hd)         # out
    if use_rel_pos:
        blocks += nh * tq * khw + khw * tk
    dbuf = 2 * blocks * 2             # x2 buffers, bf16
    # m/l scratch lane-pad (nh,tq,1)->(nh,tq,128); acc is f32.
    scratch = 2 * nh * tq * 128 * 4 + nh * tq * hd * 4
    return dbuf + scratch


def pallas_flash_attention(q, k, v, rel_cat, e_sel, *, use_rel_pos):
    """q,k,v: (B,nh,S,hd) bf16; rel_cat: (B,nh,S,k_h+k_w) bf16;
    e_sel: (k_h+k_w, S) bf16 one-hot selector.  Returns (B, S, nh*hd) bf16."""
    B, nh, S, hd = q.shape
    C = nh * hd
    khw = rel_cat.shape[-1] if use_rel_pos else 0

    # Large q tiles cut K/V re-streaming (traffic ∝ S/tq).  Keep the whole
    # double-buffered block set under ~20 MiB so it fits v7x's 32 MiB scoped
    # default (64 MiB physical); v5e/v6e (128 MiB) simply take the same tiles.
    cands = [c for c in (1024, 512, 256, 128) if c <= S and S % c == 0]
    if not cands:
        # TODO(synk): S not 128-divisible -> single full-S tile; for large
        # ragged S, pad S to a multiple of 128 in the wrapper instead.
        cands = [S]
    budget = 20 * 1024 * 1024
    tq = tk = cands[-1]
    done = False
    for tq_c in cands:                # prefer the largest q tile first
        for tk_c in cands:
            if _flash_vmem_bytes(nh, hd, khw, tq_c, tk_c, use_rel_pos) <= budget:
                tq, tk = tq_c, tk_c
                done = True
                break
        if done:
            break
    nq, nk = S // tq, S // tk

    kernel = functools.partial(_flash_attn_kernel, nk=nk, use_rel_pos=use_rel_pos)

    in_specs = [
        pl.BlockSpec((1, nh, tq, hd), lambda b, qi, ki: (b, 0, qi, 0)),
        pl.BlockSpec((1, nh, tk, hd), lambda b, qi, ki: (b, 0, ki, 0)),
        pl.BlockSpec((1, nh, tk, hd), lambda b, qi, ki: (b, 0, ki, 0)),
    ]
    inputs = [q, k, v]
    if use_rel_pos:
        in_specs += [
            pl.BlockSpec((1, nh, tq, khw), lambda b, qi, ki: (b, 0, qi, 0)),
            pl.BlockSpec((khw, tk), lambda b, qi, ki: (0, ki)),
        ]
        inputs += [rel_cat, e_sel]

    return pl.pallas_call(
        kernel,
        out_shape=jax.ShapeDtypeStruct((B, S, C), jnp.bfloat16),
        grid_spec=pltpu.PrefetchScalarGridSpec(
            num_scalar_prefetch=0,
            grid=(B, nq, nk),   # (B, nq) parallel -> feeds both v7x TensorCores
            in_specs=in_specs,
            out_specs=pl.BlockSpec((1, tq, C), lambda b, qi, ki: (b, qi, 0)),
            scratch_shapes=[
                pltpu.VMEM((nh, tq, 1), jnp.float32),   # running max
                pltpu.VMEM((nh, tq, 1), jnp.float32),   # running sum
                pltpu.VMEM((nh, tq, hd), jnp.float32),  # output accumulator
            ],
        ),
        compiler_params=pltpu.CompilerParams(
            dimension_semantics=("parallel", "parallel", "arbitrary")),
    )(*inputs)


# ------------------------ rel-pos glue (plain JAX) -------------------------- #

def get_rel_pos(q_size, k_size, rel_pos):
    max_rel_dist = int(2 * max(q_size, k_size) - 1)
    # TODO(synk): F.interpolate(linear) resize path omitted; rel_pos length always
    # equals 2*max(q,k)-1 as constructed in __init__, so it is never needed here.
    assert rel_pos.shape[0] == max_rel_dist
    q_coords = jnp.arange(q_size)[:, None] * max(k_size / q_size, 1.0)
    k_coords = jnp.arange(k_size)[None, :] * max(q_size / k_size, 1.0)
    relative_coords = (q_coords - k_coords) + (k_size - 1) * max(q_size / k_size, 1.0)
    return rel_pos[relative_coords.astype(jnp.int32)]


# ------------------------------- module ------------------------------------ #

class AttentionPallas:
    """Multi-head attention with (optional) decomposed relative pos embeddings."""

    def __init__(self, dim, num_heads=8, qkv_bias=True, use_rel_pos=False,
                 input_size=None, key=jax.random.PRNGKey(0)):
        self.dim = dim
        self.num_heads = num_heads
        head_dim = dim // num_heads
        self.scale = head_dim ** (-0.5)
        self.use_rel_pos = use_rel_pos

        k1, k2, k3, k4, k5 = jax.random.split(key, 5)
        s = 0.02
        self.qkv_w = s * jax.random.normal(k1, (dim, 3 * dim), jnp.float32)
        self.qkv_b = (s * jax.random.normal(k2, (1, 3 * dim), jnp.float32)
                      if qkv_bias else jnp.zeros((1, 3 * dim), jnp.float32))
        self.proj_w = s * jax.random.normal(k3, (dim, dim), jnp.float32)
        self.proj_b = s * jax.random.normal(k4, (1, dim), jnp.float32)
        if use_rel_pos:
            assert input_size is not None
            kh, kw = jax.random.split(k5)
            # (the torch module zero-inits these; non-zero init exercises the path)
            self.rel_pos_h = s * jax.random.normal(
                kh, (2 * input_size[0] - 1, head_dim), jnp.float32)
            self.rel_pos_w = s * jax.random.normal(
                kw, (2 * input_size[1] - 1, head_dim), jnp.float32)

    def __call__(self, x):
        B, H, W, C = x.shape
        S = H * W
        nh = self.num_heads
        hd = C // nh

        # fold the softmax scale into the q-projection weights (trace-time, tiny)
        qkv_w = (self.qkv_w.at[:, :C].multiply(self.scale)).astype(jnp.bfloat16)
        qkv_b = self.qkv_b.at[:, :C].multiply(self.scale)

        # qkv projection (tiled Pallas matmul, bf16 in / bf16 out)
        x_bf = x.reshape(B * S, C).astype(jnp.bfloat16)
        qkv = pallas_linear(x_bf, qkv_w, qkv_b, out_dtype=jnp.bfloat16)  # (B*S,3C)

        # TODO(synk): at production dims (hd a 128 multiple) the attention
        # BlockSpecs could index q/k/v column ranges of the (B,S,3C) output
        # directly and skip this transpose; here it is done once, in bf16.
        qkv = qkv.reshape(B, S, 3, nh, hd).transpose(2, 0, 3, 1, 4)  # (3,B,nh,S,hd)
        q, k, v = qkv[0], qkv[1], qkv[2]                             # scaled q, bf16

        if self.use_rel_pos:
            # small per-query slabs only (no (S,S) bias is ever materialized);
            # divide the tables by scale since q already carries the scale.
            Rh = (get_rel_pos(H, H, self.rel_pos_h) / self.scale).astype(jnp.bfloat16)
            Rw = (get_rel_pos(W, W, self.rel_pos_w) / self.scale).astype(jnp.bfloat16)
            r_q = q.reshape(B, nh, H, W, hd)
            # TODO(synk): these small einsums could be folded into the flash kernel
            # (Rh/Rw as resident inputs) to avoid the extra q read + slab write.
            rel_h = jnp.einsum('bnhwc,hkc->bnhwk', r_q, Rh,
                               preferred_element_type=jnp.float32)
            rel_w = jnp.einsum('bnhwc,wkc->bnhwk', r_q, Rw,
                               preferred_element_type=jnp.float32)
            rel_cat = jnp.concatenate(
                [rel_h.reshape(B, nh, S, H), rel_w.reshape(B, nh, S, W)],
                axis=-1).astype(jnp.bfloat16)                    # (B, nh, S, H+W)
            # one-hot selector: E[r, j] = [j // W == r] (r < H) else [j % W == r-H]
            rows = jnp.arange(H + W)[:, None]
            cols = jnp.arange(S)[None, :]
            e_sel = jnp.where(rows < H, cols // W == rows,
                              cols % W == (rows - H)).astype(jnp.bfloat16)  # (H+W,S)
        else:
            rel_cat = e_sel = None

        # flash attention (Pallas): all heads per grid step, lane-dense
        # (B, S, C) bf16 output -> transpose-free reshape into proj.
        out = pallas_flash_attention(q, k, v, rel_cat, e_sel,
                                     use_rel_pos=self.use_rel_pos)   # (B,S,C) bf16

        out = pallas_linear(out.reshape(B * S, C),
                            self.proj_w.astype(jnp.bfloat16), self.proj_b,
                            out_dtype=jnp.float32)                   # (B*S, C) f32
        return out.reshape(B, H, W, C)


# ------------------------- pure-JAX reference ------------------------------- #

def reference_forward(x, m: AttentionPallas):
    B, H, W, C = x.shape
    S = H * W
    nh = m.num_heads
    hd = C // nh
    qkv = x.reshape(B * S, C) @ m.qkv_w + m.qkv_b[0]
    qkv = (qkv.reshape(B, S, 3, nh, hd)
              .transpose(2, 0, 3, 1, 4)
              .reshape(3, B * nh, S, hd))
    q, k, v = qkv[0], qkv[1], qkv[2]
    attn = (q * m.scale) @ jnp.swapaxes(k, -2, -1)
    if m.use_rel_pos:
        Rh = get_rel_pos(H, H, m.rel_pos_h)
        Rw = get_rel_pos(W, W, m.rel_pos_w)
        r_q = q.reshape(B * nh, H, W, hd)
        rel_h = jnp.einsum('bhwc,hkc->bhwk', r_q, Rh)
        rel_w = jnp.einsum('bhwc,wkc->bhwk', r_q, Rw)
        attn = attn + (rel_h[:, :, :, :, None]
                       + rel_w[:, :, :, None, :]).reshape(B * nh, S, S)
    attn = jax.nn.softmax(attn, axis=-1)
    out = (attn @ v).reshape(B, nh, H, W, hd).transpose(0, 2, 3, 1, 4).reshape(B * S, C)
    out = out @ m.proj_w + m.proj_b[0]
    return out.reshape(B, H, W, C)


# --------------------------------- main ------------------------------------ #

if __name__ == "__main__":
    B, H, W, dim, num_heads = 2, 8, 8, 32, 4

    key = jax.random.PRNGKey(0)
    kx, kp = jax.random.split(key)
    x = jax.random.normal(kx, (B, H, W, dim), jnp.float32)

    attn = AttentionPallas(dim, num_heads=num_heads, qkv_bias=True,
                           use_rel_pos=True, input_size=(H, W), key=kp)

    fwd = jax.jit(lambda xx: attn(xx))
    out = jax.block_until_ready(fwd(x))
    ref = jax.block_until_ready(reference_forward(x, attn))

    assert out.shape == (B, H, W, dim)
    # bf16 activations/MXU inputs + approx reciprocal -> loosened tolerance
    max_err = float(jnp.max(jnp.abs(out - ref)))
    assert jnp.allclose(out, ref, atol=3e-3, rtol=2e-2), f"max abs err {max_err}"

    print("KERNEL_OK")
</pallas_src>

<mosaic_0001>
module attributes {stable_mosaic.version = 11 : i64} {
  func.func @_linear_kernel(%arg0: i32, %arg1: i32, %arg2: i32, %arg3: memref<128x32xbf16, #tpu.memory_space<vmem>>, %arg4: memref<32x96xbf16, #tpu.memory_space<vmem>>, %arg5: memref<1x96xf32, #tpu.memory_space<vmem>>, %arg6: memref<128x96xbf16, #tpu.memory_space<vmem>>, %arg7: memref<128x96xf32, #tpu.memory_space<vmem>>) attributes {dimension_semantics = [#tpu.dimension_semantics<parallel>, #tpu.dimension_semantics<parallel>, #tpu.dimension_semantics<arbitrary>], iteration_bounds = array<i64: 1, 1, 1>, scalar_prefetch = 0 : i64, scratch_operands = 1 : i64, tpu.core_type = #tpu.core_type<tc>, window_params = [{transform_indices = @transform_0, window_bounds = array<i64: 128, 32>}, {transform_indices = @transform_1, window_bounds = array<i64: 32, 96>}, {transform_indices = @transform_2, window_bounds = array<i64: 1, 96>}, {transform_indices = @transform_3, window_bounds = array<i64: 128, 96>}]} {
    %c0_i32 = arith.constant 0 : i32
    %0 = arith.cmpi eq, %arg2, %c0_i32 : i32
    %1 = arith.extui %0 : i1 to i32
    %c0_i32_0 = arith.constant 0 : i32
    %2 = arith.cmpi ne, %1, %c0_i32_0 : i32
    scf.if %2 {
      %cst_10 = arith.constant 0.000000e+00 : f32
      %12 = vector.broadcast %cst_10 : f32 to vector<128x96xf32>
      %c0_11 = arith.constant 0 : index
      %c0_12 = arith.constant 0 : index
      %13 = vector.load %arg7[%c0_11, %c0_12] : memref<128x96xf32, #tpu.memory_space<vmem>>, vector<128x96xf32>
      tpu.vector_store %arg7[%c0_11, %c0_12], %12 {strides = array<i32>} : memref<128x96xf32, #tpu.memory_space<vmem>>, vector<128x96xf32>,
    } else {
    }
    %c0 = arith.constant 0 : index
    %c0_1 = arith.constant 0 : index
    %3 = vector.load %arg7[%c0, %c0_1] : memref<128x96xf32, #tpu.memory_space<vmem>>, vector<128x96xf32>
    %c0_2 = arith.constant 0 : index
    %c0_3 = arith.constant 0 : index
    %4 = vector.load %arg3[%c0_2, %c0_3] : memref<128x32xbf16, #tpu.memory_space<vmem>>, vector<128x32xbf16>
    %c0_4 = arith.constant 0 : index
    %c0_5 = arith.constant 0 : index
    %5 = vector.load %arg4[%c0_4, %c0_5] : memref<32x96xbf16, #tpu.memory_space<vmem>>, vector<32x96xbf16>
    %cst = arith.constant dense<0.000000e+00> : vector<128x96xf32>
    %6 = tpu.matmul %4, %5, %cst {dimension_numbers = #tpu.dot_dimension_numbers<[1], [0], [0], [1], [0, 0, 1, 1], [], []>} : vector<128x32xbf16>, vector<32x96xbf16>, vector<128x96xf32> -> vector<128x96xf32>
    %7 = arith.addf %3, %6 : vector<128x96xf32>
    %c0_6 = arith.constant 0 : index
    %c0_7 = arith.constant 0 : index
    %8 = vector.load %arg7[%c0_6, %c0_7] : memref<128x96xf32, #tpu.memory_space<vmem>>, vector<128x96xf32>
    tpu.vector_store %arg7[%c0_6, %c0_7], %7 {strides = array<i32>} : memref<128x96xf32, #tpu.memory_space<vmem>>, vector<128x96xf32>,
    %c0_i32_8 = arith.constant 0 : i32
    %9 = arith.cmpi eq, %arg2, %c0_i32_8 : i32
    %10 = arith.extui %9 : i1 to i32
    %c0_i32_9 = arith.constant 0 : i32
    %11 = arith.cmpi ne, %10, %c0_i32_9 : i32
    scf.if %11 {
      %c0_10 = arith.constant 0 : index
      %c0_11 = arith.constant 0 : index
      %12 = vector.load %arg7[%c0_10, %c0_11] : memref<128x96xf32, #tpu.memory_space<vmem>>, vector<128x96xf32>
      %c0_12 = arith.constant 0 : index
      %c0_13 = arith.constant 0 : index
      %13 = vector.load %arg5[%c0_12, %c0_13] : memref<1x96xf32, #tpu.memory_space<vmem>>, vector<1x96xf32>
      %14 = vector.broadcast %13 : vector<1x96xf32> to vector<128x96xf32>
      %15 = arith.addf %12, %14 : vector<128x96xf32>
      %16 = arith.truncf %15 : vector<128x96xf32> to vector<128x96xbf16>
      %c0_14 = arith.constant 0 : index
      %c0_15 = arith.constant 0 : index
      %17 = vector.load %arg6[%c0_14, %c0_15] : memref<128x96xbf16, #tpu.memory_space<vmem>>, vector<128x96xbf16>
      tpu.vector_store %arg6[%c0_14, %c0_15], %16 {strides = array<i32>} : memref<128x96xbf16, #tpu.memory_space<vmem>>, vector<128x96xbf16>,
    } else {
    }
    return
  }
  func.func @transform_0(%arg0: i32, %arg1: i32, %arg2: i32) -> (i32, i32) {
    %c0_i32 = arith.constant 0 : i32
    return %arg0, %arg2 : i32, i32
  }
  func.func @transform_1(%arg0: i32, %arg1: i32, %arg2: i32) -> (i32, i32) {
    %c0_i32 = arith.constant 0 : i32
    return %arg2, %arg1 : i32, i32
  }
  func.func @transform_2(%arg0: i32, %arg1: i32, %arg2: i32) -> (i32, i32) {
    %c0_i32 = arith.constant 0 : i32
    %c0_i32_0 = arith.constant 0 : i32
    return %c0_i32, %arg1 : i32, i32
  }
  func.func @transform_3(%arg0: i32, %arg1: i32, %arg2: i32) -> (i32, i32) {
    %c0_i32 = arith.constant 0 : i32
    return %arg0, %arg1 : i32, i32
  }
}

module attributes {stable_mosaic.version = 11 : i64} {
  func.func @_flash_attn_kernel(%arg0: i32, %arg1: i32, %arg2: i32, %arg3: memref<1x4x64x8xbf16, #tpu.memory_space<vmem>>, %arg4: memref<1x4x64x8xbf16, #tpu.memory_space<vmem>>, %arg5: memref<1x4x64x8xbf16, #tpu.memory_space<vmem>>, %arg6: memref<1x4x64x16xbf16, #tpu.memory_space<vmem>>, %arg7: memref<16x64xbf16, #tpu.memory_space<vmem>>, %arg8: memref<1x64x32xbf16, #tpu.memory_space<vmem>>, %arg9: memref<4x64x1xf32, #tpu.memory_space<vmem>>, %arg10: memref<4x64x1xf32, #tpu.memory_space<vmem>>, %arg11: memref<4x64x8xf32, #tpu.memory_space<vmem>>) attributes {dimension_semantics = [#tpu.dimension_semantics<parallel>, #tpu.dimension_semantics<parallel>, #tpu.dimension_semantics<arbitrary>], iteration_bounds = array<i64: 2, 1, 1>, scalar_prefetch = 0 : i64, scratch_operands = 3 : i64, tpu.core_type = #tpu.core_type<tc>, window_params = [{transform_indices = @transform_0, window_bounds = array<i64: 1, 4, 64, 8>}, {transform_indices = @transform_1, window_bounds = array<i64: 1, 4, 64, 8>}, {transform_indices = @transform_2, window_bounds = array<i64: 1, 4, 64, 8>}, {transform_indices = @transform_3, window_bounds = array<i64: 1, 4, 64, 16>}, {transform_indices = @transform_4, window_bounds = array<i64: 16, 64>}, {transform_indices = @transform_5, window_bounds = array<i64: 1, 64, 32>}]} {
    %c0_i32 = arith.constant 0 : i32
    %0 = arith.cmpi eq, %arg2, %c0_i32 : i32
    %1 = arith.extui %0 : i1 to i32
    %c0_i32_0 = arith.constant 0 : i32
    %2 = arith.cmpi ne, %1, %c0_i32_0 : i32
    scf.if %2 {
      %cst_42 = arith.constant -1.000000e+30 : f32
      %43 = vector.broadcast %cst_42 : f32 to vector<4x64x1xf32>
      %c0_43 = arith.constant 0 : index
      %c0_44 = arith.constant 0 : index
      %c0_45 = arith.constant 0 : index
      %44 = vector.load %arg9[%c0_43, %c0_44, %c0_45] : memref<4x64x1xf32, #tpu.memory_space<vmem>>, vector<4x64x1xf32>
      tpu.vector_store %arg9[%c0_43, %c0_44, %c0_45], %43 {strides = array<i32>} : memref<4x64x1xf32, #tpu.memory_space<vmem>>, vector<4x64x1xf32>,
      %cst_46 = arith.constant 0.000000e+00 : f32
      %45 = vector.broadcast %cst_46 : f32 to vector<4x64x1xf32>
      %c0_47 = arith.constant 0 : index
      %c0_48 = arith.constant 0 : index
      %c0_49 = arith.constant 0 : index
      %46 = vector.load %arg10[%c0_47, %c0_48, %c0_49] : memref<4x64x1xf32, #tpu.memory_space<vmem>>, vector<4x64x1xf32>
      tpu.vector_store %arg10[%c0_47, %c0_48, %c0_49], %45 {strides = array<i32>} : memref<4x64x1xf32, #tpu.memory_space<vmem>>, vector<4x64x1xf32>,
      %cst_50 = arith.constant 0.000000e+00 : f32
      %47 = vector.broadcast %cst_50 : f32 to vector<4x64x8xf32>
      %c0_51 = arith.constant 0 : index
      %c0_52 = arith.constant 0 : index
      %c0_53 = arith.constant 0 : index
      %48 = vector.load %arg11[%c0_51, %c0_52, %c0_53] : memref<4x64x8xf32, #tpu.memory_space<vmem>>, vector<4x64x8xf32>
      tpu.vector_store %arg11[%c0_51, %c0_52, %c0_53], %47 {strides = array<i32>} : memref<4x64x8xf32, #tpu.memory_space<vmem>>, vector<4x64x8xf32>,
    } else {
    }
    %c0 = arith.constant 0 : index
    %c0_1 = arith.constant 0 : index
    %c0_2 = arith.constant 0 : index
    %c0_3 = arith.constant 0 : index
    %3 = vector.load %arg3[%c0, %c0_1, %c0_2, %c0_3] : memref<1x4x64x8xbf16, #tpu.memory_space<vmem>>, vector<1x4x64x8xbf16>
    %4 = vector.shape_cast %3 : vector<1x4x64x8xbf16> to vector<4x64x8xbf16>
    %c0_4 = arith.constant 0 : index
    %c0_5 = arith.constant 0 : index
    %c0_6 = arith.constant 0 : index
    %c0_7 = arith.constant 0 : index
    %5 = vector.load %arg4[%c0_4, %c0_5, %c0_6, %c0_7] : memref<1x4x64x8xbf16, #tpu.memory_space<vmem>>, vector<1x4x64x8xbf16>
    %6 = vector.shape_cast %5 : vector<1x4x64x8xbf16> to vector<4x64x8xbf16>
    %c0_8 = arith.constant 0 : index
    %c0_9 = arith.constant 0 : index
    %c0_10 = arith.constant 0 : index
    %c0_11 = arith.constant 0 : index
    %7 = vector.load %arg5[%c0_8, %c0_9, %c0_10, %c0_11] : memref<1x4x64x8xbf16, #tpu.memory_space<vmem>>, vector<1x4x64x8xbf16>
    %8 = vector.shape_cast %7 : vector<1x4x64x8xbf16> to vector<4x64x8xbf16>
    "tpu.trace_start"() <{level = 10 : i32, message = "nqd,nkd->nqk"}> : () -> ()
    %cst = arith.constant dense<0.000000e+00> : vector<4x64x64xf32>
    %9 = tpu.matmul %4, %6, %cst {dimension_numbers = #tpu.dot_dimension_numbers<[2], [2], [1], [1], [0, 0, 0, 1, 1, 1], [0], [0]>} : vector<4x64x8xbf16>, vector<4x64x8xbf16>, vector<4x64x64xf32> -> vector<4x64x64xf32>
    "tpu.trace_stop"() : () -> ()
    %c0_12 = arith.constant 0 : index
    %c0_13 = arith.constant 0 : index
    %c0_14 = arith.constant 0 : index
    %c0_15 = arith.constant 0 : index
    %10 = vector.load %arg6[%c0_12, %c0_13, %c0_14, %c0_15] : memref<1x4x64x16xbf16, #tpu.memory_space<vmem>>, vector<1x4x64x16xbf16>
    %11 = vector.shape_cast %10 : vector<1x4x64x16xbf16> to vector<4x64x16xbf16>
    %c0_16 = arith.constant 0 : index
    %c0_17 = arith.constant 0 : index
    %12 = vector.load %arg7[%c0_16, %c0_17] : memref<16x64xbf16, #tpu.memory_space<vmem>>, vector<16x64xbf16>
    %13 = vector.shape_cast %11 : vector<4x64x16xbf16> to vector<256x16xbf16>
    %cst_18 = arith.constant dense<0.000000e+00> : vector<256x64xf32>
    %14 = tpu.matmul %13, %12, %cst_18 {dimension_numbers = #tpu.dot_dimension_numbers<[1], [0], [0], [1], [0, 0, 1, 1], [], []>} : vector<256x16xbf16>, vector<16x64xbf16>, vector<256x64xf32> -> vector<256x64xf32>
    %15 = vector.shape_cast %14 : vector<256x64xf32> to vector<4x64x64xf32>
    %16 = arith.addf %9, %15 : vector<4x64x64xf32>
    %c0_19 = arith.constant 0 : index
    %c0_20 = arith.constant 0 : index
    %c0_21 = arith.constant 0 : index
    %17 = vector.load %arg9[%c0_19, %c0_20, %c0_21] : memref<4x64x1xf32, #tpu.memory_space<vmem>>, vector<4x64x1xf32>
    %cst_22 = arith.constant dense<0xFF800000> : vector<4x64xf32>
    %18 = vector.multi_reduction <maximumf>, %16, %cst_22 [2] : vector<4x64x64xf32> to vector<4x64xf32>
    %19 = vector.shape_cast %18 : vector<4x64xf32> to vector<4x64x1xf32>
    %20 = arith.maximumf %17, %19 : vector<4x64x1xf32>
    %21 = arith.subf %17, %20 : vector<4x64x1xf32>
    %22 = math.exp %21 : vector<4x64x1xf32>
    %23 = vector.broadcast %20 : vector<4x64x1xf32> to vector<4x64x64xf32>
    %24 = arith.subf %16, %23 : vector<4x64x64xf32>
    %25 = math.exp %24 : vector<4x64x64xf32>
    %c0_23 = arith.constant 0 : index
    %c0_24 = arith.constant 0 : index
    %c0_25 = arith.constant 0 : index
    %26 = vector.load %arg10[%c0_23, %c0_24, %c0_25] : memref<4x64x1xf32, #tpu.memory_space<vmem>>, vector<4x64x1xf32>
    %27 = arith.mulf %22, %26 : vector<4x64x1xf32>
    %cst_26 = arith.constant dense<0.000000e+00> : vector<4x64xf32>
    %28 = vector.multi_reduction <add>, %25, %cst_26 [2] : vector<4x64x64xf32> to vector<4x64xf32>
    %29 = vector.shape_cast %28 : vector<4x64xf32> to vector<4x64x1xf32>
    %30 = arith.addf %27, %29 : vector<4x64x1xf32>
    %c0_27 = arith.constant 0 : index
    %c0_28 = arith.constant 0 : index
    %c0_29 = arith.constant 0 : index
    %31 = vector.load %arg10[%c0_27, %c0_28, %c0_29] : memref<4x64x1xf32, #tpu.memory_space<vmem>>, vector<4x64x1xf32>
    tpu.vector_store %arg10[%c0_27, %c0_28, %c0_29], %30 {strides = array<i32>} : memref<4x64x1xf32, #tpu.memory_space<vmem>>, vector<4x64x1xf32>,
    %c0_30 = arith.constant 0 : index
    %c0_31 = arith.constant 0 : index
    %c0_32 = arith.constant 0 : index
    %32 = vector.load %arg11[%c0_30, %c0_31, %c0_32] : memref<4x64x8xf32, #tpu.memory_space<vmem>>, vector<4x64x8xf32>
    %33 = vector.broadcast %22 : vector<4x64x1xf32> to vector<4x64x8xf32>
    %34 = arith.mulf %33, %32 : vector<4x64x8xf32>
    %35 = arith.truncf %25 : vector<4x64x64xf32> to vector<4x64x64xbf16>
    "tpu.trace_start"() <{level = 10 : i32, message = "nqk,nkd->nqd"}> : () -> ()
    %cst_33 = arith.constant dense<0.000000e+00> : vector<4x64x8xf32>
    %36 = tpu.matmul %35, %8, %cst_33 {dimension_numbers = #tpu.dot_dimension_numbers<[2], [1], [1], [2], [0, 0, 0, 1, 1, 2], [0], [0]>} : vector<4x64x64xbf16>, vector<4x64x8xbf16>, vector<4x64x8xf32> -> vector<4x64x8xf32>
    "tpu.trace_stop"() : () -> ()
    %37 = arith.addf %34, %36 : vector<4x64x8xf32>
    %c0_34 = arith.constant 0 : index
    %c0_35 = arith.constant 0 : index
    %c0_36 = arith.constant 0 : index
    %38 = vector.load %arg11[%c0_34, %c0_35, %c0_36] : memref<4x64x8xf32, #tpu.memory_space<vmem>>, vector<4x64x8xf32>
    tpu.vector_store %arg11[%c0_34, %c0_35, %c0_36], %37 {strides = array<i32>} : memref<4x64x8xf32, #tpu.memory_space<vmem>>, vector<4x64x8xf32>,
    %c0_37 = arith.constant 0 : index
    %c0_38 = arith.constant 0 : index
    %c0_39 = arith.constant 0 : index
    %39 = vector.load %arg9[%c0_37, %c0_38, %c0_39] : memref<4x64x1xf32, #tpu.memory_space<vmem>>, vector<4x64x1xf32>
    tpu.vector_store %arg9[%c0_37, %c0_38, %c0_39], %20 {strides = array<i32>} : memref<4x64x1xf32, #tpu.memory_space<vmem>>, vector<4x64x1xf32>,
    %c0_i32_40 = arith.constant 0 : i32
    %40 = arith.cmpi eq, %arg2, %c0_i32_40 : i32
    %41 = arith.extui %40 : i1 to i32
    %c0_i32_41 = arith.constant 0 : i32
    %42 = arith.cmpi ne, %41, %c0_i32_41 : i32
    scf.if %42 {
      %c0_42 = arith.constant 0 : index
      %c0_43 = arith.constant 0 : index
      %c0_44 = arith.constant 0 : index
      %43 = vector.load %arg10[%c0_42, %c0_43, %c0_44] : memref<4x64x1xf32, #tpu.memory_space<vmem>>, vector<4x64x1xf32>
      %44 = tpu.reciprocal %43 {approx = true} : vector<4x64x1xf32> -> vector<4x64x1xf32>
      %c0_45 = arith.constant 0 : index
      %c0_46 = arith.constant 0 : index
      %c0_47 = arith.constant 0 : index
      %45 = vector.load %arg11[%c0_45, %c0_46, %c0_47] : memref<4x64x8xf32, #tpu.memory_space<vmem>>, vector<4x64x8xf32>
      %46 = vector.broadcast %44 : vector<4x64x1xf32> to vector<4x64x8xf32>
      %47 = arith.mulf %45, %46 : vector<4x64x8xf32>
      %48 = arith.truncf %47 : vector<4x64x8xf32> to vector<4x64x8xbf16>
      %49 = vector.extract_strided_slice %48 {offsets = [0, 0, 0], sizes = [1, 64, 8], strides = [1, 1, 1]} : vector<4x64x8xbf16> to vector<1x64x8xbf16>
      %50 = vector.shape_cast %49 : vector<1x64x8xbf16> to vector<64x8xbf16>
      %c0_48 = arith.constant 0 : index
      %c0_49 = arith.constant 0 : index
      %c0_50 = arith.constant 0 : index
      %51 = vector.load %arg8[%c0_48, %c0_49, %c0_50] : memref<1x64x32xbf16, #tpu.memory_space<vmem>>, vector<1x64x8xbf16>
      %52 = vector.shape_cast %51 : vector<1x64x8xbf16> to vector<64x8xbf16>
      %53 = vector.shape_cast %50 : vector<64x8xbf16> to vector<1x64x8xbf16>
      tpu.vector_store %arg8[%c0_48, %c0_49, %c0_50], %53 {strides = array<i32>} : memref<1x64x32xbf16, #tpu.memory_space<vmem>>, vector<1x64x8xbf16>,
      %54 = vector.extract_strided_slice %48 {offsets = [1, 0, 0], sizes = [1, 64, 8], strides = [1, 1, 1]} : vector<4x64x8xbf16> to vector<1x64x8xbf16>
      %55 = vector.shape_cast %54 : vector<1x64x8xbf16> to vector<64x8xbf16>
      %c0_51 = arith.constant 0 : index
      %c0_52 = arith.constant 0 : index
      %c8 = arith.constant 8 : index
      %56 = vector.load %arg8[%c0_51, %c0_52, %c8] : memref<1x64x32xbf16, #tpu.memory_space<vmem>>, vector<1x64x8xbf16>
      %57 = vector.shape_cast %56 : vector<1x64x8xbf16> to vector<64x8xbf16>
      %58 = vector.shape_cast %55 : vector<64x8xbf16> to vector<1x64x8xbf16>
      tpu.vector_store %arg8[%c0_51, %c0_52, %c8], %58 {strides = array<i32>} : memref<1x64x32xbf16, #tpu.memory_space<vmem>>, vector<1x64x8xbf16>,
      %59 = vector.extract_strided_slice %48 {offsets = [2, 0, 0], sizes = [1, 64, 8], strides = [1, 1, 1]} : vector<4x64x8xbf16> to vector<1x64x8xbf16>
      %60 = vector.shape_cast %59 : vector<1x64x8xbf16> to vector<64x8xbf16>
      %c0_53 = arith.constant 0 : index
      %c0_54 = arith.constant 0 : index
      %c16 = arith.constant 16 : index
      %61 = vector.load %arg8[%c0_53, %c0_54, %c16] : memref<1x64x32xbf16, #tpu.memory_space<vmem>>, vector<1x64x8xbf16>
      %62 = vector.shape_cast %61 : vector<1x64x8xbf16> to vector<64x8xbf16>
      %63 = vector.shape_cast %60 : vector<64x8xbf16> to vector<1x64x8xbf16>
      tpu.vector_store %arg8[%c0_53, %c0_54, %c16], %63 {strides = array<i32>} : memref<1x64x32xbf16, #tpu.memory_space<vmem>>, vector<1x64x8xbf16>,
      %64 = vector.extract_strided_slice %48 {offsets = [3, 0, 0], sizes = [1, 64, 8], strides = [1, 1, 1]} : vector<4x64x8xbf16> to vector<1x64x8xbf16>
      %65 = vector.shape_cast %64 : vector<1x64x8xbf16> to vector<64x8xbf16>
      %c0_55 = arith.constant 0 : index
      %c0_56 = arith.constant 0 : index
      %c24 = arith.constant 24 : index
      %66 = vector.load %arg8[%c0_55, %c0_56, %c24] : memref<1x64x32xbf16, #tpu.memory_space<vmem>>, vector<1x64x8xbf16>
      %67 = vector.shape_cast %66 : vector<1x64x8xbf16> to vector<64x8xbf16>
      %68 = vector.shape_cast %65 : vector<64x8xbf16> to vector<1x64x8xbf16>
      tpu.vector_store %arg8[%c0_55, %c0_56, %c24], %68 {strides = array<i32>} : memref<1x64x32xbf16, #tpu.memory_space<vmem>>, vector<1x64x8xbf16>,
    } else {
    }
    return
  }
  func.func @transform_0(%arg0: i32, %arg1: i32, %arg2: i32) -> (i32, i32, i32, i32) {
    %c0_i32 = arith.constant 0 : i32
    %c0_i32_0 = arith.constant 0 : i32
    %c0_i32_1 = arith.constant 0 : i32
    return %arg0, %c0_i32, %arg1, %c0_i32_0 : i32, i32, i32, i32
  }
  func.func @transform_1(%arg0: i32, %arg1: i32, %arg2: i32) -> (i32, i32, i32, i32) {
    %c0_i32 = arith.constant 0 : i32
    %c0_i32_0 = arith.constant 0 : i32
    %c0_i32_1 = arith.constant 0 : i32
    return %arg0, %c0_i32, %arg2, %c0_i32_0 : i32, i32, i32, i32
  }
  func.func @transform_2(%arg0: i32, %arg1: i32, %arg2: i32) -> (i32, i32, i32, i32) {
    %c0_i32 = arith.constant 0 : i32
    %c0_i32_0 = arith.constant 0 : i32
    %c0_i32_1 = arith.constant 0 : i32
    return %arg0, %c0_i32, %arg2, %c0_i32_0 : i32, i32, i32, i32
  }
  func.func @transform_3(%arg0: i32, %arg1: i32, %arg2: i32) -> (i32, i32, i32, i32) {
    %c0_i32 = arith.constant 0 : i32
    %c0_i32_0 = arith.constant 0 : i32
    %c0_i32_1 = arith.constant 0 : i32
    return %arg0, %c0_i32, %arg1, %c0_i32_0 : i32, i32, i32, i32
  }
  func.func @transform_4(%arg0: i32, %arg1: i32, %arg2: i32) -> (i32, i32) {
    %c0_i32 = arith.constant 0 : i32
    %c0_i32_0 = arith.constant 0 : i32
    return %c0_i32, %arg2 : i32, i32
  }
  func.func @transform_5(%arg0: i32, %arg1: i32, %arg2: i32) -> (i32, i32, i32) {
    %c0_i32 = arith.constant 0 : i32
    %c0_i32_0 = arith.constant 0 : i32
    return %arg0, %arg1, %c0_i32 : i32, i32, i32
  }
}

module attributes {stable_mosaic.version = 11 : i64} {
  func.func @_linear_kernel(%arg0: i32, %arg1: i32, %arg2: i32, %arg3: memref<128x32xbf16, #tpu.memory_space<vmem>>, %arg4: memref<32x32xbf16, #tpu.memory_space<vmem>>, %arg5: memref<1x32xf32, #tpu.memory_space<vmem>>, %arg6: memref<128x32xf32, #tpu.memory_space<vmem>>, %arg7: memref<128x32xf32, #tpu.memory_space<vmem>>) attributes {dimension_semantics = [#tpu.dimension_semantics<parallel>, #tpu.dimension_semantics<parallel>, #tpu.dimension_semantics<arbitrary>], iteration_bounds = array<i64: 1, 1, 1>, scalar_prefetch = 0 : i64, scratch_operands = 1 : i64, tpu.core_type = #tpu.core_type<tc>, window_params = [{transform_indices = @transform_0, window_bounds = array<i64: 128, 32>}, {transform_indices = @transform_1, window_bounds = array<i64: 32, 32>}, {transform_indices = @transform_2, window_bounds = array<i64: 1, 32>}, {transform_indices = @transform_3, window_bounds = array<i64: 128, 32>}]} {
    %c0_i32 = arith.constant 0 : i32
    %0 = arith.cmpi eq, %arg2, %c0_i32 : i32
    %1 = arith.extui %0 : i1 to i32
    %c0_i32_0 = arith.constant 0 : i32
    %2 = arith.cmpi ne, %1, %c0_i32_0 : i32
    scf.if %2 {
      %cst_10 = arith.constant 0.000000e+00 : f32
      %12 = vector.broadcast %cst_10 : f32 to vector<128x32xf32>
      %c0_11 = arith.constant 0 : index
      %c0_12 = arith.constant 0 : index
      %13 = vector.load %arg7[%c0_11, %c0_12] : memref<128x32xf32, #tpu.memory_space<vmem>>, vector<128x32xf32>
      tpu.vector_store %arg7[%c0_11, %c0_12], %12 {strides = array<i32>} : memref<128x32xf32, #tpu.memory_space<vmem>>, vector<128x32xf32>,
    } else {
    }
    %c0 = arith.constant 0 : index
    %c0_1 = arith.constant 0 : index
    %3 = vector.load %arg7[%c0, %c0_1] : memref<128x32xf32, #tpu.memory_space<vmem>>, vector<128x32xf32>
    %c0_2 = arith.constant 0 : index
    %c0_3 = arith.constant 0 : index
    %4 = vector.load %arg3[%c0_2, %c0_3] : memref<128x32xbf16, #tpu.memory_space<vmem>>, vector<128x32xbf16>
    %c0_4 = arith.constant 0 : index
    %c0_5 = arith.constant 0 : index
    %5 = vector.load %arg4[%c0_4, %c0_5] : memref<32x32xbf16, #tpu.memory_space<vmem>>, vector<32x32xbf16>
    %cst = arith.constant dense<0.000000e+00> : vector<128x32xf32>
    %6 = tpu.matmul %4, %5, %cst {dimension_numbers = #tpu.dot_dimension_numbers<[1], [0], [0], [1], [0, 0, 1, 1], [], []>} : vector<128x32xbf16>, vector<32x32xbf16>, vector<128x32xf32> -> vector<128x32xf32>
    %7 = arith.addf %3, %6 : vector<128x32xf32>
    %c0_6 = arith.constant 0 : index
    %c0_7 = arith.constant 0 : index
    %8 = vector.load %arg7[%c0_6, %c0_7] : memref<128x32xf32, #tpu.memory_space<vmem>>, vector<128x32xf32>
    tpu.vector_store %arg7[%c0_6, %c0_7], %7 {strides = array<i32>} : memref<128x32xf32, #tpu.memory_space<vmem>>, vector<128x32xf32>,
    %c0_i32_8 = arith.constant 0 : i32
    %9 = arith.cmpi eq, %arg2, %c0_i32_8 : i32
    %10 = arith.extui %9 : i1 to i32
    %c0_i32_9 = arith.constant 0 : i32
    %11 = arith.cmpi ne, %10, %c0_i32_9 : i32
    scf.if %11 {
      %c0_10 = arith.constant 0 : index
      %c0_11 = arith.constant 0 : index
      %12 = vector.load %arg7[%c0_10, %c0_11] : memref<128x32xf32, #tpu.memory_space<vmem>>, vector<128x32xf32>
      %c0_12 = arith.constant 0 : index
      %c0_13 = arith.constant 0 : index
      %13 = vector.load %arg5[%c0_12, %c0_13] : memref<1x32xf32, #tpu.memory_space<vmem>>, vector<1x32xf32>
      %14 = vector.broadcast %13 : vector<1x32xf32> to vector<128x32xf32>
      %15 = arith.addf %12, %14 : vector<128x32xf32>
      %c0_14 = arith.constant 0 : index
      %c0_15 = arith.constant 0 : index
      %16 = vector.load %arg6[%c0_14, %c0_15] : memref<128x32xf32, #tpu.memory_space<vmem>>, vector<128x32xf32>
      tpu.vector_store %arg6[%c0_14, %c0_15], %15 {strides = array<i32>} : memref<128x32xf32, #tpu.memory_space<vmem>>, vector<128x32xf32>,
    } else {
    }
    return
  }
  func.func @transform_0(%arg0: i32, %arg1: i32, %arg2: i32) -> (i32, i32) {
    %c0_i32 = arith.constant 0 : i32
    return %arg0, %arg2 : i32, i32
  }
  func.func @transform_1(%arg0: i32, %arg1: i32, %arg2: i32) -> (i32, i32) {
    %c0_i32 = arith.constant 0 : i32
    return %arg2, %arg1 : i32, i32
  }
  func.func @transform_2(%arg0: i32, %arg1: i32, %arg2: i32) -> (i32, i32) {
    %c0_i32 = arith.constant 0 : i32
    %c0_i32_0 = arith.constant 0 : i32
    return %c0_i32, %arg1 : i32, i32
  }
  func.func @transform_3(%arg0: i32, %arg1: i32, %arg2: i32) -> (i32, i32) {
    %c0_i32 = arith.constant 0 : i32
    return %arg0, %arg1 : i32, i32
  }
}

</mosaic_0001>

<bundles_post_ra>
// kernel: _lambda_.3
= control target key start
LH: loop header
LB: loop body
LE: loop exit
PB: predicated region body
PF: predicated region fallthrough
CT: control target
= control target key end

     0   :  { %vm19_vm0 = vcmask 785408   ;;  %v502_v1 = vmov 0.0   ;;  %vm124_vm1 = vcmask 261120   ;;  %vm385_vm2 = vcmask 781312   ;;  %s678_s1 = inlined_call_operand.vmem [shape: bf16[32,96], index: 1, kind: input, shape index: {}]   ;;  %s679_s0 = inlined_call_operand.vmem [shape: bf16[128,32], index: 0, kind: input, shape index: {}]   ;;  %s680_s2 = inlined_call_operand.vmem [shape: f32[1,96], index: 2, kind: input, shape index: {}]   ;;  %s681_s3 = inlined_call_operand.vmem [shape: bf16[128,96], index: 3, kind: output, shape index: {}]  }
   0x1   :  { %v492_v0 = vld [vmem:[%s678_s1] sm:$0xff]   ;;  %22 = vst.msk [vmem:[#allocation2 + $0x10] sm:$0xff] %vm19_vm0, %v502_v1  ;;  %20 = vst.msk [vmem:[#allocation2] sm:$0xff] %vm19_vm0, %v502_v1  ;;  %v493_v2 = vld [vmem:[%s678_s1 + $0x8] sm:$0xff]  }
   0x2   :  { %21 = vst.msk [vmem:[#allocation2 + $0x8] sm:$0xff] %vm19_vm0, %v502_v1  ;;  %23 = vst.msk [vmem:[#allocation2 + $0x18] sm:$0xff] %vm19_vm0, %v502_v1  ;;  %467 = vmatprep.subr.bf16.mxu0 %v492_v0  ;;  %487 = vmatprep.subr.bf16.mxu1 %v492_v0  ;;  %v494_v3 = vld [vmem:[%s679_s0] sm:$0xff]   ;;  %v496_v5 = vld [vmem:[%s679_s0 + $0x8] sm:$0xff]  }
   0x3   :  { %24 = vst.msk [vmem:[#allocation2 + $0x20] sm:$0xff] %vm19_vm0, %v502_v1  ;;  %25 = vst.msk [vmem:[#allocation2 + $0x28] sm:$0xff] %vm19_vm0, %v502_v1  ;;  %468 = vmatpush3.bf16.msra.mxu0 %v492_v0  ;;  %489 = vmatpush3.bf16.msra.mxu1 %v492_v0  ;;  %v495_v4 = vld [vmem:[%s679_s0 + $0x20] sm:$0xff]   ;;  %v497_v6 = vld [vmem:[%s679_s0 + $0x28] sm:$0xff]  }
   0x4   :  { %26 = vst.msk [vmem:[#allocation2 + $0x30] sm:$0xff] %vm19_vm0, %v502_v1  ;;  %27 = vst.msk [vmem:[#allocation2 + $0x38] sm:$0xff] %vm19_vm0, %v502_v1  ;;  %469 = vmatprep.subr.bf16.mxu0 %v493_v2  ;;  %488 = vmatprep.subr.bf16.mxu1 %v493_v2  ;;  %v498_v7 = vld [vmem:[%s679_s0 + $0x10] sm:$0xff]   ;;  %v500_v9 = vld [vmem:[%s679_s0 + $0x18] sm:$0xff]  }
   0x5   :  { %28 = vst.msk [vmem:[#allocation2 + $0x40] sm:$0xff] %vm19_vm0, %v502_v1  ;;  %29 = vst.msk [vmem:[#allocation2 + $0x48] sm:$0xff] %vm19_vm0, %v502_v1  ;;  %471 = vmatprep.mubr.msk.bf16.mxu0 %vm124_vm1, %v494_v3  ;;  %479 = vmatprep.mubr.msk.bf16.mxu1 %vm124_vm1, %v495_v4  ;;  %v499_v8 = vld [vmem:[%s679_s0 + $0x30] sm:$0xff]   ;;  %v501_v10 = vld [vmem:[%s679_s0 + $0x38] sm:$0xff]  }
   0x6   :  { %30 = vst.msk [vmem:[#allocation2 + $0x50] sm:$0xff] %vm19_vm0, %v502_v1  ;;  %31 = vst.msk [vmem:[#allocation2 + $0x58] sm:$0xff] %vm19_vm0, %v502_v1  ;;  %v588_v39 = vld [vmem:[%s680_s2] ss:$0 sm:$0xff] }
   0x7   :  { %32 = vst.msk [vmem:[#allocation2 + $0x60] sm:$0xff] %vm19_vm0, %v502_v1  ;;  %33 = vst.msk [vmem:[#allocation2 + $0x68] sm:$0xff] %vm19_vm0, %v502_v1  ;;  %470 = vmatpush3.bf16.msra.mxu0 %v493_v2  ;;  %490 = vmatpush3.bf16.msra.mxu1 %v493_v2 }
   0x8   :  { %34 = vst.msk [vmem:[#allocation2 + $0x70] sm:$0xff] %vm19_vm0, %v502_v1  ;;  %35 = vst.msk [vmem:[#allocation2 + $0x78] sm:$0xff] %vm19_vm0, %v502_v1  ;;  %v38_v11 = vld [vmem:[#allocation2 + $0x10] sm:$0xff]  ;;  %v36_v13 = vld [vmem:[#allocation2] sm:$0xff] }
   0x9   :  { %v39_v17 = vld [vmem:[#allocation2 + $0x18] sm:$0xff]  ;;  %v37_v23 = vld [vmem:[#allocation2 + $0x8] sm:$0xff] }
   0xa   :  { %472 = vmatmul.mubr.msk.bf16.vlgmr.msra.gmra.mrb[0].mxu0 %vm124_vm1, %v496_v5  ;;  %480 = vmatmul.mubr.msk.bf16.vlgmr.msra.gmra.mrb[0].mxu1 %vm124_vm1, %v497_v6  ;;  %v40_v37 = vld [vmem:[#allocation2 + $0x20] sm:$0xff]  ;;  %v41_v48 = vld [vmem:[#allocation2 + $0x28] sm:$0xff] }
   0xb   :  { %475 = vmatprep.mubr.msk.bf16.mxu0 %vm124_vm1, %v498_v7  ;;  %483 = vmatprep.mubr.msk.bf16.mxu1 %vm124_vm1, %v499_v8  ;;  %v42_v35 = vld [vmem:[#allocation2 + $0x30] sm:$0xff]  ;;  %v43_v42 = vld [vmem:[#allocation2 + $0x38] sm:$0xff] }
   0xc   :  { %v44_v14 = vld [vmem:[#allocation2 + $0x40] sm:$0xff]  ;;  %v45_v24 = vld [vmem:[#allocation2 + $0x48] sm:$0xff] }
   0xd   :  { %v46_v12 = vld [vmem:[#allocation2 + $0x50] sm:$0xff]  ;;  %v47_v18 = vld [vmem:[#allocation2 + $0x58] sm:$0xff] }
   0xe   :  { %v48_v38 = vld [vmem:[#allocation2 + $0x60] sm:$0xff]  ;;  %v49_v49 = vld [vmem:[#allocation2 + $0x68] sm:$0xff] }
   0xf   :  { %v50_v36 = vld [vmem:[#allocation2 + $0x70] sm:$0xff]  ;;  %v51_v43 = vld [vmem:[#allocation2 + $0x78] sm:$0xff] }
  0x12   :  { %476 = vmatmul.mubr.msk.bf16.gmra.mrb[4].mxu0 %vm124_vm1, %v500_v9  ;;  %484 = vmatmul.mubr.msk.bf16.gmra.mrb[4].mxu1 %vm124_vm1, %v501_v10 }
  0xdd   :  { %v473_v15 = vpop.f32.mrb[0].mxu0  ;;  %v481_v16 = vpop.f32.mrb[0].mxu1 }
  0xde   :  { %v248_v19 = vadd.f32 %v473_v15, %v38_v11  ;;  %v256_v20 = vadd.f32 %v481_v16, %v46_v12  ;;  %v183_v21 = vpop.f32.mrb[1].mxu0  ;;  %v215_v22 = vpop.f32.mrb[1].mxu1 }
  0xdf   :  { %v246_v25 = vadd.f32 %v183_v21, %v36_v13  ;;  %v254_v26 = vadd.f32 %v215_v22, %v44_v14  ;;  %v474_v27 = vpop.f32.mrb[2].mxu0  ;;  %v482_v28 = vpop.f32.mrb[2].mxu1 }
  0xe0   :  { %265 = vst.msk [vmem:[#allocation2 + $0x10] sm:$0xff] %vm19_vm0, %v248_v19  ;;  %273 = vst.msk [vmem:[#allocation2 + $0x50] sm:$0xff] %vm19_vm0, %v256_v20  ;;  %v249_v29 = vadd.f32 %v474_v27, %v39_v17  ;;  %v257_v30 = vadd.f32 %v482_v28, %v47_v18  ;;  %v186_v31 = vpop.f32.mrb[3].mxu0  ;;  %v218_v32 = vpop.f32.mrb[3].mxu1 }
  0xe1   :  { %263 = vst.msk [vmem:[#allocation2] sm:$0xff] %vm19_vm0, %v246_v25  ;;  %271 = vst.msk [vmem:[#allocation2 + $0x40] sm:$0xff] %vm19_vm0, %v254_v26  ;;  %v247_v33 = vadd.f32 %v186_v31, %v37_v23  ;;  %v255_v34 = vadd.f32 %v218_v32, %v45_v24 }
  0xe2   :  { %266 = vst.msk [vmem:[#allocation2 + $0x18] sm:$0xff] %vm19_vm0, %v249_v29  ;;  %274 = vst.msk [vmem:[#allocation2 + $0x58] sm:$0xff] %vm19_vm0, %v257_v30 }
  0xe3   :  { %264 = vst.msk [vmem:[#allocation2 + $0x8] sm:$0xff] %vm19_vm0, %v247_v33  ;;  %272 = vst.msk [vmem:[#allocation2 + $0x48] sm:$0xff] %vm19_vm0, %v255_v34 }
  0xe5   :  { %v477_v40 = vpop.f32.mrb[4].mxu0  ;;  %v485_v41 = vpop.f32.mrb[4].mxu1 }
  0xe6   :  { %v252_v44 = vadd.f32 %v477_v40, %v42_v35  ;;  %v260_v45 = vadd.f32 %v485_v41, %v50_v36  ;;  %v199_v46 = vpop.f32.mrb[5].mxu0  ;;  %v231_v47 = vpop.f32.mrb[5].mxu1 }
  0xe7   :  { %v284_v50 = vld [vmem:[#allocation2 + $0x10] sm:$0xff]  ;;  %v250_v52 = vadd.f32 %v199_v46, %v40_v37  ;;  %v258_v53 = vadd.f32 %v231_v47, %v48_v38  ;;  %v478_v54 = vpop.f32.mrb[6].mxu0  ;;  %v486_v55 = vpop.f32.mrb[6].mxu1 }
  0xe8   :  { %v292_v51 = vld [vmem:[#allocation2 + $0x50] sm:$0xff]  ;;  %v307_v56 = vadd.f32 %v588_v39, %v284_v50  ;;  %v282_v58 = vld [vmem:[#allocation2] sm:$0xff]  ;;  %269 = vst.msk [vmem:[#allocation2 + $0x30] sm:$0xff] %vm19_vm0, %v252_v44  ;;  %277 = vst.msk [vmem:[#allocation2 + $0x70] sm:$0xff] %vm19_vm0, %v260_v45  ;;  %v253_v60 = vadd.f32 %v478_v54, %v43_v42  ;;  %v261_v61 = vadd.f32 %v486_v55, %v51_v43  ;;  %v202_v62 = vpop.f32.mrb[7].mxu0  ;;  %v234_v63 = vpop.f32.mrb[7].mxu1 }
  0xe9   :  { %v315_v57 = vadd.f32 %v588_v39, %v292_v51  ;;  %v290_v59 = vld [vmem:[#allocation2 + $0x40] sm:$0xff]  ;;  %v305_v0 = vadd.f32 %v588_v39, %v282_v58  ;;  %v285_v2 = vld [vmem:[#allocation2 + $0x18] sm:$0xff]  ;;  %267 = vst.msk [vmem:[#allocation2 + $0x20] sm:$0xff] %vm19_vm0, %v250_v52  ;;  %275 = vst.msk [vmem:[#allocation2 + $0x60] sm:$0xff] %vm19_vm0, %v258_v53  ;;  %v251_v4 = vadd.f32 %v202_v62, %v41_v48 }
  0xea   :  { %v313_v1 = vadd.f32 %v588_v39, %v290_v59  ;;  %v293_v3 = vld [vmem:[#allocation2 + $0x58] sm:$0xff]  ;;  %v259_v5 = vadd.f32 %v234_v63, %v49_v49  ;;  %v443_v6 = vpack.c.bf16 %v307_v56, %v307_v56  ;;  %v308_v8 = vadd.f32 %v588_v39, %v285_v2  ;;  %v283_v10 = vld [vmem:[#allocation2 + $0x8] sm:$0xff]  ;;  %270 = vst.msk [vmem:[#allocation2 + $0x38] sm:$0xff] %vm19_vm0, %v253_v60 }
  0xeb   :  { %v451_v7 = vpack.c.bf16 %v315_v57, %v315_v57  ;;  %v316_v9 = vadd.f32 %v588_v39, %v293_v3  ;;  %v291_v11 = vld [vmem:[#allocation2 + $0x48] sm:$0xff]  ;;  %278 = vst.msk [vmem:[#allocation2 + $0x78] sm:$0xff] %vm19_vm0, %v261_v61  ;;  %v441_v12 = vpack.c.bf16 %v305_v0, %v305_v0  ;;  %v306_v14 = vadd.f32 %v588_v39, %v283_v10 }
  0xec   :  { %v449_v13 = vpack.c.bf16 %v313_v1, %v313_v1  ;;  %v314_v15 = vadd.f32 %v588_v39, %v291_v11  ;;  %268 = vst.msk [vmem:[#allocation2 + $0x28] sm:$0xff] %vm19_vm0, %v251_v4  ;;  %276 = vst.msk [vmem:[#allocation2 + $0x68] sm:$0xff] %vm19_vm0, %v259_v5  ;;  %v444_v16 = vpack.c.bf16 %v308_v8, %v308_v8 }
  0xed   :  { %388 = vst.msk [vmem:[%s681_s3 + $0x8] sm:$0xf] %vm385_vm2, %v443_v6  ;;  %396 = vst.msk [vmem:[%s681_s3 + $0x28] sm:$0xf] %vm385_vm2, %v451_v7  ;;  %v452_v17 = vpack.c.bf16 %v316_v9, %v316_v9  ;;  %v442_v18 = vpack.c.bf16 %v306_v14, %v306_v14 }
  0xee   :  { %386 = vst.msk [vmem:[%s681_s3] sm:$0xf] %vm385_vm2, %v441_v12  ;;  %394 = vst.msk [vmem:[%s681_s3 + $0x20] sm:$0xf] %vm385_vm2, %v449_v13  ;;  %v450_v19 = vpack.c.bf16 %v314_v15, %v314_v15 }
  0xef   :  { %389 = vst.msk [vmem:[%s681_s3 + $0xc] sm:$0xf] %vm385_vm2, %v444_v16  ;;  %397 = vst.msk [vmem:[%s681_s3 + $0x2c] sm:$0xf] %vm385_vm2, %v452_v17  ;;  %v288_v20 = vld [vmem:[#allocation2 + $0x30] sm:$0xff] }
  0xf0   :  { %387 = vst.msk [vmem:[%s681_s3 + $0x4] sm:$0xf] %vm385_vm2, %v442_v18  ;;  %395 = vst.msk [vmem:[%s681_s3 + $0x24] sm:$0xf] %vm385_vm2, %v450_v19  ;;  %v296_v21 = vld [vmem:[#allocation2 + $0x70] sm:$0xff]  ;;  %v311_v22 = vadd.f32 %v588_v39, %v288_v20  ;;  %v286_v24 = vld [vmem:[#allocation2 + $0x20] sm:$0xff] }
  0xf1   :  { %v319_v23 = vadd.f32 %v588_v39, %v296_v21  ;;  %v294_v25 = vld [vmem:[#allocation2 + $0x60] sm:$0xff]  ;;  %v309_v26 = vadd.f32 %v588_v39, %v286_v24  ;;  %v289_v28 = vld [vmem:[#allocation2 + $0x38] sm:$0xff] }
  0xf2   :  { %v317_v27 = vadd.f32 %v588_v39, %v294_v25  ;;  %v297_v29 = vld [vmem:[#allocation2 + $0x78] sm:$0xff]  ;;  %v447_v30 = vpack.c.bf16 %v311_v22, %v311_v22  ;;  %v312_v32 = vadd.f32 %v588_v39, %v289_v28 }
  0xf3   :  { %v455_v31 = vpack.c.bf16 %v319_v23, %v319_v23  ;;  %v320_v33 = vadd.f32 %v588_v39, %v297_v29  ;;  %v287_v34 = vld [vmem:[#allocation2 + $0x28] sm:$0xff]  ;;  %v445_v36 = vpack.c.bf16 %v309_v26, %v309_v26 }
  0xf4   :  { %v295_v35 = vld [vmem:[#allocation2 + $0x68] sm:$0xff]  ;;  %v453_v37 = vpack.c.bf16 %v317_v27, %v317_v27  ;;  %v310_v38 = vadd.f32 %v588_v39, %v287_v34  ;;  %392 = vst.msk [vmem:[%s681_s3 + $0x18] sm:$0xf] %vm385_vm2, %v447_v30  ;;  %v448_v41 = vpack.c.bf16 %v312_v32, %v312_v32 }
  0xf5   :  { %v318_v40 = vadd.f32 %v588_v39, %v295_v35  ;;  %400 = vst.msk [vmem:[%s681_s3 + $0x38] sm:$0xf] %vm385_vm2, %v455_v31  ;;  %v456_v42 = vpack.c.bf16 %v320_v33, %v320_v33  ;;  %390 = vst.msk [vmem:[%s681_s3 + $0x10] sm:$0xf] %vm385_vm2, %v445_v36 }
  0xf6   :  { %398 = vst.msk [vmem:[%s681_s3 + $0x30] sm:$0xf] %vm385_vm2, %v453_v37  ;;  %v446_v39 = vpack.c.bf16 %v310_v38, %v310_v38  ;;  %393 = vst.msk [vmem:[%s681_s3 + $0x1c] sm:$0xf] %vm385_vm2, %v448_v41 }
  0xf7   :  { %v454_v43 = vpack.c.bf16 %v318_v40, %v318_v40  ;;  %401 = vst.msk [vmem:[%s681_s3 + $0x3c] sm:$0xf] %vm385_vm2, %v456_v42 }
  0xf8   :  { %391 = vst.msk [vmem:[%s681_s3 + $0x14] sm:$0xf] %vm385_vm2, %v446_v39 }
  0xf9   :  { %399 = vst.msk [vmem:[%s681_s3 + $0x34] sm:$0xf] %vm385_vm2, %v454_v43 }

// kernel: _lambda_.5
= control target key start
LH: loop header
LB: loop body
LE: loop exit
PB: predicated region body
PF: predicated region fallthrough
CT: control target
= control target key end

     0   :  { %vm20_vm0 = vcmask 261120   ;;  %v444_v3 = vmov 0.0   ;;  %s587_s0 = inlined_call_operand.vmem [shape: bf16[128,32], index: 0, kind: input, shape index: {}]   ;;  %s588_s1 = inlined_call_operand.vmem [shape: bf16[32,32], index: 1, kind: input, shape index: {}]   ;;  %s589_s2 = inlined_call_operand.vmem [shape: f32[1,32], index: 2, kind: input, shape index: {}]   ;;  %s590_s3 = inlined_call_operand.hbm [shape: f32[128,32], index: 3, kind: output, shape index: {}]  }
   0x1   :  { %v410_v0 = vld [vmem:[%s588_s1] sm:$0xff]   ;;  %v411_v1 = vld [vmem:[%s588_s1 + $0x8] sm:$0xff]   ;;  %23 = vst.msk [vmem:[#allocation2 + $0x10] sm:$0xff] %vm20_vm0, %v444_v3  ;;  %21 = vst.msk [vmem:[#allocation2] sm:$0xff] %vm20_vm0, %v444_v3 }
   0x2   :  { %382 = vmatprep.subr.bf16.mxu0 %v410_v0  ;;  %402 = vmatprep.subr.bf16.mxu1 %v410_v0  ;;  %v412_v2 = vld [vmem:[%s587_s0] sm:$0xff]   ;;  %22 = vst.msk [vmem:[#allocation2 + $0x8] sm:$0xff] %vm20_vm0, %v444_v3  ;;  %24 = vst.msk [vmem:[#allocation2 + $0x18] sm:$0xff] %vm20_vm0, %v444_v3  ;;  %v414_v5 = vld [vmem:[%s587_s0 + $0x8] sm:$0xff]  }
   0x3   :  { %25 = vst.msk [vmem:[#allocation2 + $0x20] sm:$0xff] %vm20_vm0, %v444_v3  ;;  %26 = vst.msk [vmem:[#allocation2 + $0x28] sm:$0xff] %vm20_vm0, %v444_v3  ;;  %383 = vmatpush3.bf16.msra.mxu0 %v410_v0  ;;  %404 = vmatpush3.bf16.msra.mxu1 %v410_v0  ;;  %v413_v4 = vld [vmem:[%s587_s0 + $0x20] sm:$0xff]   ;;  %v415_v6 = vld [vmem:[%s587_s0 + $0x28] sm:$0xff]  }
   0x4   :  { %27 = vst.msk [vmem:[#allocation2 + $0x30] sm:$0xff] %vm20_vm0, %v444_v3  ;;  %28 = vst.msk [vmem:[#allocation2 + $0x38] sm:$0xff] %vm20_vm0, %v444_v3  ;;  %384 = vmatprep.subr.bf16.mxu0 %v411_v1  ;;  %403 = vmatprep.subr.bf16.mxu1 %v411_v1  ;;  %v416_v7 = vld [vmem:[%s587_s0 + $0x10] sm:$0xff]  }
   0x5   :  { %29 = vst.msk [vmem:[#allocation2 + $0x40] sm:$0xff] %vm20_vm0, %v444_v3  ;;  %30 = vst.msk [vmem:[#allocation2 + $0x48] sm:$0xff] %vm20_vm0, %v444_v3  ;;  %386 = vmatprep.mubr.msk.bf16.mxu0 %vm20_vm0, %v412_v2  ;;  %394 = vmatprep.mubr.msk.bf16.mxu1 %vm20_vm0, %v413_v4  ;;  %v417_v8 = vld [vmem:[%s587_s0 + $0x30] sm:$0xff]  }
   0x6   :  { %31 = vst.msk [vmem:[#allocation2 + $0x50] sm:$0xff] %vm20_vm0, %v444_v3  ;;  %32 = vst.msk [vmem:[#allocation2 + $0x58] sm:$0xff] %vm20_vm0, %v444_v3 }
   0x7   :  { %33 = vst.msk [vmem:[#allocation2 + $0x60] sm:$0xff] %vm20_vm0, %v444_v3  ;;  %34 = vst.msk [vmem:[#allocation2 + $0x68] sm:$0xff] %vm20_vm0, %v444_v3  ;;  %385 = vmatpush3.bf16.msra.mxu0 %v411_v1  ;;  %405 = vmatpush3.bf16.msra.mxu1 %v411_v1 }
   0x8   :  { %35 = vst.msk [vmem:[#allocation2 + $0x70] sm:$0xff] %vm20_vm0, %v444_v3  ;;  %36 = vst.msk [vmem:[#allocation2 + $0x78] sm:$0xff] %vm20_vm0, %v444_v3 }
   0xa   :  { %387 = vmatmul.mubr.msk.bf16.vlgmr.msra.gmra.mrb[0].mxu0 %vm20_vm0, %v414_v5  ;;  %395 = vmatmul.mubr.msk.bf16.vlgmr.msra.gmra.mrb[0].mxu1 %vm20_vm0, %v415_v6 }
   0xb   :  { %8 = vsyncpa [#allocation4], 0  ;;  %390 = vmatprep.mubr.msk.bf16.mxu0 %vm20_vm0, %v416_v7  ;;  %398 = vmatprep.mubr.msk.bf16.mxu1 %vm20_vm0, %v417_v8  ;;  %v418_v9 = vld [vmem:[%s587_s0 + $0x18] sm:$0xff]   ;;  %v39_v11 = vld [vmem:[#allocation2 + $0x10] sm:$0xff] }
   0xc   :  { %v419_v10 = vld [vmem:[%s587_s0 + $0x38] sm:$0xff]   ;;  %v37_v13 = vld [vmem:[#allocation2] sm:$0xff]  ;;  %v38_v23 = vld [vmem:[#allocation2 + $0x8] sm:$0xff] }
   0xd   :  { %v47_v12 = vld [vmem:[#allocation2 + $0x50] sm:$0xff]  ;;  %v45_v14 = vld [vmem:[#allocation2 + $0x40] sm:$0xff]  ;;  %v40_v17 = vld [vmem:[#allocation2 + $0x18] sm:$0xff] }
   0xe   :  { %v48_v18 = vld [vmem:[#allocation2 + $0x58] sm:$0xff]  ;;  %v46_v24 = vld [vmem:[#allocation2 + $0x48] sm:$0xff]  ;;  %v43_v35 = vld [vmem:[#allocation2 + $0x30] sm:$0xff] }
   0xf   :  { %v51_v36 = vld [vmem:[#allocation2 + $0x70] sm:$0xff]  ;;  %v41_v37 = vld [vmem:[#allocation2 + $0x20] sm:$0xff]  ;;  %v44_v42 = vld [vmem:[#allocation2 + $0x38] sm:$0xff] }
  0x10   :  { %v49_v38 = vld [vmem:[#allocation2 + $0x60] sm:$0xff]  ;;  %v52_v43 = vld [vmem:[#allocation2 + $0x78] sm:$0xff]  ;;  %v42_v48 = vld [vmem:[#allocation2 + $0x28] sm:$0xff] }
  0x11   :  { %v533_v39 = vld [vmem:[%s589_s2] ss:$0 sm:$0xff]  ;;  %v50_v49 = vld [vmem:[#allocation2 + $0x68] sm:$0xff]  ;;  %s445_s2 = smov [#allocation3]  }
  0x12   :  { %391 = vmatmul.mubr.msk.bf16.gmra.mrb[4].mxu0 %vm20_vm0, %v418_v9  ;;  %399 = vmatmul.mubr.msk.bf16.gmra.mrb[4].mxu1 %vm20_vm0, %v419_v10  ;;  %s342_s5 = sshll.u32 %s445_s2, 4  ;;  %s343_s5 = int_to_ptr.vmem [resolvable:$true] %s342_s5 }
  0x13   :  { %s420_s6 = scalar_lea.vmem %s343_s5, 2048  ;;  %p425_p1 = scmp.lt.s32.totalorder %s343_s5, %s343_s5 }
  0x14   :  { %p421_p0 = scmp.ne.s32.totalorder %s343_s5, %s420_s6  ;;  %p426_p2 = scmp.lt.s32.totalorder %s420_s6, %s420_s6 }
  0x16   :  { %p427_p3 = por %p426_p2, %p425_p1 }
  0x18   :  { %p428_p4 = pnand %p427_p3, %p421_p0 }
  0xdd   :  { %v388_v15 = vpop.f32.mrb[0].mxu0  ;;  %v396_v16 = vpop.f32.mrb[0].mxu1 }
  0xde   :  { %v249_v19 = vadd.f32 %v388_v15, %v39_v11  ;;  %v257_v20 = vadd.f32 %v396_v16, %v47_v12  ;;  %v184_v21 = vpop.f32.mrb[1].mxu0  ;;  %v216_v22 = vpop.f32.mrb[1].mxu1 }
  0xdf   :  { %v247_v25 = vadd.f32 %v184_v21, %v37_v13  ;;  %v255_v26 = vadd.f32 %v216_v22, %v45_v14  ;;  %v389_v27 = vpop.f32.mrb[2].mxu0  ;;  %v397_v28 = vpop.f32.mrb[2].mxu1 }
  0xe0   :  { %265 = vst.msk [vmem:[#allocation2 + $0x10] sm:$0xff] %vm20_vm0, %v249_v19  ;;  %273 = vst.msk [vmem:[#allocation2 + $0x50] sm:$0xff] %vm20_vm0, %v257_v20  ;;  %v250_v29 = vadd.f32 %v389_v27, %v40_v17  ;;  %v258_v30 = vadd.f32 %v397_v28, %v48_v18  ;;  %v187_v31 = vpop.f32.mrb[3].mxu0  ;;  %v219_v32 = vpop.f32.mrb[3].mxu1 }
  0xe1   :  { %263 = vst.msk [vmem:[#allocation2] sm:$0xff] %vm20_vm0, %v247_v25  ;;  %271 = vst.msk [vmem:[#allocation2 + $0x40] sm:$0xff] %vm20_vm0, %v255_v26  ;;  %v248_v33 = vadd.f32 %v187_v31, %v38_v23  ;;  %v256_v34 = vadd.f32 %v219_v32, %v46_v24 }
  0xe2   :  { %266 = vst.msk [vmem:[#allocation2 + $0x18] sm:$0xff] %vm20_vm0, %v250_v29  ;;  %274 = vst.msk [vmem:[#allocation2 + $0x58] sm:$0xff] %vm20_vm0, %v258_v30 }
  0xe3   :  { %264 = vst.msk [vmem:[#allocation2 + $0x8] sm:$0xff] %vm20_vm0, %v248_v33  ;;  %272 = vst.msk [vmem:[#allocation2 + $0x48] sm:$0xff] %vm20_vm0, %v256_v34 }
  0xe5   :  { %v392_v40 = vpop.f32.mrb[4].mxu0  ;;  %v400_v41 = vpop.f32.mrb[4].mxu1 }
  0xe6   :  { %v253_v44 = vadd.f32 %v392_v40, %v43_v35  ;;  %v261_v45 = vadd.f32 %v400_v41, %v51_v36  ;;  %v200_v46 = vpop.f32.mrb[5].mxu0  ;;  %v232_v47 = vpop.f32.mrb[5].mxu1 }
  0xe7   :  { %v284_v50 = vld [vmem:[#allocation2 + $0x10] sm:$0xff]  ;;  %v251_v52 = vadd.f32 %v200_v46, %v41_v37  ;;  %v259_v53 = vadd.f32 %v232_v47, %v49_v38  ;;  %v393_v54 = vpop.f32.mrb[6].mxu0  ;;  %v401_v55 = vpop.f32.mrb[6].mxu1 }
  0xe8   :  { %v292_v51 = vld [vmem:[#allocation2 + $0x50] sm:$0xff]  ;;  %v307_v56 = vadd.f32 %v533_v39, %v284_v50  ;;  %v282_v58 = vld [vmem:[#allocation2] sm:$0xff]  ;;  %269 = vst.msk [vmem:[#allocation2 + $0x30] sm:$0xff] %vm20_vm0, %v253_v44  ;;  %277 = vst.msk [vmem:[#allocation2 + $0x70] sm:$0xff] %vm20_vm0, %v261_v45  ;;  %v254_v60 = vadd.f32 %v393_v54, %v44_v42  ;;  %v262_v61 = vadd.f32 %v401_v55, %v52_v43  ;;  %v203_v62 = vpop.f32.mrb[7].mxu0  ;;  %v235_v63 = vpop.f32.mrb[7].mxu1 }
  0xe9   :  { %v315_v57 = vadd.f32 %v533_v39, %v292_v51  ;;  %v290_v59 = vld [vmem:[#allocation2 + $0x40] sm:$0xff]  ;;  %v305_v0 = vadd.f32 %v533_v39, %v282_v58  ;;  %v285_v2 = vld [vmem:[#allocation2 + $0x18] sm:$0xff]  ;;  %267 = vst.msk [vmem:[#allocation2 + $0x20] sm:$0xff] %vm20_vm0, %v251_v52  ;;  %275 = vst.msk [vmem:[#allocation2 + $0x60] sm:$0xff] %vm20_vm0, %v259_v53  ;;  %v252_v4 = vadd.f32 %v203_v62, %v42_v48 }
  0xea   :  { %v313_v1 = vadd.f32 %v533_v39, %v290_v59  ;;  %v293_v3 = vld [vmem:[#allocation2 + $0x58] sm:$0xff]  ;;  %v260_v5 = vadd.f32 %v235_v63, %v50_v49  ;;  %323 = vst.msk [vmem:[#allocation3 + $0x10] sm:$0xff] %vm20_vm0, %v307_v56  ;;  %v308_v6 = vadd.f32 %v533_v39, %v285_v2  ;;  %v283_v8 = vld [vmem:[#allocation2 + $0x8] sm:$0xff]  ;;  %270 = vst.msk [vmem:[#allocation2 + $0x38] sm:$0xff] %vm20_vm0, %v254_v60 }
  0xeb   :  { %331 = vst.msk [vmem:[#allocation3 + $0x50] sm:$0xff] %vm20_vm0, %v315_v57  ;;  %v316_v7 = vadd.f32 %v533_v39, %v293_v3  ;;  %v291_v9 = vld [vmem:[#allocation2 + $0x48] sm:$0xff]  ;;  %278 = vst.msk [vmem:[#allocation2 + $0x78] sm:$0xff] %vm20_vm0, %v262_v61  ;;  %v306_v10 = vadd.f32 %v533_v39, %v283_v8 }
  0xec   :  { %321 = vst.msk [vmem:[#allocation3] sm:$0xff] %vm20_vm0, %v305_v0  ;;  %329 = vst.msk [vmem:[#allocation3 + $0x40] sm:$0xff] %vm20_vm0, %v313_v1  ;;  %v314_v11 = vadd.f32 %v533_v39, %v291_v9 }
  0xed   :  { %268 = vst.msk [vmem:[#allocation2 + $0x28] sm:$0xff] %vm20_vm0, %v252_v4  ;;  %276 = vst.msk [vmem:[#allocation2 + $0x68] sm:$0xff] %vm20_vm0, %v260_v5 }
  0xee   :  { %324 = vst.msk [vmem:[#allocation3 + $0x18] sm:$0xff] %vm20_vm0, %v308_v6  ;;  %332 = vst.msk [vmem:[#allocation3 + $0x58] sm:$0xff] %vm20_vm0, %v316_v7 }
  0xef   :  { %322 = vst.msk [vmem:[#allocation3 + $0x8] sm:$0xff] %vm20_vm0, %v306_v10  ;;  %330 = vst.msk [vmem:[#allocation3 + $0x48] sm:$0xff] %vm20_vm0, %v314_v11  ;;  %v288_v12 = vld [vmem:[#allocation2 + $0x30] sm:$0xff] }
  0xf0   :  { %v296_v13 = vld [vmem:[#allocation2 + $0x70] sm:$0xff]  ;;  %v311_v14 = vadd.f32 %v533_v39, %v288_v12  ;;  %v286_v16 = vld [vmem:[#allocation2 + $0x20] sm:$0xff] }
  0xf1   :  { %v319_v15 = vadd.f32 %v533_v39, %v296_v13  ;;  %v294_v17 = vld [vmem:[#allocation2 + $0x60] sm:$0xff]  ;;  %v309_v18 = vadd.f32 %v533_v39, %v286_v16  ;;  %v289_v20 = vld [vmem:[#allocation2 + $0x38] sm:$0xff] }
  0xf2   :  { %v317_v19 = vadd.f32 %v533_v39, %v294_v17  ;;  %v297_v21 = vld [vmem:[#allocation2 + $0x78] sm:$0xff]  ;;  %327 = vst.msk [vmem:[#allocation3 + $0x30] sm:$0xff] %vm20_vm0, %v311_v14  ;;  %v312_v22 = vadd.f32 %v533_v39, %v289_v20 }
  0xf3   :  { %335 = vst.msk [vmem:[#allocation3 + $0x70] sm:$0xff] %vm20_vm0, %v319_v15  ;;  %v320_v23 = vadd.f32 %v533_v39, %v297_v21  ;;  %325 = vst.msk [vmem:[#allocation3 + $0x20] sm:$0xff] %vm20_vm0, %v309_v18 }
  0xf4   :  { %v287_v24 = vld [vmem:[#allocation2 + $0x28] sm:$0xff]  ;;  %333 = vst.msk [vmem:[#allocation3 + $0x60] sm:$0xff] %vm20_vm0, %v317_v19  ;;  %328 = vst.msk [vmem:[#allocation3 + $0x38] sm:$0xff] %vm20_vm0, %v312_v22 }
  0xf5   :  { %v295_v25 = vld [vmem:[#allocation2 + $0x68] sm:$0xff]  ;;  %v310_v26 = vadd.f32 %v533_v39, %v287_v24  ;;  %336 = vst.msk [vmem:[#allocation3 + $0x78] sm:$0xff] %vm20_vm0, %v320_v23 }
  0xf6   :  { %v318_v27 = vadd.f32 %v533_v39, %v295_v25 }
  0xf7   :  { %326 = vst.msk [vmem:[#allocation3 + $0x28] sm:$0xff] %vm20_vm0, %v310_v26 }
  0xf8   :  { %334 = vst.msk [vmem:[#allocation3 + $0x68] sm:$0xff] %vm20_vm0, %v318_v27 }
  0xf9   :  { %431 = shalt.err (!%p428_p4)
}
  0xfa   :  { %s432_s9 = scalar_lea.hbm %s590_s3, 2048 }
  0xfb   :  { %p433_p5 = scmp.ne.s32.totalorder %s590_s3, %s432_s9  ;;  %p436_p6 = scmp.lt.u32.totalorder %s432_s9, %s590_s3 }
  0xfd   :  { %p438_p7 = pnand %p436_p6, %p433_p5 }
  0xff   :  { %441 = shalt.err (!%p438_p7)
}
 0x100   :  { %s446_s14 = smov 128   ;;  %s447_s15 = smov 8  }
 0x101   :  { %348 = dma.vmem_to_hbm [thread:$0]  %s343_s5, 2048, %s590_s3, [#allocation4], %s446_s14, %s446_s14, %s447_s15  }
 0x102   :  { %442 = dma.done.wait [#allocation4], 2048  }
 0x103   :  { %443 = vsyncadd [#allocation4], 4294965248 }
 0x104   :  { %352 = vsyncpa [#allocation4], 1 }

// kernel: _lambda_.4
= control target key start
LH: loop header
LB: loop body
LE: loop exit
PB: predicated region body
PF: predicated region fallthrough
CT: control target
= control target key end

     0   :  { %s4422_s18 = smov 0   ;;  %s4424_s19 = smov 0   ;;  %s5931_s0 = inlined_call_operand.vmem [shape: bf16[2,4,64,8], index: 0, kind: input, shape index: {}]   ;;  %s5932_s1 = inlined_call_operand.vmem [shape: bf16[2,4,64,8], index: 1, kind: input, shape index: {}]   ;;  %s5933_s2 = inlined_call_operand.vmem [shape: bf16[2,4,64,8], index: 2, kind: input, shape index: {}]   ;;  %s5934_s3 = inlined_call_operand.vmem [shape: bf16[2,4,64,16], index: 3, kind: input, shape index: {}]   ;;  %s5935_s4 = inlined_call_operand.vmem [shape: bf16[16,64], index: 4, kind: input, shape index: {}]   ;;  %s5936_s5 = inlined_call_operand.vmem [shape: bf16[2,64,32], index: 5, kind: output, shape index: {}]  }
   0x1   :  { %s4426_s20 = smov 0  }
   0x2 LB: > { %s34_s21 = sadd.s32 1, %s4380_s19  ;;  %p3587_p0 = scmp.ge.s32.totalorder %s4384_s20, 1  ;;  %s4384_s20 = sphi %s4426_s20, %s15_s20   ;;  %s4380_s19 = sphi %s4424_s19, %s6103_s19   ;;  %s4376_s18 = sphi %s4422_s18, %s6102_s18  }
   0x3   : > { %p36_p1 = scmp.ge.s32.totalorder %s34_s21, 2  ;;  %p275_p2 = scmp.lt.s32.totalorder %s4384_s20, 3 }
   0x5   : > { %s6105_s21 = smov (%p36_p1, %s34_s21), 0  ;;  %p276_p3 = pnand %p3587_p0, %p275_p2 }
   0x7   : > { %279 = sbr.rel (%p276_p3) target bundleno = 1098 (0x44a), region = 40 }
   0xe   : > { %p343_p4 = scmp.lt.s32.totalorder %s4376_s18, 1  ;;  %v4109_v0 = vld [vmem:[%s5935_s4] sm:$0xff]   ;;  %vm466_vm0 = vcmask 64512   ;;  %vm715_vm1 = vcmask 130048   ;;  %vm401_vm2 = vcmask 7168   ;;  %vm1474_vm3 = vcmask 523264  }
   0xf   : > { %3863 = vmatprep.subr.bf16.mxu1 %v4109_v0  ;;  %vm3255_vm4 = vcmask 60416   ;;  %s4389_s16 = smov 8   ;;  %s4390_s17 = smov 16   ;;  %vm3308_vm5 = vcmask 126016   ;;  %vm3361_vm6 = vcmask 191616   ;;  %vm3414_vm7 = vcmask 257216  }
  0x10   : > { %s6107_s18 = smov (!%p343_p4, %s4376_s18), 1  ;;  %3864 = vmatpush3.bf16.msra.mxu1 %v4109_v0 }
  0x11   : > { %s4446_s24 = sshll.u32 %s6107_s18, 7  ;;  %s3749_s12 = sshll.u32 %s6107_s18, 5 }
  0x12   : > { %s4452_s27 = scalar_lea.vmem %s5932_s1, %s4446_s24  ;;  %s4460_s30 = scalar_lea.vmem %s5934_s3, %s4446_s24 }
  0x13   : > { %v4105_v1 = vld [vmem:[%s4452_s27] sm:$0xff]   ;;  %v4106_v2 = vld [vmem:[%s4452_s27 + $0x8] sm:$0xff]   ;;  %s4468_s8 = scalar_lea.vmem %s5931_s0, %s4446_s24  ;;  %v4107_v8 = vld [vmem:[%s4452_s27 + $0x10] sm:$0xff]   ;;  %s5004_s11 = scalar_lea.vmem %s5933_s2, %s4446_s24 }
  0x14   : > { %4057 = vmatprep.subr.msk.bf16.mxu0 %vm466_vm0, %v4105_v1  ;;  %v979_v3 = vsel %vm466_vm0, %v4105_v1, 0  ;;  %v4110_v4 = vld [vmem:[%s4460_s30] sm:$0xff]   ;;  %v4112_v6 = vld [vmem:[%s4460_s30 + $0x8] sm:$0xff]   ;;  %v982_v7 = vsel %vm466_vm0, %v4106_v2, 0  ;;  %v4116_v9 = vld [vmem:[%s4460_s30 + $0x10] sm:$0xff]   ;;  %v985_v12 = vsel %vm466_vm0, %v4107_v8, 0  ;;  %s5832_s15 = scalar_lea.vmem %s5936_s5, %s3749_s12 }
  0x15   : > { %3898 = vmatpush3.bf16.xpose.msra.mxu0 %v979_v3  ;;  %v4111_v5 = vld [vmem:[%s4468_s8] sm:$0xff]   ;;  %3865 = vmatprep.mubr.msk.bf16.mxu1 %vm715_vm1, %v4110_v4  ;;  %v4118_v10 = vld [vmem:[%s4460_s30 + $0x18] sm:$0xff]   ;;  %v4124_v14 = vld [vmem:[%s4460_s30 + $0x28] sm:$0xff]   ;;  %s4391_s18 = smov 24  }
  0x16   : > { %4058 = vmatprep.subr.msk.bf16.mxu0 %vm466_vm0, %v4106_v2  ;;  %3905 = vmatprep.mubr.msk.bf16.mxu0 %vm466_vm0, %v4111_v5  ;;  %v4108_v11 = vld [vmem:[%s4452_s27 + $0x18] sm:$0xff]   ;;  %v4122_v13 = vld [vmem:[%s4460_s30 + $0x20] sm:$0xff]   ;;  %v4127_v15 = vld [vmem:[%s4460_s30 + $0x30] sm:$0xff]  }
  0x17   : > { %3866 = vmatmul.mubr.msk.bf16.vlgmr.msra.gmra.mrb[0].mxu1 %vm715_vm1, %v4112_v6  ;;  %v988_v16 = vsel %vm466_vm0, %v4108_v11, 0  ;;  %v4114_v17 = vld [vmem:[%s4452_s27 + $0x20] sm:$0xff]   ;;  %v4129_v18 = vld [vmem:[%s4460_s30 + $0x38] sm:$0xff]   ;;  %v4113_v20 = vld [vmem:[%s4468_s8 + $0x8] sm:$0xff]  }
  0x18   : > { %3869 = vmatprep.mubr.msk.bf16.mxu1 %vm715_vm1, %v4116_v9  ;;  %v4134_v19 = vld [vmem:[%s4460_s30 + $0x40] sm:$0xff]   ;;  %v4117_v21 = vld [vmem:[%s4468_s8 + $0x10] sm:$0xff]   ;;  %v1108_v22 = vsel %vm466_vm0, %v4114_v17, 0  ;;  %v4115_v23 = vld [vmem:[%s4452_s27 + $0x28] sm:$0xff]   ;;  %v4386_v9 = vmov -1e+30  }
  0x19   : > { %v4136_v24 = vld [vmem:[%s4460_s30 + $0x48] sm:$0xff]   ;;  %v4139_v25 = vld [vmem:[%s4460_s30 + $0x50] sm:$0xff]   ;;  %v4119_v26 = vld [vmem:[%s4468_s8 + $0x18] sm:$0xff]   ;;  %v1111_v28 = vsel %vm466_vm0, %v4115_v23, 0  ;;  %404 = vst.msk [vmem:[#allocation2 + $0x10] sm:$0xff] %vm401_vm2, %v4386_v9 }
  0x1a   : > { %v4123_v27 = vld [vmem:[%s4468_s8 + $0x20] sm:$0xff]   ;;  %v4120_v29 = vld [vmem:[%s4452_s27 + $0x30] sm:$0xff]   ;;  %v4141_v30 = vld [vmem:[%s4460_s30 + $0x58] sm:$0xff]   ;;  %402 = vst.msk [vmem:[#allocation2] sm:$0xff] %vm401_vm2, %v4386_v9 }
  0x1b   : > { %v4146_v31 = vld [vmem:[%s4460_s30 + $0x60] sm:$0xff]   ;;  %v1114_v32 = vsel %vm466_vm0, %v4120_v29, 0  ;;  %v4121_v33 = vld [vmem:[%s4452_s27 + $0x38] sm:$0xff]   ;;  %v4147_v34 = vld [vmem:[%s4460_s30 + $0x68] sm:$0xff]   ;;  %403 = vst.msk [vmem:[#allocation2 + $0x8] sm:$0xff] %vm401_vm2, %v4386_v9 }
  0x1c   : > { %v4150_v35 = vld [vmem:[%s4460_s30 + $0x70] sm:$0xff]   ;;  %v1117_v36 = vsel %vm466_vm0, %v4121_v33, 0  ;;  %v4126_v37 = vld [vmem:[%s4452_s27 + $0x40] sm:$0xff]   ;;  %v4151_v38 = vld [vmem:[%s4460_s30 + $0x78] sm:$0xff]   ;;  %405 = vst.msk [vmem:[#allocation2 + $0x18] sm:$0xff] %vm401_vm2, %v4386_v9 }
  0x1d   : > { %3900 = vmatpush3.bf16.xpose.msra.mxu0 %v982_v7  ;;  %v4125_v39 = vld [vmem:[%s4468_s8 + $0x28] sm:$0xff]   ;;  %v4128_v40 = vld [vmem:[%s4468_s8 + $0x30] sm:$0xff]   ;;  %v1237_v41 = vsel %vm466_vm0, %v4126_v37, 0  ;;  %v4130_v43 = vld [vmem:[%s4468_s8 + $0x38] sm:$0xff]   ;;  %406 = vst.msk [vmem:[#allocation2 + $0x20] sm:$0xff] %vm401_vm2, %v4386_v9 }
  0x1e   : > { %4059 = vmatprep.subr.msk.bf16.mxu0 %vm466_vm0, %v4107_v8  ;;  %v4131_v42 = vld [vmem:[%s4452_s27 + $0x48] sm:$0xff]   ;;  %v4135_v44 = vld [vmem:[%s4468_s8 + $0x40] sm:$0xff]   ;;  %v4132_v46 = vld [vmem:[%s4452_s27 + $0x50] sm:$0xff]   ;;  %407 = vst.msk [vmem:[#allocation2 + $0x28] sm:$0xff] %vm401_vm2, %v4386_v9 }
  0x1f   : > { %3870 = vmatmul.mubr.msk.bf16.gmra.mrb[4].mxu1 %vm715_vm1, %v4118_v10  ;;  %v1240_v45 = vsel %vm466_vm0, %v4131_v42, 0  ;;  %v1243_v47 = vsel %vm466_vm0, %v4132_v46, 0  ;;  %v4133_v48 = vld [vmem:[%s4452_s27 + $0x58] sm:$0xff]   ;;  %v4138_v50 = vld [vmem:[%s4452_s27 + $0x60] sm:$0xff]   ;;  %v4137_v51 = vld [vmem:[%s4468_s8 + $0x48] sm:$0xff]   ;;  %408 = vst.msk [vmem:[#allocation2 + $0x30] sm:$0xff] %vm401_vm2, %v4386_v9 }
  0x20   : > { %3873 = vmatprep.mubr.msk.bf16.mxu1 %vm715_vm1, %v4122_v13  ;;  %v1246_v49 = vsel %vm466_vm0, %v4133_v48, 0  ;;  %v4140_v52 = vld [vmem:[%s4468_s8 + $0x50] sm:$0xff]   ;;  %v1366_v53 = vsel %vm466_vm0, %v4138_v50, 0  ;;  %v4143_v54 = vld [vmem:[%s4452_s27 + $0x68] sm:$0xff]   ;;  %v4142_v55 = vld [vmem:[%s4468_s8 + $0x58] sm:$0xff]   ;;  %409 = vst.msk [vmem:[#allocation2 + $0x38] sm:$0xff] %vm401_vm2, %v4386_v9 }
  0x21   : > { %v4148_v56 = vld [vmem:[%s4468_s8 + $0x60] sm:$0xff]   ;;  %v1369_v57 = vsel %vm466_vm0, %v4143_v54, 0  ;;  %v4144_v58 = vld [vmem:[%s4452_s27 + $0x70] sm:$0xff]   ;;  %v4145_v60 = vld [vmem:[%s4452_s27 + $0x78] sm:$0xff]   ;;  %410 = vst.msk [vmem:[#allocation2 + $0x40] sm:$0xff] %vm401_vm2, %v4386_v9 }
  0x22   : > { %v1372_v59 = vsel %vm466_vm0, %v4144_v58, 0  ;;  %v1375_v61 = vsel %vm466_vm0, %v4145_v60, 0  ;;  %v4149_v62 = vld [vmem:[%s4468_s8 + $0x68] sm:$0xff]   ;;  %v4152_v63 = vld [vmem:[%s4468_s8 + $0x70] sm:$0xff]   ;;  %v4153_v0 = vld [vmem:[%s4468_s8 + $0x78] sm:$0xff]   ;;  %411 = vst.msk [vmem:[#allocation2 + $0x48] sm:$0xff] %vm401_vm2, %v4386_v9 }
  0x23   : > { %412 = vst.msk [vmem:[#allocation2 + $0x50] sm:$0xff] %vm401_vm2, %v4386_v9  ;;  %413 = vst.msk [vmem:[#allocation2 + $0x58] sm:$0xff] %vm401_vm2, %v4386_v9 }
  0x24   : > { %414 = vst.msk [vmem:[#allocation2 + $0x60] sm:$0xff] %vm401_vm2, %v4386_v9  ;;  %415 = vst.msk [vmem:[#allocation2 + $0x68] sm:$0xff] %vm401_vm2, %v4386_v9 }
  0x25   : > { %3902 = vmatpush3.bf16.xpose.msra.mxu0 %v985_v12  ;;  %416 = vst.msk [vmem:[#allocation2 + $0x70] sm:$0xff] %vm401_vm2, %v4386_v9  ;;  %417 = vst.msk [vmem:[#allocation2 + $0x78] sm:$0xff] %vm401_vm2, %v4386_v9 }
  0x26   : > { %4060 = vmatprep.subr.msk.bf16.mxu0 %vm466_vm0, %v4108_v11  ;;  %418 = vst.msk [vmem:[#allocation2 + $0x80] sm:$0xff] %vm401_vm2, %v4386_v9  ;;  %419 = vst.msk [vmem:[#allocation2 + $0x88] sm:$0xff] %vm401_vm2, %v4386_v9 }
  0x27   : > { %3874 = vmatmul.mubr.msk.bf16.gmra.mrb[8].mxu1 %vm715_vm1, %v4124_v14  ;;  %420 = vst.msk [vmem:[#allocation2 + $0x90] sm:$0xff] %vm401_vm2, %v4386_v9  ;;  %421 = vst.msk [vmem:[#allocation2 + $0x98] sm:$0xff] %vm401_vm2, %v4386_v9 }
  0x28   : > { %3877 = vmatprep.mubr.msk.bf16.mxu1 %vm715_vm1, %v4127_v15  ;;  %422 = vst.msk [vmem:[#allocation2 + $0xa0] sm:$0xff] %vm401_vm2, %v4386_v9  ;;  %423 = vst.msk [vmem:[#allocation2 + $0xa8] sm:$0xff] %vm401_vm2, %v4386_v9 }
  0x29   : > { %424 = vst.msk [vmem:[#allocation2 + $0xb0] sm:$0xff] %vm401_vm2, %v4386_v9  ;;  %425 = vst.msk [vmem:[#allocation2 + $0xb8] sm:$0xff] %vm401_vm2, %v4386_v9 }
  0x2a   : > { %426 = vst.msk [vmem:[#allocation2 + $0xc0] sm:$0xff] %vm401_vm2, %v4386_v9  ;;  %427 = vst.msk [vmem:[#allocation2 + $0xc8] sm:$0xff] %vm401_vm2, %v4386_v9 }
  0x2b   : > { %428 = vst.msk [vmem:[#allocation2 + $0xd0] sm:$0xff] %vm401_vm2, %v4386_v9  ;;  %429 = vst.msk [vmem:[#allocation2 + $0xd8] sm:$0xff] %vm401_vm2, %v4386_v9 }
  0x2c   : > { %430 = vst.msk [vmem:[#allocation2 + $0xe0] sm:$0xff] %vm401_vm2, %v4386_v9  ;;  %431 = vst.msk [vmem:[#allocation2 + $0xe8] sm:$0xff] %vm401_vm2, %v4386_v9 }
  0x2d   : > { %3904 = vmatpush3.bf16.xpose.msra.mxu0 %v988_v16  ;;  %432 = vst.msk [vmem:[#allocation2 + $0xf0] sm:$0xff] %vm401_vm2, %v4386_v9  ;;  %433 = vst.msk [vmem:[#allocation2 + $0xf8] sm:$0xff] %vm401_vm2, %v4386_v9 }
  0x2e   : > { %4061 = vmatprep.subr.msk.bf16.mxu0 %vm466_vm0, %v4114_v17 }
  0x2f   : > { %3878 = vmatmul.mubr.msk.bf16.gmra.mrb[12].mxu1 %vm715_vm1, %v4129_v18 }
  0x30   : > { %3881 = vmatprep.mubr.msk.bf16.mxu1 %vm715_vm1, %v4134_v19 }
  0x34   : > { %3906 = vmatmul.mubr.msk.bf16.vlgmr.msra.gmra.mrb[0].mxu0 %vm466_vm0, %v4113_v20 }
  0x35   : > { %3914 = vmatpush3.bf16.xpose.msra.mxu0 %v1108_v22  ;;  %3909 = vmatprep.mubr.msk.bf16.mxu0 %vm466_vm0, %v4117_v21 }
  0x36   : > { %4062 = vmatprep.subr.msk.bf16.mxu0 %vm466_vm0, %v4115_v23 }
  0x37   : > { %3882 = vmatmul.mubr.msk.bf16.gmra.mrb[16].mxu1 %vm715_vm1, %v4136_v24 }
  0x38   : > { %3885 = vmatprep.mubr.msk.bf16.mxu1 %vm715_vm1, %v4139_v25 }
  0x3c   : > { %3910 = vmatmul.mubr.msk.bf16.gmra.mrb[4].mxu0 %vm466_vm0, %v4119_v26 }
  0x3d   : > { %3916 = vmatpush3.bf16.xpose.msra.mxu0 %v1111_v28  ;;  %3921 = vmatprep.mubr.msk.bf16.mxu0 %vm466_vm0, %v4123_v27 }
  0x3e   : > { %4063 = vmatprep.subr.msk.bf16.mxu0 %vm466_vm0, %v4120_v29 }
  0x3f   : > { %3886 = vmatmul.mubr.msk.bf16.gmra.mrb[20].mxu1 %vm715_vm1, %v4141_v30 }
  0x40   : > { %3889 = vmatprep.mubr.msk.bf16.mxu1 %vm715_vm1, %v4146_v31 }
  0x45   : > { %3918 = vmatpush3.bf16.xpose.msra.mxu0 %v1114_v32 }
  0x46   : > { %4064 = vmatprep.subr.msk.bf16.mxu0 %vm466_vm0, %v4121_v33 }
  0x47   : > { %3890 = vmatmul.mubr.msk.bf16.gmra.mrb[24].mxu1 %vm715_vm1, %v4147_v34 }
  0x48   : > { %3893 = vmatprep.mubr.msk.bf16.mxu1 %vm715_vm1, %v4150_v35 }
  0x4d   : > { %3920 = vmatpush3.bf16.xpose.msra.mxu0 %v1117_v36 }
  0x4e   : > { %4065 = vmatprep.subr.msk.bf16.mxu0 %vm466_vm0, %v4126_v37 }
  0x4f   : > { %3894 = vmatmul.mubr.msk.bf16.gmra.mrb[28].mxu1 %vm715_vm1, %v4151_v38 }
  0x54   : > { %3922 = vmatmul.mubr.msk.bf16.vlgmr.msra.gmra.mrb[8].mxu0 %vm466_vm0, %v4125_v39 }
  0x55   : > { %3930 = vmatpush3.bf16.xpose.msra.mxu0 %v1237_v41  ;;  %3925 = vmatprep.mubr.msk.bf16.mxu0 %vm466_vm0, %v4128_v40 }
  0x56   : > { %4066 = vmatprep.subr.msk.bf16.mxu0 %vm466_vm0, %v4131_v42 }
  0x5c   : > { %3926 = vmatmul.mubr.msk.bf16.gmra.mrb[12].mxu0 %vm466_vm0, %v4130_v43 }
  0x5d   : > { %3932 = vmatpush3.bf16.xpose.msra.mxu0 %v1240_v45  ;;  %3937 = vmatprep.mubr.msk.bf16.mxu0 %vm466_vm0, %v4135_v44 }
  0x5e   : > { %4067 = vmatprep.subr.msk.bf16.mxu0 %vm466_vm0, %v4132_v46 }
  0x65   : > { %3934 = vmatpush3.bf16.xpose.msra.mxu0 %v1243_v47 }
  0x66   : > { %4068 = vmatprep.subr.msk.bf16.mxu0 %vm466_vm0, %v4133_v48 }
  0x6d   : > { %3936 = vmatpush3.bf16.xpose.msra.mxu0 %v1246_v49 }
  0x6e   : > { %4069 = vmatprep.subr.msk.bf16.mxu0 %vm466_vm0, %v4138_v50  ;;  %v4387_v50 = vmov 0  }
  0x6f   : > { %4104 = vset.pattern.permute.xlu1 %v4387_v50  ;;  %4103 = vset.pattern.permute.xlu0 %v4387_v50 }
  0x74   : > { %3938 = vmatmul.mubr.msk.bf16.vlgmr.msra.gmra.mrb[16].mxu0 %vm466_vm0, %v4137_v51 }
  0x75   : > { %3946 = vmatpush3.bf16.xpose.msra.mxu0 %v1366_v53  ;;  %3941 = vmatprep.mubr.msk.bf16.mxu0 %vm466_vm0, %v4140_v52 }
  0x76   : > { %4070 = vmatprep.subr.msk.bf16.mxu0 %vm466_vm0, %v4143_v54 }
  0x7c   : > { %3942 = vmatmul.mubr.msk.bf16.gmra.mrb[20].mxu0 %vm466_vm0, %v4142_v55  ;;  %v4388_v55 = vmov 0.0  }
  0x7d   : > { %3948 = vmatpush3.bf16.xpose.msra.mxu0 %v1369_v57  ;;  %3953 = vmatprep.mubr.msk.bf16.mxu0 %vm466_vm0, %v4148_v56  ;;  %468 = vst.msk [vmem:[#allocation4 + $0x8] sm:$0xff] %vm466_vm0, %v4388_v55  ;;  %467 = vst.msk [vmem:[#allocation4] sm:$0xff] %vm466_vm0, %v4388_v55 }
  0x7e   : > { %4071 = vmatprep.subr.msk.bf16.mxu0 %vm466_vm0, %v4144_v58  ;;  %434 = vst.msk [vmem:[#allocation3] sm:$0xff] %vm401_vm2, %v4388_v55  ;;  %435 = vst.msk [vmem:[#allocation3 + $0x8] sm:$0xff] %vm401_vm2, %v4388_v55 }
  0x7f   : > { %436 = vst.msk [vmem:[#allocation3 + $0x10] sm:$0xff] %vm401_vm2, %v4388_v55  ;;  %437 = vst.msk [vmem:[#allocation3 + $0x18] sm:$0xff] %vm401_vm2, %v4388_v55 }
  0x80   : > { %438 = vst.msk [vmem:[#allocation3 + $0x20] sm:$0xff] %vm401_vm2, %v4388_v55  ;;  %439 = vst.msk [vmem:[#allocation3 + $0x28] sm:$0xff] %vm401_vm2, %v4388_v55 }
  0x81   : > { %440 = vst.msk [vmem:[#allocation3 + $0x30] sm:$0xff] %vm401_vm2, %v4388_v55  ;;  %441 = vst.msk [vmem:[#allocation3 + $0x38] sm:$0xff] %vm401_vm2, %v4388_v55 }
  0x82   : > { %442 = vst.msk [vmem:[#allocation3 + $0x40] sm:$0xff] %vm401_vm2, %v4388_v55  ;;  %443 = vst.msk [vmem:[#allocation3 + $0x48] sm:$0xff] %vm401_vm2, %v4388_v55 }
  0x83   : > { %444 = vst.msk [vmem:[#allocation3 + $0x50] sm:$0xff] %vm401_vm2, %v4388_v55  ;;  %445 = vst.msk [vmem:[#allocation3 + $0x58] sm:$0xff] %vm401_vm2, %v4388_v55 }
  0x84   : > { %446 = vst.msk [vmem:[#allocation3 + $0x60] sm:$0xff] %vm401_vm2, %v4388_v55  ;;  %447 = vst.msk [vmem:[#allocation3 + $0x68] sm:$0xff] %vm401_vm2, %v4388_v55 }
  0x85   : > { %3950 = vmatpush3.bf16.xpose.msra.mxu0 %v1372_v59  ;;  %448 = vst.msk [vmem:[#allocation3 + $0x70] sm:$0xff] %vm401_vm2, %v4388_v55  ;;  %449 = vst.msk [vmem:[#allocation3 + $0x78] sm:$0xff] %vm401_vm2, %v4388_v55 }
  0x86   : > { %4072 = vmatprep.subr.msk.bf16.mxu0 %vm466_vm0, %v4145_v60  ;;  %450 = vst.msk [vmem:[#allocation3 + $0x80] sm:$0xff] %vm401_vm2, %v4388_v55  ;;  %451 = vst.msk [vmem:[#allocation3 + $0x88] sm:$0xff] %vm401_vm2, %v4388_v55 }
  0x87   : > { %452 = vst.msk [vmem:[#allocation3 + $0x90] sm:$0xff] %vm401_vm2, %v4388_v55  ;;  %453 = vst.msk [vmem:[#allocation3 + $0x98] sm:$0xff] %vm401_vm2, %v4388_v55 }
  0x88   : > { %454 = vst.msk [vmem:[#allocation3 + $0xa0] sm:$0xff] %vm401_vm2, %v4388_v55  ;;  %455 = vst.msk [vmem:[#allocation3 + $0xa8] sm:$0xff] %vm401_vm2, %v4388_v55 }
  0x89   : > { %456 = vst.msk [vmem:[#allocation3 + $0xb0] sm:$0xff] %vm401_vm2, %v4388_v55  ;;  %457 = vst.msk [vmem:[#allocation3 + $0xb8] sm:$0xff] %vm401_vm2, %v4388_v55 }
  0x8a   : > { %458 = vst.msk [vmem:[#allocation3 + $0xc0] sm:$0xff] %vm401_vm2, %v4388_v55  ;;  %459 = vst.msk [vmem:[#allocation3 + $0xc8] sm:$0xff] %vm401_vm2, %v4388_v55 }
  0x8b   : > { %460 = vst.msk [vmem:[#allocation3 + $0xd0] sm:$0xff] %vm401_vm2, %v4388_v55  ;;  %461 = vst.msk [vmem:[#allocation3 + $0xd8] sm:$0xff] %vm401_vm2, %v4388_v55 }
  0x8c   : > { %462 = vst.msk [vmem:[#allocation3 + $0xe0] sm:$0xff] %vm401_vm2, %v4388_v55  ;;  %463 = vst.msk [vmem:[#allocation3 + $0xe8] sm:$0xff] %vm401_vm2, %v4388_v55 }
  0x8d   : > { %3952 = vmatpush3.bf16.xpose.msra.mxu0 %v1375_v61  ;;  %464 = vst.msk [vmem:[#allocation3 + $0xf0] sm:$0xff] %vm401_vm2, %v4388_v55  ;;  %465 = vst.msk [vmem:[#allocation3 + $0xf8] sm:$0xff] %vm401_vm2, %v4388_v55 }
  0x8e   : > { %469 = vst.msk [vmem:[#allocation4 + $0x10] sm:$0xff] %vm466_vm0, %v4388_v55  ;;  %470 = vst.msk [vmem:[#allocation4 + $0x18] sm:$0xff] %vm466_vm0, %v4388_v55 }
  0x8f   : > { %471 = vst.msk [vmem:[#allocation4 + $0x20] sm:$0xff] %vm466_vm0, %v4388_v55  ;;  %472 = vst.msk [vmem:[#allocation4 + $0x28] sm:$0xff] %vm466_vm0, %v4388_v55 }
  0x90   : > { %473 = vst.msk [vmem:[#allocation4 + $0x30] sm:$0xff] %vm466_vm0, %v4388_v55  ;;  %474 = vst.msk [vmem:[#allocation4 + $0x38] sm:$0xff] %vm466_vm0, %v4388_v55 }
  0x91   : > { %475 = vst.msk [vmem:[#allocation4 + $0x40] sm:$0xff] %vm466_vm0, %v4388_v55  ;;  %476 = vst.msk [vmem:[#allocation4 + $0x48] sm:$0xff] %vm466_vm0, %v4388_v55 }
  0x92   : > { %477 = vst.msk [vmem:[#allocation4 + $0x50] sm:$0xff] %vm466_vm0, %v4388_v55  ;;  %478 = vst.msk [vmem:[#allocation4 + $0x58] sm:$0xff] %vm466_vm0, %v4388_v55 }
  0x93   : > { %479 = vst.msk [vmem:[#allocation4 + $0x60] sm:$0xff] %vm466_vm0, %v4388_v55  ;;  %480 = vst.msk [vmem:[#allocation4 + $0x68] sm:$0xff] %vm466_vm0, %v4388_v55 }
  0x94   : > { %3954 = vmatmul.mubr.msk.bf16.vlgmr.msra.gmra.mrb[24].mxu0 %vm466_vm0, %v4149_v62  ;;  %481 = vst.msk [vmem:[#allocation4 + $0x70] sm:$0xff] %vm466_vm0, %v4388_v55  ;;  %482 = vst.msk [vmem:[#allocation4 + $0x78] sm:$0xff] %vm466_vm0, %v4388_v55 }
  0x95   : > { %3957 = vmatprep.mubr.msk.bf16.mxu0 %vm466_vm0, %v4152_v63  ;;  %483 = vst.msk [vmem:[#allocation4 + $0x80] sm:$0xff] %vm466_vm0, %v4388_v55  ;;  %484 = vst.msk [vmem:[#allocation4 + $0x88] sm:$0xff] %vm466_vm0, %v4388_v55 }
  0x96   : > { %485 = vst.msk [vmem:[#allocation4 + $0x90] sm:$0xff] %vm466_vm0, %v4388_v55  ;;  %486 = vst.msk [vmem:[#allocation4 + $0x98] sm:$0xff] %vm466_vm0, %v4388_v55 }
  0x97   : > { %487 = vst.msk [vmem:[#allocation4 + $0xa0] sm:$0xff] %vm466_vm0, %v4388_v55  ;;  %488 = vst.msk [vmem:[#allocation4 + $0xa8] sm:$0xff] %vm466_vm0, %v4388_v55 }
  0x98   : > { %489 = vst.msk [vmem:[#allocation4 + $0xb0] sm:$0xff] %vm466_vm0, %v4388_v55  ;;  %490 = vst.msk [vmem:[#allocation4 + $0xb8] sm:$0xff] %vm466_vm0, %v4388_v55 }
  0x99   : > { %491 = vst.msk [vmem:[#allocation4 + $0xc0] sm:$0xff] %vm466_vm0, %v4388_v55  ;;  %492 = vst.msk [vmem:[#allocation4 + $0xc8] sm:$0xff] %vm466_vm0, %v4388_v55 }
  0x9a   : > { %493 = vst.msk [vmem:[#allocation4 + $0xd0] sm:$0xff] %vm466_vm0, %v4388_v55  ;;  %494 = vst.msk [vmem:[#allocation4 + $0xd8] sm:$0xff] %vm466_vm0, %v4388_v55 }
  0x9b   : > { %495 = vst.msk [vmem:[#allocation4 + $0xe0] sm:$0xff] %vm466_vm0, %v4388_v55  ;;  %496 = vst.msk [vmem:[#allocation4 + $0xe8] sm:$0xff] %vm466_vm0, %v4388_v55 }
  0x9c   : > { %3958 = vmatmul.mubr.msk.bf16.gmra.mrb[28].mxu0 %vm466_vm0, %v4153_v0  ;;  %497 = vst.msk [vmem:[#allocation4 + $0xf0] sm:$0xff] %vm466_vm0, %v4388_v55  ;;  %498 = vst.msk [vmem:[#allocation4 + $0xf8] sm:$0xff] %vm466_vm0, %v4388_v55 }
  0xea   : > { %v3867_v1 = vpop.f32.mrb[0].mxu1 }
  0xeb   : > { %v798_v2 = vpop.f32.mrb[1].mxu1 }
  0xec   : > { %v3868_v3 = vpop.f32.mrb[2].mxu1 }
  0xed   : > { %v801_v4 = vpop.f32.mrb[3].mxu1 }
  0xf2   : > { %v4578_v5 = vpop.f32.mrb[4].mxu1 }
  0xf3   : > { %v4580_v6 = vpop.f32.mrb[5].mxu1 }
  0xf4   : > { %v4582_v7 = vpop.f32.mrb[6].mxu1 }
  0xf5   : > { %v4584_v8 = vpop.f32.mrb[7].mxu1 }
  0xfa   : > { %v4618_v10 = vpop.f32.mrb[8].mxu1 }
  0xfb   : > { %v4620_v11 = vpop.f32.mrb[9].mxu1 }
  0xfc   : > { %v4622_v12 = vpop.f32.mrb[10].mxu1 }
  0xfd   : > { %v4624_v13 = vpop.f32.mrb[11].mxu1 }
 0x102   : > { %v4626_v14 = vpop.f32.mrb[12].mxu1 }
 0x103   : > { %v4628_v15 = vpop.f32.mrb[13].mxu1 }
 0x104   : > { %v4630_v17 = vpop.f32.mrb[14].mxu1 }
 0x105   : > { %v4634_v20 = vpop.f32.mrb[15].mxu1 }
 0x107   : > { %v3907_v16 = vpop.f32.mrb[0].mxu0 }
 0x108   : > { %v4632_v18 = vadd.f32 %v3907_v16, %v3867_v1  ;;  %v1024_v19 = vpop.f32.mrb[1].mxu0 }
 0x109   : > { %v4636_v21 = vadd.f32 %v1024_v19, %v798_v2  ;;  %v3908_v22 = vpop.f32.mrb[2].mxu0 }
 0x10a   : > { %v4638_v23 = vadd.f32 %v3908_v22, %v3868_v3  ;;  %v1027_v24 = vpop.f32.mrb[3].mxu0  ;;  %v1481_v25 = vsel %vm1474_vm3, %v4632_v18, -inf  ;;  %v4646_v28 = vpop.f32.mrb[16].mxu1 }
 0x10b   : > { %v4642_v26 = vadd.f32 %v1027_v24, %v801_v4  ;;  %1482 = vmax.xlane.f32.xlu1 %v1481_v25  ;;  %v1475_v27 = vsel %vm1474_vm3, %v4636_v21, -inf  ;;  %v4650_v30 = vpop.f32.mrb[17].mxu1 }
 0x10c   : > { %1476 = vmax.xlane.f32.xlu0 %v1475_v27  ;;  %v1484_v29 = vsel %vm1474_vm3, %v4638_v23, -inf  ;;  %v4654_v33 = vpop.f32.mrb[18].mxu1 }
 0x10d   : > { %v1478_v31 = vsel %vm1474_vm3, %v4642_v26, -inf  ;;  %v4659_v36 = vpop.f32.mrb[19].mxu1 }
 0x10f   : > { %1485 = vmax.xlane.f32.xlu1 %v1484_v29  ;;  %v3911_v32 = vpop.f32.mrb[4].mxu0 }
 0x110   : > { %1479 = vmax.xlane.f32.xlu0 %v1478_v31  ;;  %v4657_v34 = vadd.f32 %v3911_v32, %v4578_v5  ;;  %v1040_v35 = vpop.f32.mrb[5].mxu0 }
 0x111   : > { %v4662_v37 = vadd.f32 %v1040_v35, %v4580_v6  ;;  %v3912_v38 = vpop.f32.mrb[6].mxu0 }
 0x112   : > { %5977 = vst [vmem:[#allocation5_spill] sm:$0xff] %v4657_v34  ;;  %v4665_v39 = vadd.f32 %v3912_v38, %v4582_v7  ;;  %v1493_v40 = vsel %vm1474_vm3, %v4657_v34, -inf  ;;  %v1043_v41 = vpop.f32.mrb[7].mxu0  ;;  %v4676_v45 = vpop.f32.mrb[20].mxu1  ;;  %v5225_v34 = vld [vmem:[#allocation2 + $0xf0] sm:$0xff] }
 0x113   : > { %v4670_v42 = vadd.f32 %v1043_v41, %v4584_v8  ;;  %v1487_v44 = vsel %vm1474_vm3, %v4662_v37, -inf  ;;  %v4680_v47 = vpop.f32.mrb[21].mxu1  ;;  %6012 = vst [vmem:[#allocation40_spill] sm:$0xff] %v5225_v34 }
 0x114   : > { %5978 = vst [vmem:[#allocation6_spill] sm:$0xff] %v4665_v39  ;;  %1494 = vmax.xlane.f32.xlu0 %v1493_v40  ;;  %v1496_v43 = vsel %vm1474_vm3, %v4665_v39, -inf  ;;  %v4682_v48 = vpop.f32.mrb[22].mxu1  ;;  %v5218_v39 = vld [vmem:[#allocation2 + $0xc8] sm:$0xff] }
 0x115   : > { %5979 = vst [vmem:[#allocation7_spill] sm:$0xff] %v4670_v42  ;;  %1497 = vmax.xlane.f32.xlu1 %v1496_v43  ;;  %v1490_v46 = vsel %vm1474_vm3, %v4670_v42, -inf  ;;  %v4684_v49 = vpop.f32.mrb[23].mxu1  ;;  %6010 = vst [vmem:[#allocation38_spill] sm:$0xff] %v5218_v39 }
 0x118   : > { %1488 = vmax.xlane.f32.xlu0 %v1487_v44 }
 0x119   : > { %1491 = vmax.xlane.f32.xlu1 %v1490_v46 }
 0x11a   : > { %v4686_v51 = vpop.f32.mrb[24].mxu1 }
 0x11b   : > { %v4688_v52 = vpop.f32.mrb[25].mxu1 }
 0x11c   : > { %v4690_v53 = vpop.f32.mrb[26].mxu1 }
 0x11d   : > { %v4692_v54 = vpop.f32.mrb[27].mxu1 }
 0x122   : > { %v4822_v56 = vpop.f32.mrb[28].mxu1 }
 0x123   : > { %v4824_v57 = vpop.f32.mrb[29].mxu1 }
 0x124   : > { %v4826_v59 = vpop.f32.mrb[30].mxu1 }
 0x125   : > { %v4831_v62 = vpop.f32.mrb[31].mxu1 }
 0x127   : > { %v3923_v58 = vpop.f32.mrb[8].mxu0 }
 0x128   : > { %v4829_v60 = vadd.f32 %v3923_v58, %v4618_v10  ;;  %v1153_v61 = vpop.f32.mrb[9].mxu0 }
 0x129   : > { %v4834_v63 = vadd.f32 %v1153_v61, %v4620_v11  ;;  %v3924_v0 = vpop.f32.mrb[10].mxu0 }
 0x12a   : > { %5980 = vst [vmem:[#allocation8_spill] sm:$0xff] %v4829_v60  ;;  %v4837_v1 = vadd.f32 %v3924_v0, %v4622_v12  ;;  %v1156_v2 = vpop.f32.mrb[11].mxu0  ;;  %v1505_v3 = vsel %vm1474_vm3, %v4829_v60, -inf  ;;  %v5206_v60 = vld [vmem:[#allocation2 + $0xd8] sm:$0xff] }
 0x12b   : > { %5981 = vst [vmem:[#allocation9_spill] sm:$0xff] %v4834_v63  ;;  %v4842_v4 = vadd.f32 %v1156_v2, %v4624_v13  ;;  %1506 = vmax.xlane.f32.xlu0 %v1505_v3  ;;  %v1499_v6 = vsel %vm1474_vm3, %v4834_v63, -inf  ;;  %6008 = vst [vmem:[#allocation36_spill] sm:$0xff] %v5206_v60  ;;  %v5211_v63 = vld [vmem:[#allocation2 + $0xc0] sm:$0xff] }
 0x12c   : > { %5982 = vst [vmem:[#allocation10_spill] sm:$0xff] %v4837_v1  ;;  %v1508_v5 = vsel %vm1474_vm3, %v4837_v1, -inf  ;;  %6009 = vst [vmem:[#allocation37_spill] sm:$0xff] %v5211_v63 }
 0x12d   : > { %5983 = vst [vmem:[#allocation11_spill] sm:$0xff] %v4842_v4  ;;  %1509 = vmax.xlane.f32.xlu1 %v1508_v5  ;;  %v1502_v10 = vsel %vm1474_vm3, %v4842_v4, -inf }
 0x12f   : > { %v3927_v7 = vpop.f32.mrb[12].mxu0  ;;  %1500 = vmax.xlane.f32.xlu0 %v1499_v6 }
 0x130   : > { %v4849_v8 = vadd.f32 %v3927_v7, %v4626_v14  ;;  %v1169_v9 = vpop.f32.mrb[13].mxu0 }
 0x131   : > { %v4854_v11 = vadd.f32 %v1169_v9, %v4628_v15  ;;  %v3928_v12 = vpop.f32.mrb[14].mxu0  ;;  %1503 = vmax.xlane.f32.xlu1 %v1502_v10 }
 0x132   : > { %5984 = vst [vmem:[#allocation12_spill] sm:$0xff] %v4849_v8  ;;  %v4857_v13 = vadd.f32 %v3928_v12, %v4630_v17  ;;  %v1517_v16 = vsel %vm1474_vm3, %v4849_v8, -inf  ;;  %v1172_v19 = vpop.f32.mrb[15].mxu0 }
 0x133   : > { %5985 = vst [vmem:[#allocation13_spill] sm:$0xff] %v4854_v11  ;;  %1518 = vmax.xlane.f32.xlu0 %v1517_v16  ;;  %v4862_v14 = vadd.f32 %v1172_v19, %v4634_v20  ;;  %v1511_v15 = vsel %vm1474_vm3, %v4854_v11, -inf }
 0x134   : > { %5986 = vst [vmem:[#allocation14_spill] sm:$0xff] %v4857_v13  ;;  %v1520_v22 = vsel %vm1474_vm3, %v4857_v13, -inf  ;;  %v5169_v13 = vld [vmem:[#allocation2 + $0xa0] sm:$0xff] }
 0x135   : > { %5987 = vst [vmem:[#allocation15_spill] sm:$0xff] %v4862_v14  ;;  %1521 = vmax.xlane.f32.xlu1 %v1520_v22  ;;  %v1514_v24 = vsel %vm1474_vm3, %v4862_v14, -inf  ;;  %v5179_v14 = vld [vmem:[#allocation2 + $0xa8] sm:$0xff] }
 0x137   : > { %1512 = vmax.xlane.f32.xlu0 %v1511_v15 }
 0x139   : > { %1515 = vmax.xlane.f32.xlu1 %v1514_v24 }
 0x147   : > { %v3939_v17 = vpop.f32.mrb[16].mxu0 }
 0x148   : > { %v4871_v25 = vadd.f32 %v3939_v17, %v4646_v28  ;;  %v1282_v27 = vpop.f32.mrb[17].mxu0 }
 0x149   : > { %v4874_v20 = vadd.f32 %v1282_v27, %v4650_v30  ;;  %v3940_v29 = vpop.f32.mrb[18].mxu0  ;;  %v4950_v27 = vld [vmem:[#allocation2 + $0x10] sm:$0xff] }
 0x14a   : > { %5988 = vst [vmem:[#allocation16_spill] sm:$0xff] %v4871_v25  ;;  %v4877_v31 = vadd.f32 %v3940_v29, %v4654_v33  ;;  %v1285_v32 = vpop.f32.mrb[19].mxu0  ;;  %v1529_v35 = vsel %vm1474_vm3, %v4871_v25, -inf  ;;  %v4952_v29 = vld [vmem:[#allocation2] sm:$0xff] }
 0x14b   : > { %5989 = vst [vmem:[#allocation17_spill] sm:$0xff] %v4874_v20  ;;  %v4882_v38 = vadd.f32 %v1285_v32, %v4659_v36  ;;  %1530 = vmax.xlane.f32.xlu0 %v1529_v35  ;;  %v1523_v30 = vsel %vm1474_vm3, %v4874_v20, -inf }
 0x14c   : > { %5990 = vst [vmem:[#allocation18_spill] sm:$0xff] %v4877_v31  ;;  %v1532_v28 = vsel %vm1474_vm3, %v4877_v31, -inf }
 0x14d   : > { %5991 = vst [vmem:[#allocation19_spill] sm:$0xff] %v4882_v38  ;;  %1533 = vmax.xlane.f32.xlu1 %v1532_v28  ;;  %v1526_v43 = vsel %vm1474_vm3, %v4882_v38, -inf  ;;  %v5159_v38 = vld [vmem:[#allocation2 + $0xb8] sm:$0xff] }
 0x14e   : > { %6005 = vst [vmem:[#allocation33_spill] sm:$0xff] %v5159_v38 }
 0x14f   : > { %v3943_v40 = vpop.f32.mrb[20].mxu0  ;;  %1524 = vmax.xlane.f32.xlu0 %v1523_v30  ;;  %v4960_v30 = vld [vmem:[#allocation2 + $0x18] sm:$0xff] }
 0x150   : > { %v4889_v33 = vadd.f32 %v3943_v40, %v4676_v45  ;;  %v1298_v41 = vpop.f32.mrb[21].mxu0  ;;  %v5075_v40 = vld [vmem:[#allocation2 + $0x78] sm:$0xff] }
 0x151   : > { %v4894_v36 = vadd.f32 %v1298_v41, %v4680_v47  ;;  %v3944_v44 = vpop.f32.mrb[22].mxu0  ;;  %1527 = vmax.xlane.f32.xlu1 %v1526_v43  ;;  %v4967_v41 = vld [vmem:[#allocation2 + $0x8] sm:$0xff] }
 0x152   : > { %5992 = vst [vmem:[#allocation20_spill] sm:$0xff] %v4889_v33  ;;  %v4897_v46 = vadd.f32 %v3944_v44, %v4682_v48  ;;  %v1541_v50 = vsel %vm1474_vm3, %v4889_v33, -inf  ;;  %v1301_v55 = vpop.f32.mrb[23].mxu0 }
 0x153   : > { %5993 = vst [vmem:[#allocation21_spill] sm:$0xff] %v4894_v36  ;;  %1542 = vmax.xlane.f32.xlu0 %v1541_v50  ;;  %v4902_v45 = vadd.f32 %v1301_v55, %v4684_v49  ;;  %v1535_v47 = vsel %vm1474_vm3, %v4894_v36, -inf }
 0x154   : > { %5994 = vst [vmem:[#allocation22_spill] sm:$0xff] %v4897_v46  ;;  %v1544_v58 = vsel %vm1474_vm3, %v4897_v46, -inf }
 0x155   : > { %5995 = vst [vmem:[#allocation23_spill] sm:$0xff] %v4902_v45  ;;  %1545 = vmax.xlane.f32.xlu1 %v1544_v58  ;;  %v1538_v61 = vsel %vm1474_vm3, %v4902_v45, -inf  ;;  %v5140_v45 = vld [vmem:[#allocation2 + $0x88] sm:$0xff] }
 0x157   : > { %1536 = vmax.xlane.f32.xlu0 %v1535_v47 }
 0x159   : > { %1539 = vmax.xlane.f32.xlu1 %v1538_v61  ;;  %v4985_v61 = vld [vmem:[#allocation2 + $0x30] sm:$0xff] }
 0x167   : > { %v3955_v48 = vpop.f32.mrb[24].mxu0 }
 0x168   : > { %v4911_v0 = vadd.f32 %v3955_v48, %v4686_v51  ;;  %v1411_v2 = vpop.f32.mrb[25].mxu0 }
 0x169   : > { %v4914_v49 = vadd.f32 %v1411_v2, %v4688_v52  ;;  %v3956_v3 = vpop.f32.mrb[26].mxu0  ;;  %v4991_v2 = vld [vmem:[#allocation2 + $0x38] sm:$0xff] }
 0x16a   : > { %5996 = vst [vmem:[#allocation24_spill] sm:$0xff] %v4911_v0  ;;  %v4917_v5 = vadd.f32 %v3956_v3, %v4690_v53  ;;  %v1414_v6 = vpop.f32.mrb[27].mxu0  ;;  %v1553_v7 = vsel %vm1474_vm3, %v4911_v0, -inf  ;;  %v5126_v0 = vld [vmem:[#allocation2 + $0x98] sm:$0xff] }
 0x16b   : > { %5997 = vst [vmem:[#allocation25_spill] sm:$0xff] %v4914_v49  ;;  %v4922_v9 = vadd.f32 %v1414_v6, %v4692_v54  ;;  %1554 = vmax.xlane.f32.xlu0 %v1553_v7  ;;  %v1547_v52 = vsel %vm1474_vm3, %v4914_v49, -inf  ;;  %v5131_v49 = vld [vmem:[#allocation2 + $0x80] sm:$0xff] }
 0x16c   : > { %5998 = vst [vmem:[#allocation26_spill] sm:$0xff] %v4917_v5  ;;  %v1556_v51 = vsel %vm1474_vm3, %v4917_v5, -inf }
 0x16d   : > { %5999 = vst [vmem:[#allocation27_spill] sm:$0xff] %v4922_v9  ;;  %1557 = vmax.xlane.f32.xlu1 %v1556_v51  ;;  %v1550_v16 = vsel %vm1474_vm3, %v4922_v9, -inf  ;;  %v4996_v51 = vld [vmem:[#allocation2 + $0x20] sm:$0xff] }
 0x16f   : > { %v3959_v10 = vpop.f32.mrb[28].mxu0  ;;  %1548 = vmax.xlane.f32.xlu0 %v1547_v52  ;;  %v4998_v52 = vld [vmem:[#allocation2 + $0x28] sm:$0xff] }
 0x170   : > { %v4929_v53 = vadd.f32 %v3959_v10, %v4822_v56  ;;  %v1427_v12 = vpop.f32.mrb[29].mxu0 }
 0x171   : > { %v4934_v54 = vadd.f32 %v1427_v12, %v4824_v57  ;;  %v3960_v19 = vpop.f32.mrb[30].mxu0  ;;  %1551 = vmax.xlane.f32.xlu1 %v1550_v16  ;;  %v4154_v12 = vld [vmem:[%s5004_s11] sm:$0xff]   ;;  %v5056_v16 = vld [vmem:[#allocation2 + $0x48] sm:$0xff] }
 0x172   : > { %6000 = vst [vmem:[#allocation28_spill] sm:$0xff] %v4929_v53  ;;  %v4937_v22 = vadd.f32 %v3960_v19, %v4826_v59  ;;  %v1430_v15 = vpop.f32.mrb[31].mxu0  ;;  %v1565_v24 = vsel %vm1474_vm3, %v4929_v53, -inf  ;;  %3961 = vmatprep.subr.bf16.mxu1 %v4154_v12  ;;  %v5095_v53 = vld [vmem:[#allocation2 + $0x68] sm:$0xff] }
 0x173   : > { %6001 = vst [vmem:[#allocation29_spill] sm:$0xff] %v4934_v54  ;;  %v4942_v17 = vadd.f32 %v1430_v15, %v4831_v62  ;;  %1566 = vmax.xlane.f32.xlu0 %v1565_v24  ;;  %v1559_v57 = vsel %vm1474_vm3, %v4934_v54, -inf  ;;  %3962 = vmatpush3.bf16.msra.mxu1 %v4154_v12  ;;  %v5042_v12 = vld [vmem:[#allocation2 + $0x58] sm:$0xff] }
 0x174   : > { %6002 = vst [vmem:[#allocation30_spill] sm:$0xff] %v4937_v22  ;;  %v1568_v56 = vsel %vm1474_vm3, %v4937_v22, -inf }
 0x175   : > { %6003 = vst [vmem:[#allocation31_spill] sm:$0xff] %v4942_v17  ;;  %1569 = vmax.xlane.f32.xlu1 %v1568_v56  ;;  %v1562_v59 = vsel %vm1474_vm3, %v4942_v17, -inf  ;;  %v5124_v17 = vld [vmem:[#allocation2 + $0x90] sm:$0xff] }
 0x177   : > { %1560 = vmax.xlane.f32.xlu0 %v1559_v57 }
 0x179   : > { %1563 = vmax.xlane.f32.xlu1 %v1562_v59  ;;  %v4155_v59 = vld [vmem:[%s5004_s11 + $0x8] sm:$0xff]  }
 0x17a   : > { %3963 = vmatprep.subr.bf16.mxu1 %v4155_v59 }
 0x17b   : > { %3964 = vmatpush3.bf16.msra.mxu1 %v4155_v59  ;;  %v5047_v59 = vld [vmem:[#allocation2 + $0x40] sm:$0xff] }
 0x198   : > { %v1483_v32 = vpop.xlane.xlu1 %1482 }
 0x199   : > { %v4955_v62 = vmax.f32 %v4950_v27, %v1483_v32  ;;  %v1477_v35 = vpop.xlane.xlu0 %1476 }
 0x19a   : > { %v4958_v28 = vmax.f32 %v4952_v29, %v1477_v35 }
 0x19b   : > { %2890 = vst.msk [vmem:[#allocation2 + $0x10] sm:$0xff] %vm401_vm2, %v4955_v62  ;;  %1711 = vperm.xlu1 %4104, %v4955_v62  }
 0x19c   : > { %2888 = vst.msk [vmem:[#allocation2] sm:$0xff] %vm401_vm2, %v4958_v28  ;;  %v1486_v44 = vpop.xlane.xlu1 %1485  ;;  %1701 = vperm.xlu0 %4103, %v4958_v28  }
 0x19d   : > { %v4975_v50 = vmax.f32 %v4960_v30, %v1486_v44  ;;  %v1480_v55 = vpop.xlane.xlu0 %1479  ;;  %v4156_v44 = vld [vmem:[%s5004_s11 + $0x10] sm:$0xff]  }
 0x19e   : > { %v4978_v58 = vmax.f32 %v4967_v41, %v1480_v55  ;;  %3965 = vmatprep.subr.bf16.mxu1 %v4156_v44  ;;  %v4157_v55 = vld [vmem:[%s5004_s11 + $0x18] sm:$0xff]  }
 0x19f   : > { %2891 = vst.msk [vmem:[#allocation2 + $0x18] sm:$0xff] %vm401_vm2, %v4975_v50  ;;  %1716 = vperm.xlu1 %4104, %v4975_v50   ;;  %3966 = vmatpush3.bf16.msra.mxu1 %v4156_v44  ;;  %v5065_v44 = vld [vmem:[#allocation2 + $0x70] sm:$0xff] }
 0x1a0   : > { %2889 = vst.msk [vmem:[#allocation2 + $0x8] sm:$0xff] %vm401_vm2, %v4978_v58  ;;  %3967 = vmatprep.subr.bf16.mxu1 %v4157_v55 }
 0x1a1   : > { %v1495_v3 = vpop.xlane.xlu0 %1494 }
 0x1a2   : > { %v4994_v6 = vmax.f32 %v4985_v61, %v1495_v3  ;;  %v1498_v7 = vpop.xlane.xlu1 %1497  ;;  %v5040_v3 = vld [vmem:[#allocation2 + $0x50] sm:$0xff] }
 0x1a3   : > { %1706 = vperm.xlu1 %4104, %v4978_v58   ;;  %v5008_v10 = vmax.f32 %v4991_v2, %v1498_v7  ;;  %3968 = vmatpush3.bf16.msra.mxu1 %v4157_v55 }
 0x1a4   : > { %2894 = vst.msk [vmem:[#allocation2 + $0x30] sm:$0xff] %vm401_vm2, %v4994_v6 }
 0x1a5   : > { %2895 = vst.msk [vmem:[#allocation2 + $0x38] sm:$0xff] %vm401_vm2, %v5008_v10  ;;  %v1489_v15 = vpop.xlane.xlu0 %1488 }
 0x1a6   : > { %v5020_v24 = vmax.f32 %v4996_v51, %v1489_v15  ;;  %v1492_v56 = vpop.xlane.xlu1 %1491 }
 0x1a7   : > { %1731 = vperm.xlu1 %4104, %v4994_v6   ;;  %v5024_v57 = vmax.f32 %v4998_v52, %v1492_v56 }
 0x1a8   : > { %2892 = vst.msk [vmem:[#allocation2 + $0x20] sm:$0xff] %vm401_vm2, %v5020_v24 }
 0x1a9   : > { %2893 = vst.msk [vmem:[#allocation2 + $0x28] sm:$0xff] %vm401_vm2, %v5024_v57 }
 0x1ab   : > { %1721 = vperm.xlu1 %4104, %v5020_v24  }
 0x1af   : > { %1726 = vperm.xlu1 %4104, %v5024_v57  }
 0x1b3   : > { %1736 = vperm.xlu1 %4104, %v5008_v10  }
 0x1b8   : > { %v1507_v7 = vpop.xlane.xlu0 %1506 }
 0x1b9   : > { %v5045_v15 = vmax.f32 %v5040_v3, %v1507_v7 }
 0x1ba   : > { %v1510_v56 = vpop.xlane.xlu1 %1509 }
 0x1bb   : > { %2898 = vst.msk [vmem:[#allocation2 + $0x50] sm:$0xff] %vm401_vm2, %v5045_v15  ;;  %v5054_v55 = vmax.f32 %v5042_v12, %v1510_v56 }
 0x1bc   : > { %v1501_v19 = vpop.xlane.xlu0 %1500 }
 0x1bd   : > { %2899 = vst.msk [vmem:[#allocation2 + $0x58] sm:$0xff] %vm401_vm2, %v5054_v55  ;;  %v5063_v7 = vmax.f32 %v5047_v59, %v1501_v19 }
 0x1be   : > { %v1504_v32 = vpop.xlane.xlu1 %1503 }
 0x1bf   : > { %2896 = vst.msk [vmem:[#allocation2 + $0x40] sm:$0xff] %vm401_vm2, %v5063_v7  ;;  %v5072_v56 = vmax.f32 %v5056_v16, %v1504_v32  ;;  %1741 = vperm.xlu1 %4104, %v5063_v7   ;;  %v5085_v32 = vld [vmem:[#allocation2 + $0x60] sm:$0xff] }
 0x1c0   : > { %v1519_v35 = vpop.xlane.xlu0 %1518 }
 0x1c1   : > { %2897 = vst.msk [vmem:[#allocation2 + $0x48] sm:$0xff] %vm401_vm2, %v5072_v56  ;;  %v5082_v47 = vmax.f32 %v5065_v44, %v1519_v35  ;;  %1746 = vperm.xlu0 %4103, %v5072_v56   ;;  %v5098_v35 = vld [vmem:[%s5004_s11 + $0x20] sm:$0xff]  }
 0x1c2   : > { %v1522_v43 = vpop.xlane.xlu1 %1521  ;;  %6004 = vst [vmem:[#allocation32_spill] sm:$0xff] %v5098_v35  ;;  %3977 = vmatprep.subr.bf16.mxu1 %v5098_v35 }
 0x1c3   : > { %2902 = vst.msk [vmem:[#allocation2 + $0x70] sm:$0xff] %vm401_vm2, %v5082_v47  ;;  %v5092_v22 = vmax.f32 %v5075_v40, %v1522_v43  ;;  %1751 = vperm.xlu1 %4104, %v5045_v15  }
 0x1c4   : > { %v1513_v19 = vpop.xlane.xlu0 %1512 }
 0x1c5   : > { %2903 = vst.msk [vmem:[#allocation2 + $0x78] sm:$0xff] %vm401_vm2, %v5092_v22  ;;  %v5105_v48 = vmax.f32 %v5085_v32, %v1513_v19  ;;  %1756 = vperm.xlu0 %4103, %v5054_v55   ;;  %v5149_v19 = vld [vmem:[#allocation2 + $0xb0] sm:$0xff] }
 0x1c6   : > { %v1516_v43 = vpop.xlane.xlu1 %1515 }
 0x1c7   : > { %2900 = vst.msk [vmem:[#allocation2 + $0x60] sm:$0xff] %vm401_vm2, %v5105_v48  ;;  %v5114_v5 = vmax.f32 %v5095_v53, %v1516_v43  ;;  %1761 = vperm.xlu1 %4104, %v5105_v48  }
 0x1c9   : > { %2901 = vst.msk [vmem:[#allocation2 + $0x68] sm:$0xff] %vm401_vm2, %v5114_v5  ;;  %1766 = vperm.xlu0 %4103, %v5114_v5  }
 0x1cb   : > { %1771 = vperm.xlu1 %4104, %v5082_v47  }
 0x1cd   : > { %1776 = vperm.xlu0 %4103, %v5092_v22  }
 0x1d8   : > { %v1531_v54 = vpop.xlane.xlu0 %1530 }
 0x1d9   : > { %v5129_v43 = vmax.f32 %v5124_v17, %v1531_v54 }
 0x1da   : > { %v1534_v9 = vpop.xlane.xlu1 %1533 }
 0x1db   : > { %2906 = vst.msk [vmem:[#allocation2 + $0x90] sm:$0xff] %vm401_vm2, %v5129_v43  ;;  %v5138_v46 = vmax.f32 %v5126_v0, %v1534_v9 }
 0x1dc   : > { %v1525_v33 = vpop.xlane.xlu0 %1524 }
 0x1dd   : > { %2907 = vst.msk [vmem:[#allocation2 + $0x98] sm:$0xff] %vm401_vm2, %v5138_v46  ;;  %v5147_v54 = vmax.f32 %v5131_v49, %v1525_v33 }
 0x1de   : > { %v1528_v31 = vpop.xlane.xlu1 %1527 }
 0x1df   : > { %2904 = vst.msk [vmem:[#allocation2 + $0x80] sm:$0xff] %vm401_vm2, %v5147_v54  ;;  %v5156_v9 = vmax.f32 %v5140_v45, %v1528_v31  ;;  %1781 = vperm.xlu1 %4104, %v5147_v54  }
 0x1e0   : > { %v1543_v36 = vpop.xlane.xlu0 %1542 }
 0x1e1   : > { %2905 = vst.msk [vmem:[#allocation2 + $0x88] sm:$0xff] %vm401_vm2, %v5156_v9  ;;  %v5166_v20 = vmax.f32 %v5149_v19, %v1543_v36  ;;  %1786 = vperm.xlu0 %4103, %v5156_v9  }
 0x1e2   : > { %v1546_v25 = vpop.xlane.xlu1 %1545 }
 0x1e3   : > { %2910 = vst.msk [vmem:[#allocation2 + $0xb0] sm:$0xff] %vm401_vm2, %v5166_v20  ;;  %v5176_v8 = vmax.f32 %v5159_v38, %v1546_v25  ;;  %1791 = vperm.xlu1 %4104, %v5129_v43  }
 0x1e4   : > { %v1537_v33 = vpop.xlane.xlu0 %1536 }
 0x1e5   : > { %6006 = vst [vmem:[#allocation34_spill] sm:$0xff] %v5176_v8  ;;  %2911 = vst.msk [vmem:[#allocation2 + $0xb8] sm:$0xff] %vm401_vm2, %v5176_v8  ;;  %v5186_v11 = vmax.f32 %v5169_v13, %v1537_v33  ;;  %1796 = vperm.xlu0 %4103, %v5138_v46   ;;  %v5204_v33 = vld [vmem:[#allocation2 + $0xd0] sm:$0xff] }
 0x1e6   : > { %v1540_v31 = vpop.xlane.xlu1 %1539  ;;  %6007 = vst [vmem:[#allocation35_spill] sm:$0xff] %v5204_v33 }
 0x1e7   : > { %2908 = vst.msk [vmem:[#allocation2 + $0xa0] sm:$0xff] %vm401_vm2, %v5186_v11  ;;  %v5194_v1 = vmax.f32 %v5179_v14, %v1540_v31  ;;  %1801 = vperm.xlu1 %4104, %v5186_v11  }
 0x1e9   : > { %2909 = vst.msk [vmem:[#allocation2 + $0xa8] sm:$0xff] %vm401_vm2, %v5194_v1  ;;  %1806 = vperm.xlu0 %4103, %v5194_v1  }
 0x1eb   : > { %1811 = vperm.xlu1 %4104, %v5166_v20  }
 0x1ed   : > { %1816 = vperm.xlu0 %4103, %v5176_v8  }
 0x1f8   : > { %v1555_v25 = vpop.xlane.xlu0 %1554 }
 0x1f9   : > { %v5209_v31 = vmax.f32 %v5204_v33, %v1555_v25  ;;  %v5236_v33 = vld [vmem:[#allocation2 + $0xf8] sm:$0xff] }
 0x1fa   : > { %v1558_v4 = vpop.xlane.xlu1 %1557 }
 0x1fb   : > { %2914 = vst.msk [vmem:[#allocation2 + $0xd0] sm:$0xff] %vm401_vm2, %v5209_v31  ;;  %v5216_v36 = vmax.f32 %v5206_v60, %v1558_v4  ;;  %v6013_v4 = vsub.f32 %v4967_v41, %v4978_v58 }
 0x1fc   : > { %v1549_v35 = vpop.xlane.xlu0 %1548 }
 0x1fd   : > { %2915 = vst.msk [vmem:[#allocation2 + $0xd8] sm:$0xff] %vm401_vm2, %v5216_v36  ;;  %v5223_v42 = vmax.f32 %v5211_v63, %v1549_v35  ;;  %v1637_v60 = vmul.f32 1.442695, %v6013_v4 }
 0x1fe   : > { %v1552_v25 = vpop.xlane.xlu1 %1551 }
 0x1ff   : > { %6011 = vst [vmem:[#allocation39_spill] sm:$0xff] %v5223_v42  ;;  %2912 = vst.msk [vmem:[#allocation2 + $0xc0] sm:$0xff] %vm401_vm2, %v5223_v42  ;;  %v5230_v8 = vmax.f32 %v5218_v39, %v1552_v25  ;;  %1821 = vperm.xlu1 %4104, %v5223_v42   ;;  %v6014_v25 = vsub.f32 %v4952_v29, %v4958_v28  ;;  %v5247_v42 = vld [vmem:[#allocation2 + $0xe0] sm:$0xff]  ;;  %4170 = vpow2.f32 %v1637_v60 }
 0x200   : > { %v1567_v38 = vpop.xlane.xlu0 %1566 }
 0x201   : > { %2913 = vst.msk [vmem:[#allocation2 + $0xc8] sm:$0xff] %vm401_vm2, %v5230_v8  ;;  %v5241_v35 = vmax.f32 %v5225_v34, %v1567_v38  ;;  %1826 = vperm.xlu0 %4103, %v5230_v8   ;;  %v1635_v39 = vmul.f32 1.442695, %v6014_v25  ;;  %v6015_v38 = vsub.f32 %v4950_v27, %v4955_v62  ;;  %v5258_v34 = vld [vmem:[#allocation2 + $0xe8] sm:$0xff]  ;;  %v6017_v25 = vsub.f32 %v4996_v51, %v5020_v24 }
 0x202   : > { %v1570_v63 = vpop.xlane.xlu1 %1569  ;;  %v6020_v24 = vsub.f32 %v4991_v2, %v5008_v10 }
 0x203   : > { %2918 = vst.msk [vmem:[#allocation2 + $0xf0] sm:$0xff] %vm401_vm2, %v5241_v35  ;;  %v5252_v41 = vmax.f32 %v5236_v33, %v1570_v63  ;;  %1831 = vperm.xlu1 %4104, %v5209_v31   ;;  %v1639_v58 = vmul.f32 1.442695, %v6015_v38  ;;  %4172 = vpow2.f32 %v1635_v39  ;;  %v6016_v63 = vsub.f32 %v4960_v30, %v4975_v50 }
 0x204   : > { %v1561_v4 = vpop.xlane.xlu0 %1560  ;;  %v1643_v38 = vmul.f32 1.442695, %v6017_v25  ;;  %v6018_v39 = vsub.f32 %v4998_v52, %v5024_v57  ;;  %v6019_v50 = vsub.f32 %v4985_v61, %v4994_v6  ;;  %v6021_v57 = vsub.f32 %v5047_v59, %v5063_v7 }
 0x205   : > { %2919 = vst.msk [vmem:[#allocation2 + $0xf8] sm:$0xff] %vm401_vm2, %v5252_v41  ;;  %v5265_v28 = vmax.f32 %v5247_v42, %v1561_v4  ;;  %1836 = vperm.xlu0 %4103, %v5216_v36   ;;  %v1641_v27 = vmul.f32 1.442695, %v6016_v63  ;;  %4174 = vpow2.f32 %v1639_v58  ;;  %v1649_v4 = vmul.f32 1.442695, %v6020_v24 }
 0x206   : > { %v1564_v60 = vpop.xlane.xlu1 %1563  ;;  %v1645_v30 = vmul.f32 1.442695, %v6018_v39  ;;  %v1647_v58 = vmul.f32 1.442695, %v6019_v50  ;;  %v1651_v61 = vmul.f32 1.442695, %v6021_v57  ;;  %v6022_v63 = vsub.f32 %v5056_v16, %v5072_v56 }
 0x207   : > { %2916 = vst.msk [vmem:[#allocation2 + $0xe0] sm:$0xff] %vm401_vm2, %v5265_v28  ;;  %v5274_v62 = vmax.f32 %v5258_v34, %v1564_v60  ;;  %1841 = vperm.xlu1 %4104, %v5265_v28   ;;  %4176 = vpow2.f32 %v1641_v27  ;;  %v6023_v27 = vsub.f32 %v5040_v3, %v5045_v15  ;;  %v6024_v7 = vsub.f32 %v5042_v12, %v5054_v55 }
 0x208   : > { %4178 = vpow2.f32 %v1643_v38  ;;  %v1653_v2 = vmul.f32 1.442695, %v6022_v63  ;;  %v6025_v56 = vsub.f32 %v5085_v32, %v5105_v48  ;;  %v6026_v38 = vsub.f32 %v5095_v53, %v5114_v5 }
 0x209   : > { %2917 = vst.msk [vmem:[#allocation2 + $0xe8] sm:$0xff] %vm401_vm2, %v5274_v62  ;;  %1846 = vperm.xlu0 %4103, %v5274_v62   ;;  %v5291_v51 = vpop.eup %4170  ;;  %4180 = vpow2.f32 %v1645_v30  ;;  %v1655_v60 = vmul.f32 1.442695, %v6023_v27  ;;  %v1657_v25 = vmul.f32 1.442695, %v6024_v7  ;;  %v6027_v50 = vsub.f32 %v5065_v44, %v5082_v47 }
 0x20a   : > { %4182 = vpow2.f32 %v1647_v58  ;;  %v1659_v3 = vmul.f32 1.442695, %v6025_v56  ;;  %v1661_v12 = vmul.f32 1.442695, %v6026_v38  ;;  %v6028_v32 = vsub.f32 %v5075_v40, %v5092_v22 }
 0x20b   : > { %1851 = vperm.xlu1 %4104, %v5241_v35   ;;  %4184 = vpow2.f32 %v1649_v4  ;;  %v1663_v48 = vmul.f32 1.442695, %v6027_v50  ;;  %v6029_v53 = vsub.f32 %v5124_v17, %v5129_v43  ;;  %v6030_v47 = vsub.f32 %v5131_v49, %v5147_v54  ;;  %v6036_v50 = vld [vmem:[#allocation35_spill] sm:$0xff] }
 0x20c   : > { %4186 = vpow2.f32 %v1651_v61  ;;  %v1665_v58 = vmul.f32 1.442695, %v6028_v32  ;;  %v6032_v27 = vsub.f32 %v5126_v0, %v5138_v46  ;;  %v6034_v46 = vsub.f32 %v5179_v14, %v5194_v1  ;;  %v6037_v1 = vld [vmem:[#allocation33_spill] sm:$0xff]  ;;  %v6038_v14 = vld [vmem:[#allocation34_spill] sm:$0xff] }
 0x20d   : > { %1856 = vperm.xlu0 %4103, %v5252_v41   ;;  %v5297_v52 = vpop.eup %4172  ;;  %4188 = vpow2.f32 %v1653_v2  ;;  %v1671_v4 = vmul.f32 1.442695, %v6029_v53  ;;  %v1667_v44 = vmul.f32 1.442695, %v6030_v47 }
 0x20e   : > { %4190 = vpow2.f32 %v1655_v60  ;;  %v1673_v60 = vmul.f32 1.442695, %v6032_v27  ;;  %v1677_v0 = vmul.f32 1.442695, %v6034_v46  ;;  %v6046_v46 = vld [vmem:[#allocation6_spill] sm:$0xff] }
 0x20f   : > { %2219 = vperm.xlu1 %4104, %v5291_v51   ;;  %v5303_v6 = vpop.eup %4174  ;;  %4192 = vpow2.f32 %v1657_v25  ;;  %v6033_v25 = vsub.f32 %v5169_v13, %v5186_v11  ;;  %v6035_v11 = vsub.f32 %v5149_v19, %v5166_v20  ;;  %v6041_v20 = vld [vmem:[#allocation5_spill] sm:$0xff] }
 0x210   : > { %4194 = vpow2.f32 %v1659_v3 }
 0x211   : > { %2214 = vperm.xlu0 %4103, %v5297_v52   ;;  %v5309_v10 = vpop.eup %4176  ;;  %4196 = vpow2.f32 %v1661_v12  ;;  %v1675_v56 = vmul.f32 1.442695, %v6033_v25  ;;  %v1679_v13 = vmul.f32 1.442695, %v6035_v11  ;;  %v6047_v11 = vld [vmem:[#allocation40_spill] sm:$0xff] }
 0x212   : > { %v5315_v59 = vpop.eup %4178  ;;  %4198 = vpow2.f32 %v1663_v48  ;;  %v1629_v48 = vsub.f32 %v6036_v50, %v5209_v31  ;;  %v6042_v31 = vld [vmem:[#allocation7_spill] sm:$0xff] }
 0x213   : > { %2224 = vperm.xlu1 %4104, %v5303_v6   ;;  %v5321_v16 = vpop.eup %4180  ;;  %4200 = vpow2.f32 %v1665_v58  ;;  %v6039_v58 = vsub.f32 %v6037_v1, %v6038_v14  ;;  %v1632_v14 = vsub.f32 %v5258_v34, %v5274_v62 }
 0x214   : > { %v5327_v15 = vpop.eup %4182  ;;  %4202 = vpow2.f32 %v1671_v4 }
 0x215   : > { %2229 = vperm.xlu0 %4103, %v5309_v10   ;;  %v5333_v30 = vpop.eup %4184  ;;  %4204 = vpow2.f32 %v1667_v44  ;;  %v1693_v34 = vmul.f32 1.442695, %v1632_v14 }
 0x216   : > { %v5343_v5 = vpop.eup %4186 }
 0x217   : > { %2234 = vperm.xlu1 %4104, %v5315_v59   ;;  %v5353_v22 = vpop.eup %4188 }
 0x218   : > { %v5360_v43 = vpop.eup %4190 }
 0x219   : > { %2239 = vperm.xlu0 %4103, %v5321_v16   ;;  %v5364_v2 = vpop.eup %4192 }
 0x21a   : > { %v1712_v55 = vpop.permute.xlu1 %1711 }
 0x21b   : > { %2244 = vperm.xlu1 %4104, %v5327_v15   ;;  %v1702_v39 = vpop.permute.xlu0 %1701  ;;  %v1861_v63 = vsub.f32 %v4632_v18, %v1712_v55 }
 0x21c   : > { %v1859_v24 = vsub.f32 %v4636_v21, %v1702_v39  ;;  %v6031_v21 = vsub.f32 %v5140_v45, %v5156_v9  ;;  %v5367_v9 = vpop.eup %4194 }
 0x21d   : > { %2249 = vperm.xlu0 %4103, %v5333_v30   ;;  %v1895_v45 = vmul.f32 1.442695, %v1861_v63  ;;  %v6044_v63 = vld [vmem:[#allocation37_spill] sm:$0xff] }
 0x21e   : > { %v1717_v57 = vpop.permute.xlu1 %1716  ;;  %v1669_v40 = vmul.f32 1.442695, %v6031_v21  ;;  %v1891_v17 = vmul.f32 1.442695, %v1859_v24  ;;  %v1681_v24 = vmul.f32 1.442695, %v6039_v58 }
 0x21f   : > { %v1862_v61 = vsub.f32 %v4638_v23, %v1717_v57  ;;  %2254 = vperm.xlu1 %4104, %v5343_v5   ;;  %v6048_v58 = vld [vmem:[#allocation32_spill] sm:$0xff] }
 0x220   : > { %4206 = vpow2.f32 %v1669_v40  ;;  %v1687_v40 = vmul.f32 1.442695, %v1629_v48 }
 0x221   : > { %2259 = vperm.xlu0 %4103, %v5353_v22   ;;  %v1897_v49 = vmul.f32 1.442695, %v1862_v61  ;;  %4208 = vpow2.f32 %v1891_v17 }
 0x222   : > { %v1707_v23 = vpop.permute.xlu1 %1706 }
 0x223   : > { %v1860_v54 = vsub.f32 %v4642_v26, %v1707_v23  ;;  %2264 = vperm.xlu1 %4104, %v5360_v43   ;;  %4210 = vpow2.f32 %v1897_v49  ;;  %v5373_v26 = vpop.eup %4196 }
 0x224   : > { %v5379_v3 = vpop.eup %4198 }
 0x225   : > { %v1893_v18 = vmul.f32 1.442695, %v1860_v54  ;;  %2269 = vperm.xlu0 %4103, %v5364_v2   ;;  %v5384_v12 = vpop.eup %4200 }
 0x226   : > { %v1732_v7 = vpop.permute.xlu1 %1731  ;;  %v5388_v39 = vpop.eup %4202 }
 0x227   : > { %4212 = vpow2.f32 %v1893_v18  ;;  %2274 = vperm.xlu1 %4104, %v5367_v9   ;;  %v5395_v32 = vpop.eup %4204  ;;  %v1865_v19 = vsub.f32 %v6041_v20, %v1732_v7  ;;  %v6045_v18 = vld [vmem:[#allocation38_spill] sm:$0xff] }
 0x228   : > { %4214 = vpow2.f32 %v1895_v45  ;;  %v1628_v27 = vsub.f32 %v6045_v18, %v5230_v8 }
 0x229   : > { %2279 = vperm.xlu0 %4103, %v5373_v26   ;;  %4216 = vpow2.f32 %v1673_v60  ;;  %v1903_v60 = vmul.f32 1.442695, %v1865_v19  ;;  %v4161_v19 = vld [vmem:[%s5004_s11 + $0x38] sm:$0xff]  }
 0x22a   : > { %v1722_v38 = vpop.permute.xlu1 %1721  ;;  %4218 = vpow2.f32 %v1675_v56  ;;  %v5403_v4 = vpop.eup %4206  ;;  %v1685_v1 = vmul.f32 1.442695, %v1628_v27 }
 0x22b   : > { %v1863_v55 = vsub.f32 %v4662_v37, %v1722_v38  ;;  %2284 = vperm.xlu1 %4104, %v5379_v3   ;;  %v6040_v37 = vld [vmem:[#allocation36_spill] sm:$0xff]  ;;  %4220 = vpow2.f32 %v1677_v0  ;;  %v5406_v44 = vpop.eup %4208  ;;  %v4159_v38 = vld [vmem:[%s5004_s11 + $0x28] sm:$0xff]  }
 0x22c   : > { %v1630_v53 = vsub.f32 %v6040_v37, %v5216_v36  ;;  %4222 = vpow2.f32 %v1679_v13  ;;  %v6043_v36 = vld [vmem:[#allocation39_spill] sm:$0xff]  ;;  %v1633_v13 = vsub.f32 %v6047_v11, %v5241_v35 }
 0x22d   : > { %2289 = vperm.xlu0 %4103, %v5384_v12   ;;  %v1899_v57 = vmul.f32 1.442695, %v1863_v55  ;;  %v5410_v21 = vpop.eup %4210  ;;  %v1627_v17 = vsub.f32 %v6044_v63, %v6043_v36  ;;  %4224 = vpow2.f32 %v1681_v24  ;;  %v4160_v35 = vld [vmem:[%s5004_s11 + $0x30] sm:$0xff]   ;;  %v6049_v36 = vld [vmem:[#allocation9_spill] sm:$0xff] }
 0x22e   : > { %v1727_v47 = vpop.permute.xlu1 %1726  ;;  %v1689_v23 = vmul.f32 1.442695, %v1630_v53  ;;  %v1695_v37 = vmul.f32 1.442695, %v1633_v13  ;;  %v1631_v53 = vsub.f32 %v5247_v42, %v5265_v28 }
 0x22f   : > { %v1864_v61 = vsub.f32 %v6042_v31, %v1727_v47  ;;  %2294 = vperm.xlu1 %4104, %v5395_v32   ;;  %4226 = vpow2.f32 %v1899_v57  ;;  %v1683_v8 = vmul.f32 1.442695, %v1627_v17  ;;  %v4162_v17 = vld [vmem:[%s5004_s11 + $0x40] sm:$0xff]  }
 0x230   : > { %v1691_v47 = vmul.f32 1.442695, %v1631_v53  ;;  %v6055_v53 = vld [vmem:[#allocation13_spill] sm:$0xff] }
 0x231   : > { %v5414_v49 = vpop.eup %4212  ;;  %v1901_v54 = vmul.f32 1.442695, %v1864_v61  ;;  %2299 = vperm.xlu0 %4103, %v5403_v4  }
 0x232   : > { %v5417_v45 = vpop.eup %4214  ;;  %v1737_v7 = vpop.permute.xlu1 %1736  ;;  %v2404_v25 = vpack.c.bf16 %v5414_v49, %v5406_v44 }
 0x233   : > { %v2405_v56 = vpack.c.bf16 %v5410_v21, %v5417_v45  ;;  %4228 = vpow2.f32 %v1901_v54  ;;  %v1866_v0 = vsub.f32 %v6046_v46, %v1737_v7  ;;  %2304 = vperm.xlu1 %4104, %v5388_v39   ;;  %v5428_v55 = vpop.eup %4216 }
 0x234   : > { %4230 = vpow2.f32 %v1687_v40  ;;  %3969 = vmatprep.mubr.msk.bf16.mxu1 %vm1474_vm3, %v2404_v25  ;;  %v5435_v48 = vpop.eup %4218 }
 0x235   : > { %4232 = vpow2.f32 %v1689_v23  ;;  %v1905_v50 = vmul.f32 1.442695, %v1866_v0  ;;  %2309 = vperm.xlu0 %4103, %v5428_v55   ;;  %3970 = vmatmul.mubr.msk.bf16.vlgmr.msra.gmra.mrb[32].mxu1 %vm1474_vm3, %v2405_v56  ;;  %v5442_v24 = vpop.eup %4220 }
 0x236   : > { %4234 = vpow2.f32 %v1903_v60  ;;  %3978 = vmatpush3.bf16.msra.mxu1 %v6048_v58  ;;  %v5447_v20 = vpop.eup %4222  ;;  %v6050_v60 = vld [vmem:[#allocation11_spill] sm:$0xff] }
 0x237   : > { %4236 = vpow2.f32 %v1905_v50  ;;  %2314 = vperm.xlu1 %4104, %v5435_v48   ;;  %3979 = vmatprep.subr.bf16.mxu1 %v4159_v38  ;;  %v5449_v62 = vpop.eup %4224 }
 0x238   : > { %4238 = vpow2.f32 %v1683_v8 }
 0x239   : > { %2319 = vperm.xlu0 %4103, %v5442_v24   ;;  %4240 = vpow2.f32 %v1685_v1  ;;  %v5453_v57 = vpop.eup %4226  ;;  %v6053_v1 = vld [vmem:[#allocation10_spill] sm:$0xff] }
 0x23a   : > { %3980 = vmatpush3.bf16.msra.mxu1 %v4159_v38  ;;  %4242 = vpow2.f32 %v1695_v37  ;;  %v6051_v38 = vld [vmem:[#allocation8_spill] sm:$0xff] }
 0x23b   : > { %2324 = vperm.xlu1 %4104, %v5447_v20   ;;  %3981 = vmatprep.subr.bf16.mxu1 %v4160_v35  ;;  %4244 = vpow2.f32 %v1693_v34 }
 0x23c   : > { %4246 = vpow2.f32 %v1691_v47 }
 0x23d   : > { %v5455_v31 = vpop.eup %4228  ;;  %2329 = vperm.xlu0 %4103, %v5449_v62  }
 0x23e   : > { %v5458_v42 = vpop.eup %4230  ;;  %v1742_v28 = vpop.permute.xlu1 %1741  ;;  %v2406_v61 = vpack.c.bf16 %v5455_v31, %v5453_v57  ;;  %3982 = vmatpush3.bf16.msra.mxu1 %v4160_v35 }
 0x23f   : > { %v5462_v40 = vpop.eup %4232  ;;  %v1867_v63 = vsub.f32 %v6049_v36, %v1742_v28  ;;  %2344 = vperm.xlu1 %4104, %v5458_v42   ;;  %3983 = vmatprep.subr.bf16.mxu1 %v4161_v19 }
 0x240   : > { %v5467_v23 = vpop.eup %4234  ;;  %3973 = vmatprep.mubr.msk.bf16.mxu1 %vm1474_vm3, %v2406_v61  ;;  %v1747_v54 = vpop.permute.xlu0 %1746  ;;  %v6057_v61 = vld [vmem:[#allocation15_spill] sm:$0xff] }
 0x241   : > { %v5470_v18 = vpop.eup %4236  ;;  %v1907_v27 = vmul.f32 1.442695, %v1867_v63  ;;  %v1868_v7 = vsub.f32 %v6050_v60, %v1747_v54  ;;  %2349 = vperm.xlu0 %4103, %v5462_v40   ;;  %v6059_v60 = vld [vmem:[#allocation12_spill] sm:$0xff] }
 0x242   : > { %v5474_v25 = vpop.eup %4238  ;;  %v1752_v56 = vpop.permute.xlu1 %1751  ;;  %v2407_v46 = vpack.c.bf16 %v5470_v18, %v5467_v23  ;;  %3984 = vmatpush3.bf16.msra.mxu1 %v4161_v19 }
 0x243   : > { %v1909_v0 = vmul.f32 1.442695, %v1868_v7  ;;  %v1869_v8 = vsub.f32 %v6051_v38, %v1752_v56  ;;  %2334 = vperm.xlu1 %4104, %v5474_v25   ;;  %3993 = vmatprep.subr.bf16.mxu1 %v4162_v17  ;;  %v5480_v11 = vpop.eup %4240  ;;  %4248 = vpow2.f32 %v1907_v27 }
 0x244   : > { %6052 = vst [vmem:[#allocation35_spill] sm:$0xff] %v5480_v11  ;;  %3974 = vmatmul.mubr.msk.bf16.gmra.mrb[36].mxu1 %vm1474_vm3, %v2407_v46  ;;  %v1757_v13 = vpop.permute.xlu0 %1756  ;;  %v5485_v58 = vpop.eup %4242 }
 0x245   : > { %4250 = vpow2.f32 %v1909_v0  ;;  %v1911_v50 = vmul.f32 1.442695, %v1869_v8  ;;  %v1870_v14 = vsub.f32 %v6053_v1, %v1757_v13  ;;  %2339 = vperm.xlu0 %4103, %v5480_v11   ;;  %6054 = vst [vmem:[#allocation33_spill] sm:$0xff] %v5485_v58  ;;  %v5489_v19 = vpop.eup %4244  ;;  %v6060_v0 = vld [vmem:[#allocation14_spill] sm:$0xff] }
 0x246   : > { %v1762_v35 = vpop.permute.xlu1 %1761  ;;  %6056 = vst [vmem:[#allocation34_spill] sm:$0xff] %v5489_v19  ;;  %v5493_v63 = vpop.eup %4246 }
 0x247   : > { %v1913_v37 = vmul.f32 1.442695, %v1870_v14  ;;  %v1871_v34 = vsub.f32 %v6055_v53, %v1762_v35  ;;  %2364 = vperm.xlu1 %4104, %v5485_v58   ;;  %4252 = vpow2.f32 %v1911_v50  ;;  %6058 = vst [vmem:[#allocation36_spill] sm:$0xff] %v5493_v63  ;;  %v4163_v53 = vld [vmem:[%s5004_s11 + $0x48] sm:$0xff]  }
 0x248   : > { %v1767_v47 = vpop.permute.xlu0 %1766 }
 0x249   : > { %4254 = vpow2.f32 %v1913_v37  ;;  %v1915_v28 = vmul.f32 1.442695, %v1871_v34  ;;  %v1872_v36 = vsub.f32 %v6057_v61, %v1767_v47  ;;  %2359 = vperm.xlu0 %4103, %v5489_v19   ;;  %v4164_v61 = vld [vmem:[%s5004_s11 + $0x50] sm:$0xff]  }
 0x24a   : > { %v1772_v54 = vpop.permute.xlu1 %1771 }
 0x24b   : > { %v1917_v27 = vmul.f32 1.442695, %v1872_v36  ;;  %v1873_v7 = vsub.f32 %v6059_v60, %v1772_v54  ;;  %2354 = vperm.xlu1 %4104, %v5493_v63   ;;  %4256 = vpow2.f32 %v1915_v28  ;;  %v4165_v60 = vld [vmem:[%s5004_s11 + $0x58] sm:$0xff]  }
 0x24c   : > { %v1777_v56 = vpop.permute.xlu0 %1776 }
 0x24d   : > { %4258 = vpow2.f32 %v1917_v27  ;;  %v1919_v46 = vmul.f32 1.442695, %v1873_v7  ;;  %v1874_v38 = vsub.f32 %v6060_v0, %v1777_v56  ;;  %v5498_v8 = vpop.eup %4248  ;;  %v4166_v0 = vld [vmem:[%s5004_s11 + $0x60] sm:$0xff]  }
 0x24f   : > { %v5500_v13 = vpop.eup %4250  ;;  %v1921_v50 = vmul.f32 1.442695, %v1874_v38  ;;  %4260 = vpow2.f32 %v1919_v46 }
 0x250   : > { %v2408_v1 = vpack.c.bf16 %v5500_v13, %v5498_v8 }
 0x251   : > { %4262 = vpow2.f32 %v1921_v50  ;;  %v5504_v14 = vpop.eup %4252  ;;  %v6062_v50 = vld [vmem:[#allocation19_spill] sm:$0xff] }
 0x252   : > { %3985 = vmatprep.mubr.msk.bf16.mxu1 %vm1474_vm3, %v2408_v1 }
 0x253   : > { %v5507_v35 = vpop.eup %4254 }
 0x254   : > { %v2409_v37 = vpack.c.bf16 %v5507_v35, %v5504_v14 }
 0x255   : > { %v5512_v34 = vpop.eup %4256 }
 0x256   : > { %3986 = vmatmul.mubr.msk.bf16.vlgmr.msra.gmra.mrb[40].mxu1 %vm1474_vm3, %v2409_v37 }
 0x257   : > { %v5515_v47 = vpop.eup %4258  ;;  %3994 = vmatpush3.bf16.msra.mxu1 %v4162_v17  ;;  %v6061_v17 = vld [vmem:[#allocation17_spill] sm:$0xff] }
 0x258   : > { %v2410_v28 = vpack.c.bf16 %v5515_v47, %v5512_v34  ;;  %3995 = vmatprep.subr.bf16.mxu1 %v4163_v53 }
 0x259   : > { %v5520_v36 = vpop.eup %4260 }
 0x25a   : > { %3989 = vmatprep.mubr.msk.bf16.mxu1 %vm1474_vm3, %v2410_v28 }
 0x25b   : > { %v5523_v54 = vpop.eup %4262  ;;  %3996 = vmatpush3.bf16.msra.mxu1 %v4163_v53  ;;  %v6063_v53 = vld [vmem:[#allocation16_spill] sm:$0xff] }
 0x25c   : > { %v2411_v27 = vpack.c.bf16 %v5523_v54, %v5520_v36  ;;  %3997 = vmatprep.subr.bf16.mxu1 %v4164_v61 }
 0x25e   : > { %v1782_v7 = vpop.permute.xlu1 %1781  ;;  %3990 = vmatmul.mubr.msk.bf16.gmra.mrb[44].mxu1 %vm1474_vm3, %v2411_v27  ;;  %v6064_v27 = vld [vmem:[#allocation18_spill] sm:$0xff] }
 0x25f   : > { %v1875_v56 = vsub.f32 %v6061_v17, %v1782_v7  ;;  %3998 = vmatpush3.bf16.msra.mxu1 %v4164_v61  ;;  %v6065_v17 = vld [vmem:[#allocation21_spill] sm:$0xff] }
 0x260   : > { %v1787_v46 = vpop.permute.xlu0 %1786  ;;  %3999 = vmatprep.subr.bf16.mxu1 %v4165_v60 }
 0x261   : > { %v1923_v38 = vmul.f32 1.442695, %v1875_v56  ;;  %v1876_v1 = vsub.f32 %v6062_v50, %v1787_v46  ;;  %v2025_v56 = vsel %vm1474_vm3, %v5417_v45, 0.0  ;;  %v6068_v45 = vld [vmem:[#allocation22_spill] sm:$0xff] }
 0x262   : > { %v1792_v37 = vpop.permute.xlu1 %1791 }
 0x263   : > { %v1925_v28 = vmul.f32 1.442695, %v1876_v1  ;;  %v1877_v29 = vsub.f32 %v6063_v53, %v1792_v37  ;;  %4000 = vmatpush3.bf16.msra.mxu1 %v4165_v60  ;;  %4264 = vpow2.f32 %v1923_v38  ;;  %v6066_v60 = vld [vmem:[#allocation23_spill] sm:$0xff] }
 0x264   : > { %v1797_v19 = vpop.permute.xlu0 %1796  ;;  %4009 = vmatprep.subr.bf16.mxu1 %v4166_v0 }
 0x265   : > { %4266 = vpow2.f32 %v1925_v28  ;;  %v1927_v63 = vmul.f32 1.442695, %v1877_v29  ;;  %v1878_v11 = vsub.f32 %v6064_v27, %v1797_v19  ;;  %v6067_v28 = vld [vmem:[#allocation20_spill] sm:$0xff]  ;;  %v2022_v19 = vsel %vm1474_vm3, %v5414_v49, 0.0 }
 0x266   : > { %v1802_v7 = vpop.permute.xlu1 %1801  ;;  %v2037_v49 = vsel %vm1474_vm3, %v5467_v23, 0.0 }
 0x267   : > { %v1929_v61 = vmul.f32 1.442695, %v1878_v11  ;;  %v1879_v58 = vsub.f32 %v6065_v17, %v1802_v7  ;;  %4268 = vpow2.f32 %v1927_v63 }
 0x268   : > { %2026 = vadd.xlane.f32.xlu0 %v2025_v56  ;;  %v1807_v46 = vpop.permute.xlu0 %1806 }
 0x269   : > { %4270 = vpow2.f32 %v1929_v61  ;;  %v1931_v50 = vmul.f32 1.442695, %v1879_v58  ;;  %v1880_v38 = vsub.f32 %v6066_v60, %v1807_v46  ;;  %v2019_v58 = vsel %vm1474_vm3, %v5406_v44, 0.0  ;;  %v4167_v60 = vld [vmem:[%s5004_s11 + $0x68] sm:$0xff]  }
 0x26a   : > { %v1812_v1 = vpop.permute.xlu1 %1811  ;;  %v2028_v44 = vsel %vm1474_vm3, %v5410_v21, 0.0  ;;  %v2049_v21 = vsel %vm1474_vm3, %v5504_v14, 0.0  ;;  %v2043_v14 = vsel %vm1474_vm3, %v5498_v8, 0.0 }
 0x26b   : > { %v1933_v37 = vmul.f32 1.442695, %v1880_v38  ;;  %v1881_v29 = vsub.f32 %v6067_v28, %v1812_v1  ;;  %4272 = vpow2.f32 %v1931_v50  ;;  %v2031_v50 = vsel %vm1474_vm3, %v5453_v57, 0.0  ;;  %v4168_v28 = vld [vmem:[%s5004_s11 + $0x70] sm:$0xff]  }
 0x26c   : > { %2023 = vadd.xlane.f32.xlu0 %v2022_v19  ;;  %v1817_v11 = vpop.permute.xlu0 %1816  ;;  %v2040_v1 = vsel %vm1474_vm3, %v5470_v18, 0.0  ;;  %v2034_v18 = vsel %vm1474_vm3, %v5455_v31, 0.0  ;;  %v6069_v31 = vld [vmem:[#allocation25_spill] sm:$0xff] }
 0x26d   : > { %4274 = vpow2.f32 %v1933_v37  ;;  %v1935_v53 = vmul.f32 1.442695, %v1881_v29  ;;  %v1882_v63 = vsub.f32 %v6068_v45, %v1817_v11  ;;  %v5542_v27 = vpop.eup %4264  ;;  %v4169_v11 = vld [vmem:[%s5004_s11 + $0x78] sm:$0xff]   ;;  %v2052_v45 = vsel %vm1474_vm3, %v5507_v35, 0.0 }
 0x26f   : > { %v5546_v7 = vpop.eup %4266  ;;  %v1937_v61 = vmul.f32 1.442695, %v1882_v63  ;;  %2020 = vadd.xlane.f32.xlu1 %v2019_v58  ;;  %4276 = vpow2.f32 %v1935_v53  ;;  %v2061_v58 = vsel %vm1474_vm3, %v5520_v36, 0.0 }
 0x270   : > { %2038 = vadd.xlane.f32.xlu0 %v2037_v49  ;;  %v2412_v17 = vpack.c.bf16 %v5546_v7, %v5542_v27  ;;  %v6070_v49 = vld [vmem:[#allocation27_spill] sm:$0xff] }
 0x271   : > { %4278 = vpow2.f32 %v1937_v61  ;;  %v4269_v56 = vpop.eup %4268 }
 0x272   : > { %4001 = vmatprep.mubr.msk.bf16.mxu1 %vm1474_vm3, %v2412_v17 }
 0x273   : > { %v5555_v46 = vpop.eup %4270  ;;  %2029 = vadd.xlane.f32.xlu1 %v2028_v44 }
 0x274   : > { %v2413_v23 = vpack.c.bf16 %v5555_v46, %v4269_v56  ;;  %2032 = vadd.xlane.f32.xlu0 %v2031_v50  ;;  %v2046_v50 = vsel %vm1474_vm3, %v5500_v13, 0.0 }
 0x275   : > { %v5561_v38 = vpop.eup %4272 }
 0x276   : > { %4002 = vmatmul.mubr.msk.bf16.vlgmr.msra.gmra.mrb[48].mxu1 %vm1474_vm3, %v2413_v23 }
 0x277   : > { %v5566_v37 = vpop.eup %4274  ;;  %2041 = vadd.xlane.f32.xlu1 %v2040_v1  ;;  %4010 = vmatpush3.bf16.msra.mxu1 %v4166_v0  ;;  %v2055_v1 = vsel %vm1474_vm3, %v5512_v34, 0.0 }
 0x278   : > { %2050 = vadd.xlane.f32.xlu0 %v2049_v21  ;;  %v2414_v57 = vpack.c.bf16 %v5566_v37, %v5561_v38  ;;  %4011 = vmatprep.subr.bf16.mxu1 %v4167_v60 }
 0x279   : > { %v5573_v29 = vpop.eup %4276 }
 0x27a   : > { %4005 = vmatprep.mubr.msk.bf16.mxu1 %vm1474_vm3, %v2414_v57  ;;  %v6072_v57 = vld [vmem:[#allocation26_spill] sm:$0xff] }
 0x27b   : > { %v5578_v19 = vpop.eup %4278  ;;  %2035 = vadd.xlane.f32.xlu1 %v2034_v18  ;;  %4012 = vmatpush3.bf16.msra.mxu1 %v4167_v60  ;;  %v6071_v60 = vld [vmem:[#allocation24_spill] sm:$0xff] }
 0x27c   : > { %2044 = vadd.xlane.f32.xlu0 %v2043_v14  ;;  %v2415_v0 = vpack.c.bf16 %v5578_v19, %v5573_v29  ;;  %4013 = vmatprep.subr.bf16.mxu1 %v4168_v28  ;;  %v2064_v14 = vsel %vm1474_vm3, %v5523_v54, 0.0 }
 0x27e   : > { %v1822_v53 = vpop.permute.xlu1 %1821  ;;  %4006 = vmatmul.mubr.msk.bf16.gmra.mrb[52].mxu1 %vm1474_vm3, %v2415_v0  ;;  %v6073_v0 = vld [vmem:[#allocation29_spill] sm:$0xff] }
 0x27f   : > { %v1883_v63 = vsub.f32 %v6069_v31, %v1822_v53  ;;  %2053 = vadd.xlane.f32.xlu1 %v2052_v45  ;;  %4014 = vmatpush3.bf16.msra.mxu1 %v4168_v28  ;;  %v2073_v45 = vsel %vm1474_vm3, %v4269_v56, 0.0  ;;  %v6074_v31 = vld [vmem:[#allocation31_spill] sm:$0xff] }
 0x280   : > { %2062 = vadd.xlane.f32.xlu0 %v2061_v58  ;;  %v1827_v8 = vpop.permute.xlu0 %1826  ;;  %4015 = vmatprep.subr.bf16.mxu1 %v4169_v11 }
 0x281   : > { %v1939_v61 = vmul.f32 1.442695, %v1883_v63  ;;  %v1884_v17 = vsub.f32 %v6070_v49, %v1827_v8  ;;  %v2058_v8 = vsel %vm1474_vm3, %v5515_v47, 0.0  ;;  %v6075_v49 = vld [vmem:[#allocation28_spill] sm:$0xff] }
 0x282   : > { %v1832_v44 = vpop.permute.xlu1 %1831 }
 0x283   : > { %v1941_v23 = vmul.f32 1.442695, %v1884_v17  ;;  %v1885_v35 = vsub.f32 %v6071_v60, %v1832_v44  ;;  %2047 = vadd.xlane.f32.xlu1 %v2046_v50  ;;  %4016 = vmatpush3.bf16.msra.mxu1 %v4169_v11  ;;  %4280 = vpow2.f32 %v1939_v61  ;;  %v2067_v17 = vsel %vm1474_vm3, %v5542_v27, 0.0  ;;  %v6076_v50 = vld [vmem:[#allocation30_spill] sm:$0xff] }
 0x284   : > { %2056 = vadd.xlane.f32.xlu0 %v2055_v1  ;;  %v1837_v36 = vpop.permute.xlu0 %1836 }
 0x285   : > { %4282 = vpow2.f32 %v1941_v23  ;;  %v1943_v21 = vmul.f32 1.442695, %v1885_v35  ;;  %v1886_v28 = vsub.f32 %v6072_v57, %v1837_v36  ;;  %v2076_v35 = vsel %vm1474_vm3, %v5555_v46, 0.0 }
 0x286   : > { %v1842_v18 = vpop.permute.xlu1 %1841  ;;  %v2085_v36 = vsel %vm1474_vm3, %v5573_v29, 0.0  ;;  %v2070_v57 = vsel %vm1474_vm3, %v5546_v7, 0.0  ;;  %v2079_v46 = vsel %vm1474_vm3, %v5561_v38, 0.0  ;;  %v2088_v29 = vsel %vm1474_vm3, %v5578_v19, 0.0 }
 0x287   : > { %v1945_v13 = vmul.f32 1.442695, %v1886_v28  ;;  %v1887_v53 = vsub.f32 %v6073_v0, %v1842_v18  ;;  %2065 = vadd.xlane.f32.xlu1 %v2064_v14  ;;  %4284 = vpow2.f32 %v1943_v21  ;;  %v2082_v38 = vsel %vm1474_vm3, %v5566_v37, 0.0 }
 0x288   : > { %2074 = vadd.xlane.f32.xlu0 %v2073_v45  ;;  %v1847_v34 = vpop.permute.xlu0 %1846 }
 0x289   : > { %4286 = vpow2.f32 %v1945_v13  ;;  %v1947_v11 = vmul.f32 1.442695, %v1887_v53  ;;  %v1888_v63 = vsub.f32 %v6074_v31, %v1847_v34 }
 0x28a   : > { %v1852_v58 = vpop.permute.xlu1 %1851 }
 0x28b   : > { %v1949_v61 = vmul.f32 1.442695, %v1888_v63  ;;  %v1889_v54 = vsub.f32 %v6075_v49, %v1852_v58  ;;  %2059 = vadd.xlane.f32.xlu1 %v2058_v8  ;;  %4288 = vpow2.f32 %v1947_v11 }
 0x28c   : > { %2068 = vadd.xlane.f32.xlu0 %v2067_v17  ;;  %v1857_v56 = vpop.permute.xlu0 %1856 }
 0x28d   : > { %4290 = vpow2.f32 %v1949_v61  ;;  %v1951_v44 = vmul.f32 1.442695, %v1889_v54  ;;  %v1890_v23 = vsub.f32 %v6076_v50, %v1857_v56  ;;  %v4281_v60 = vpop.eup %4280  ;;  %v6077_v50 = vsub.f32 %v5236_v33, %v5252_v41 }
 0x28e   : > { %v2091_v34 = vsel %vm1474_vm3, %v4281_v60, 0.0  ;;  %v5628_v19 = vpop.permute.xlu1 %2219 }
 0x28f   : > { %v4283_v1 = vpop.eup %4282  ;;  %v1953_v47 = vmul.f32 1.442695, %v1890_v23  ;;  %2077 = vadd.xlane.f32.xlu1 %v2076_v35  ;;  %4292 = vpow2.f32 %v1951_v44  ;;  %v1697_v23 = vmul.f32 1.442695, %v6077_v50 }
 0x290   : > { %2086 = vadd.xlane.f32.xlu0 %v2085_v36  ;;  %v2416_v27 = vpack.c.bf16 %v4283_v1, %v4281_v60  ;;  %v5626_v31 = vpop.permute.xlu0 %2214  ;;  %v2094_v37 = vsel %vm1474_vm3, %v4283_v1, 0.0 }
 0x291   : > { %4294 = vpow2.f32 %v1953_v47  ;;  %v4285_v21 = vpop.eup %4284 }
 0x292   : > { %4017 = vmatprep.mubr.msk.bf16.mxu1 %vm1474_vm3, %v2416_v27  ;;  %v2097_v0 = vsel %vm1474_vm3, %v4285_v21, 0.0  ;;  %v5637_v49 = vpop.permute.xlu1 %2224  ;;  %4296 = vpow2.f32 %v1697_v23 }
 0x293   : > { %v4287_v28 = vpop.eup %4286  ;;  %2071 = vadd.xlane.f32.xlu1 %v2070_v57 }
 0x294   : > { %v2417_v18 = vpack.c.bf16 %v4287_v28, %v4285_v21  ;;  %2080 = vadd.xlane.f32.xlu0 %v2079_v46  ;;  %v2100_v63 = vsel %vm1474_vm3, %v4287_v28, 0.0  ;;  %v5634_v8 = vpop.permute.xlu0 %2229 }
 0x295   : > { %v4289_v14 = vpop.eup %4288 }
 0x296   : > { %4018 = vmatmul.mubr.msk.bf16.vlgmr.msra.gmra.mrb[56].mxu1 %vm1474_vm3, %v2417_v18  ;;  %v2103_v61 = vsel %vm1474_vm3, %v4289_v14, 0.0  ;;  %v5642_v56 = vpop.permute.xlu1 %2234 }
 0x297   : > { %v4291_v13 = vpop.eup %4290  ;;  %2089 = vadd.xlane.f32.xlu1 %v2088_v29 }
 0x298   : > { %2098 = vadd.xlane.f32.xlu0 %v2097_v0  ;;  %v2418_v53 = vpack.c.bf16 %v4291_v13, %v4289_v14  ;;  %v5640_v17 = vpop.permute.xlu0 %2239  ;;  %v2106_v44 = vsel %vm1474_vm3, %v4291_v13, 0.0 }
 0x299   : > { %v4293_v7 = vpop.eup %4292 }
 0x29a   : > { %4021 = vmatprep.mubr.msk.bf16.mxu1 %vm1474_vm3, %v2418_v53  ;;  %v2109_v58 = vsel %vm1474_vm3, %v4293_v7, 0.0  ;;  %v5650_v35 = vpop.permute.xlu1 %2244 }
 0x29b   : > { %v4295_v45 = vpop.eup %4294  ;;  %2083 = vadd.xlane.f32.xlu1 %v2082_v38 }
 0x29c   : > { %2092 = vadd.xlane.f32.xlu0 %v2091_v34  ;;  %v2419_v11 = vpack.c.bf16 %v4295_v45, %v4293_v7  ;;  %v2112_v54 = vsel %vm1474_vm3, %v4295_v45, 0.0  ;;  %v5648_v60 = vpop.permute.xlu0 %2249  ;;  %v5656_v36 = vpop.eup %4296 }
 0x29e   : > { %4022 = vmatmul.mubr.msk.bf16.gmra.mrb[60].mxu1 %vm1474_vm3, %v2419_v11  ;;  %v5654_v47 = vpop.permute.xlu1 %2254 }
 0x29f   : > { %2101 = vadd.xlane.f32.xlu1 %v2100_v63 }
 0x2a0   : > { %2110 = vadd.xlane.f32.xlu0 %v2109_v58  ;;  %v5652_v1 = vpop.permute.xlu0 %2259  ;;  %v1957_v58 = vld [vmem:[#allocation3 + $0x10] sm:$0xff] }
 0x2a2   : > { %v5661_v21 = vpop.permute.xlu1 %2264 }
 0x2a3   : > { %2095 = vadd.xlane.f32.xlu1 %v2094_v37 }
 0x2a4   : > { %2104 = vadd.xlane.f32.xlu0 %v2103_v61  ;;  %v5659_v27 = vpop.permute.xlu0 %2269  ;;  %v1989_v61 = vmul.f32 %v5303_v6, %v1957_v58  ;;  %v1958_v58 = vld [vmem:[#allocation3 + $0x18] sm:$0xff] }
 0x2a6   : > { %v5665_v41 = vpop.permute.xlu1 %2274 }
 0x2a7   : > { %2113 = vadd.xlane.f32.xlu1 %v2112_v54 }
 0x2a8   : > { %v5663_v33 = vpop.permute.xlu0 %2279 }
 0x2aa   : > { %v5669_v28 = vpop.permute.xlu1 %2284 }
 0x2ab   : > { %2107 = vadd.xlane.f32.xlu1 %v2106_v44  ;;  %v1956_v44 = vld [vmem:[#allocation3 + $0x8] sm:$0xff] }
 0x2ac   : > { %v5667_v57 = vpop.permute.xlu0 %2289 }
 0x2ae   : > { %v5673_v18 = vpop.permute.xlu1 %2294 }
 0x2b0   : > { %v5671_v46 = vpop.permute.xlu0 %2299 }
 0x2b2   : > { %v5677_v29 = vpop.permute.xlu1 %2304 }
 0x2b4   : > { %v5675_v14 = vpop.permute.xlu0 %2309 }
 0x2b6   : > { %v5681_v0 = vpop.permute.xlu1 %2314 }
 0x2b7   : > { %6079 = vst [vmem:[#allocation7_spill] sm:$0xff] %v5681_v0 }
 0x2b8   : > { %v5679_v13 = vpop.permute.xlu0 %2319 }
 0x2b9   : > { %6078 = vst [vmem:[#allocation5_spill] sm:$0xff] %v5679_v13  ;;  %v1961_v13 = vld [vmem:[#allocation3 + $0x30] sm:$0xff] }
 0x2ba   : > { %2369 = vperm.xlu0 %4103, %v5656_v36   ;;  %v5685_v7 = vpop.permute.xlu1 %2324  ;;  %v1993_v6 = vmul.f32 %v5327_v15, %v1961_v13  ;;  %v1965_v15 = vld [vmem:[#allocation3 + $0x50] sm:$0xff] }
 0x2bc   : > { %v5683_v53 = vpop.permute.xlu0 %2329 }
 0x2bd   : > { %6080 = vst [vmem:[#allocation39_spill] sm:$0xff] %v5683_v53 }
 0x2be   : > { %v5689_v45 = vpop.permute.xlu1 %2344 }
 0x2bf   : > { %6082 = vst [vmem:[#allocation38_spill] sm:$0xff] %v5689_v45  ;;  %v1955_v45 = vld [vmem:[#allocation3] sm:$0xff] }
 0x2c0   : > { %v5687_v38 = vpop.permute.xlu0 %2349 }
 0x2c1   : > { %6081 = vst [vmem:[#allocation37_spill] sm:$0xff] %v5687_v38  ;;  %v1988_v38 = vmul.f32 %v5291_v51, %v1956_v44  ;;  %v1990_v51 = vmul.f32 %v5309_v10, %v1958_v58  ;;  %v1997_v10 = vmul.f32 %v5360_v43, %v1965_v15  ;;  %v2180_v44 = vld [vmem:[#allocation4] sm:$0xff] }
 0x2c2   : > { %v5693_v11 = vpop.permute.xlu1 %2334 }
 0x2c3   : > { %6084 = vst [vmem:[#allocation40_spill] sm:$0xff] %v5693_v11 }
 0x2c4   : > { %v5691_v34 = vpop.permute.xlu0 %2339 }
 0x2c5   : > { %6083 = vst [vmem:[#allocation6_spill] sm:$0xff] %v5691_v34 }
 0x2c6   : > { %v5697_v37 = vpop.permute.xlu1 %2364 }
 0x2c7   : > { %6086 = vst [vmem:[#allocation9_spill] sm:$0xff] %v5697_v37 }
 0x2c8   : > { %v5695_v63 = vpop.permute.xlu0 %2359 }
 0x2c9   : > { %6085 = vst [vmem:[#allocation32_spill] sm:$0xff] %v5695_v63  ;;  %v1987_v63 = vmul.f32 %v5297_v52, %v1955_v45  ;;  %v1962_v45 = vld [vmem:[#allocation3 + $0x38] sm:$0xff] }
 0x2ca   : > { %v5700_v23 = vpop.permute.xlu1 %2354 }
 0x2cb   : > { %6087 = vst [vmem:[#allocation11_spill] sm:$0xff] %v5700_v23 }
 0x2f5   : > { %v2027_v54 = vpop.xlane.xlu0 %2026 }
 0x2f6   : > { %v2117_v50 = vadd.f32 %v2027_v54, %v1989_v61  ;;  %v1959_v54 = vld [vmem:[#allocation3 + $0x20] sm:$0xff] }
 0x2f7   : > { %v1991_v52 = vmul.f32 %v5315_v59, %v1959_v54  ;;  %v1963_v59 = vld [vmem:[#allocation3 + $0x40] sm:$0xff]  ;;  %v2181_v54 = vld [vmem:[#allocation4 + $0x8] sm:$0xff] }
 0x2f8   : > { %2150 = vst.msk [vmem:[#allocation3 + $0x10] sm:$0xff] %vm401_vm2, %v2117_v50 }
 0x2f9   : > { %v2024_v34 = vpop.xlane.xlu0 %2023 }
 0x2fa   : > { %v2116_v11 = vadd.f32 %v2024_v34, %v1988_v38 }
 0x2fc   : > { %2149 = vst.msk [vmem:[#allocation3 + $0x8] sm:$0xff] %vm401_vm2, %v2116_v11  ;;  %v2021_v37 = vpop.xlane.xlu1 %2020 }
 0x2fd   : > { %v2115_v53 = vadd.f32 %v2021_v37, %v1987_v63  ;;  %v2039_v61 = vpop.xlane.xlu0 %2038  ;;  %v1994_v63 = vmul.f32 %v5333_v30, %v1962_v45  ;;  %v2182_v37 = vld [vmem:[#allocation4 + $0x10] sm:$0xff] }
 0x2fe   : > { %v2121_v23 = vadd.f32 %v2039_v61, %v1993_v6  ;;  %v2183_v6 = vld [vmem:[#allocation4 + $0x18] sm:$0xff] }
 0x2ff   : > { %v2925_v0 = vld [vmem:[#allocation3 + $0x10] sm:$0xff]  ;;  %2148 = vst.msk [vmem:[#allocation3] sm:$0xff] %vm401_vm2, %v2115_v53  ;;  %v2375_v15 = vmul.f32 %v5634_v8, %v2183_v6 }
 0x300   : > { %4298 = vrcp.f32 %v2925_v0  ;;  %2154 = vst.msk [vmem:[#allocation3 + $0x30] sm:$0xff] %vm401_vm2, %v2121_v23  ;;  %v2030_v38 = vpop.xlane.xlu1 %2029  ;;  %v1960_v0 = vld [vmem:[#allocation3 + $0x28] sm:$0xff] }
 0x301   : > { %v2118_v34 = vadd.f32 %v2030_v38, %v1990_v51  ;;  %v2033_v11 = vpop.xlane.xlu0 %2032  ;;  %v2374_v51 = vmul.f32 %v5637_v49, %v2182_v37  ;;  %v1992_v30 = vmul.f32 %v5321_v16, %v1960_v0 }
 0x302   : > { %v2119_v13 = vadd.f32 %v2033_v11, %v1991_v52  ;;  %v2372_v52 = vmul.f32 %v5626_v31, %v2180_v44  ;;  %v1966_v11 = vld [vmem:[#allocation3 + $0x58] sm:$0xff] }
 0x303   : > { %2151 = vst.msk [vmem:[#allocation3 + $0x18] sm:$0xff] %vm401_vm2, %v2118_v34  ;;  %v1995_v34 = vmul.f32 %v5343_v5, %v1963_v59  ;;  %v1998_v59 = vmul.f32 %v5364_v2, %v1966_v11  ;;  %v1970_v11 = vld [vmem:[#allocation3 + $0x78] sm:$0xff] }
 0x304   : > { %2152 = vst.msk [vmem:[#allocation3 + $0x20] sm:$0xff] %vm401_vm2, %v2119_v13  ;;  %v2042_v53 = vpop.xlane.xlu1 %2041 }
 0x305   : > { %v2122_v50 = vadd.f32 %v2042_v53, %v1994_v63  ;;  %v2051_v23 = vpop.xlane.xlu0 %2050  ;;  %v1969_v53 = vld [vmem:[#allocation3 + $0x70] sm:$0xff] }
 0x306   : > { %v2923_v58 = vld [vmem:[#allocation3] sm:$0xff]  ;;  %v2125_v61 = vadd.f32 %v2051_v23, %v1997_v10  ;;  %v2924_v23 = vld [vmem:[#allocation3 + $0x8] sm:$0xff] }
 0x307   : > { %4300 = vrcp.f32 %v2923_v58  ;;  %v2929_v38 = vld [vmem:[#allocation3 + $0x30] sm:$0xff]  ;;  %2155 = vst.msk [vmem:[#allocation3 + $0x38] sm:$0xff] %vm401_vm2, %v2122_v50  ;;  %v2373_v50 = vmul.f32 %v5628_v19, %v2181_v54  ;;  %v1964_v54 = vld [vmem:[#allocation3 + $0x48] sm:$0xff] }
 0x308   : > { %2158 = vst.msk [vmem:[#allocation3 + $0x50] sm:$0xff] %vm401_vm2, %v2125_v61  ;;  %v3971_v43 = vpop.f32.mrb[32].mxu1  ;;  %v2036_v45 = vpop.xlane.xlu1 %2035  ;;  %4302 = vrcp.f32 %v2929_v38  ;;  %v2001_v61 = vmul.f32 %v5379_v3, %v1969_v53  ;;  %v2186_v53 = vld [vmem:[#allocation4 + $0x30] sm:$0xff] }
 0x309   : > { %v2826_v13 = vadd.f32 %v3971_v43, %v2374_v51  ;;  %v2120_v63 = vadd.f32 %v2036_v45, %v1992_v30  ;;  %v2490_v49 = vpop.f32.mrb[33].mxu1  ;;  %v2045_v37 = vpop.xlane.xlu0 %2044  ;;  %v1967_v30 = vld [vmem:[#allocation3 + $0x60] sm:$0xff]  ;;  %v1996_v43 = vmul.f32 %v5353_v22, %v1964_v54  ;;  %v2002_v22 = vmul.f32 %v5384_v12, %v1970_v11 }
 0x30a   : > { %v4299_v10 = vpop.eup %4298  ;;  %v2926_v16 = vld [vmem:[#allocation3 + $0x18] sm:$0xff]  ;;  %v2824_v31 = vadd.f32 %v2490_v49, %v2372_v52  ;;  %v2123_v0 = vadd.f32 %v2045_v37, %v1995_v34  ;;  %v3972_v44 = vpop.f32.mrb[34].mxu1  ;;  %v1999_v34 = vmul.f32 %v5367_v9, %v1967_v30  ;;  %v1973_v49 = vld [vmem:[#allocation3 + $0x90] sm:$0xff] }
 0x30b   : > { %4304 = vrcp.f32 %v2926_v16  ;;  %2858 = vst.msk [vmem:[#allocation4 + $0x10] sm:$0xff] %vm466_vm0, %v2826_v13  ;;  %v2827_v5 = vadd.f32 %v3972_v44, %v2375_v15  ;;  %v2493_v8 = vpop.f32.mrb[35].mxu1  ;;  %3031 = vperm.xlu1 %4104, %v4299_v10   ;;  %v2927_v6 = vld [vmem:[#allocation3 + $0x20] sm:$0xff]  ;;  %v1968_v44 = vld [vmem:[#allocation3 + $0x68] sm:$0xff] }
 0x30c   : > { %2153 = vst.msk [vmem:[#allocation3 + $0x28] sm:$0xff] %vm401_vm2, %v2120_v63  ;;  %2156 = vst.msk [vmem:[#allocation3 + $0x40] sm:$0xff] %vm401_vm2, %v2123_v0  ;;  %v2825_v19 = vadd.f32 %v2493_v8, %v2373_v50  ;;  %v2054_v58 = vpop.xlane.xlu1 %2053  ;;  %4306 = vrcp.f32 %v2924_v23  ;;  %v2184_v16 = vld [vmem:[#allocation4 + $0x20] sm:$0xff]  ;;  %v2005_v0 = vmul.f32 %v5388_v39, %v1973_v49 }
 0x30d   : > { %2856 = vst.msk [vmem:[#allocation4] sm:$0xff] %vm466_vm0, %v2824_v31  ;;  %2859 = vst.msk [vmem:[#allocation4 + $0x18] sm:$0xff] %vm466_vm0, %v2827_v5  ;;  %v2126_v51 = vadd.f32 %v2054_v58, %v1998_v59  ;;  %v2063_v38 = vpop.xlane.xlu0 %2062  ;;  %4308 = vrcp.f32 %v2927_v6  ;;  %v2187_v5 = vld [vmem:[#allocation4 + $0x38] sm:$0xff]  ;;  %v1971_v6 = vld [vmem:[#allocation3 + $0x80] sm:$0xff]  ;;  %v2378_v58 = vmul.f32 %v5650_v35, %v2186_v53  ;;  %v2376_v12 = vmul.f32 %v5642_v56, %v2184_v16 }
 0x30e   : > { %2857 = vst.msk [vmem:[#allocation4 + $0x8] sm:$0xff] %vm466_vm0, %v2825_v19  ;;  %v2129_v52 = vadd.f32 %v2063_v38, %v2001_v61  ;;  %v2930_v2 = vld [vmem:[#allocation3 + $0x38] sm:$0xff]  ;;  %v2185_v19 = vld [vmem:[#allocation4 + $0x28] sm:$0xff]  ;;  %v2379_v30 = vmul.f32 %v5648_v60, %v2187_v5 }
 0x30f   : > { %2159 = vst.msk [vmem:[#allocation3 + $0x58] sm:$0xff] %vm401_vm2, %v2126_v51  ;;  %v2933_v45 = vld [vmem:[#allocation3 + $0x50] sm:$0xff]  ;;  %4310 = vrcp.f32 %v2930_v2  ;;  %v2000_v51 = vmul.f32 %v5373_v26, %v1968_v44 }
 0x310   : > { %2162 = vst.msk [vmem:[#allocation3 + $0x70] sm:$0xff] %vm401_vm2, %v2129_v52  ;;  %v2048_v3 = vpop.xlane.xlu1 %2047  ;;  %4312 = vrcp.f32 %v2933_v45  ;;  %v2003_v45 = vmul.f32 %v5395_v32, %v1971_v6  ;;  %v1977_v26 = vld [vmem:[#allocation3 + $0xb0] sm:$0xff] }
 0x311   : > { %v4301_v15 = vpop.eup %4300  ;;  %v2124_v13 = vadd.f32 %v2048_v3, %v1996_v43  ;;  %v2057_v63 = vpop.xlane.xlu0 %2056  ;;  %v1974_v3 = vld [vmem:[#allocation3 + $0x98] sm:$0xff]  ;;  %v2009_v16 = vmul.f32 %v5447_v20, %v1977_v26 }
 0x312   : > { %v2127_v37 = vadd.f32 %v2057_v63, %v1999_v34  ;;  %3021 = vperm.xlu1 %4104, %v4301_v15   ;;  %v4303_v50 = vpop.eup %4302  ;;  %v2377_v34 = vmul.f32 %v5640_v17, %v2185_v19  ;;  %v2006_v17 = vmul.f32 %v5428_v55, %v1974_v3 }
 0x313   : > { %v2928_v10 = vld [vmem:[#allocation3 + $0x28] sm:$0xff]  ;;  %2157 = vst.msk [vmem:[#allocation3 + $0x48] sm:$0xff] %vm401_vm2, %v2124_v13  ;;  %v2931_v31 = vld [vmem:[#allocation3 + $0x40] sm:$0xff] }
 0x314   : > { %2160 = vst.msk [vmem:[#allocation3 + $0x60] sm:$0xff] %vm401_vm2, %v2127_v37  ;;  %v2066_v9 = vpop.xlane.xlu1 %2065  ;;  %4314 = vrcp.f32 %v2928_v10 }
 0x315   : > { %v4305_v23 = vpop.eup %4304  ;;  %v2130_v8 = vadd.f32 %v2066_v9, %v2002_v22  ;;  %v2075_v59 = vpop.xlane.xlu0 %2074  ;;  %4316 = vrcp.f32 %v2931_v31  ;;  %v1972_v31 = vld [vmem:[#allocation3 + $0x88] sm:$0xff] }
 0x316   : > { %v2133_v61 = vadd.f32 %v2075_v59, %v2005_v0  ;;  %3036 = vperm.xlu0 %4103, %v4305_v23   ;;  %3051 = vperm.xlu1 %4104, %v4303_v50   ;;  %v2934_v54 = vld [vmem:[#allocation3 + $0x58] sm:$0xff]  ;;  %v4307_v38 = vpop.eup %4306  ;;  %v1975_v23 = vld [vmem:[#allocation3 + $0xa0] sm:$0xff] }
 0x317   : > { %2163 = vst.msk [vmem:[#allocation3 + $0x78] sm:$0xff] %vm401_vm2, %v2130_v8  ;;  %v3975_v39 = vpop.f32.mrb[36].mxu1  ;;  %v2937_v52 = vld [vmem:[#allocation3 + $0x70] sm:$0xff]  ;;  %v4309_v56 = vpop.eup %4308  ;;  %4318 = vrcp.f32 %v2934_v54  ;;  %v2004_v8 = vmul.f32 %v5403_v4, %v1972_v31  ;;  %v2007_v19 = vmul.f32 %v5435_v48, %v1975_v23 }
 0x318   : > { %2166 = vst.msk [vmem:[#allocation3 + $0x90] sm:$0xff] %vm401_vm2, %v2133_v61  ;;  %v2830_v35 = vadd.f32 %v3975_v39, %v2378_v58  ;;  %v2506_v2 = vpop.f32.mrb[37].mxu1  ;;  %v2060_v43 = vpop.xlane.xlu1 %2059  ;;  %4320 = vrcp.f32 %v2937_v52  ;;  %v1978_v58 = vld [vmem:[#allocation3 + $0xb8] sm:$0xff]  ;;  %v1981_v39 = vld [vmem:[#allocation3 + $0xd0] sm:$0xff] }
 0x319   : > { %v2828_v11 = vadd.f32 %v2506_v2, %v2376_v12  ;;  %v2128_v15 = vadd.f32 %v2060_v43, %v2000_v51  ;;  %v3976_v13 = vpop.f32.mrb[38].mxu1  ;;  %v2069_v63 = vpop.xlane.xlu0 %2068  ;;  %v2010_v4 = vmul.f32 %v5449_v62, %v1978_v58  ;;  %v1976_v2 = vld [vmem:[#allocation3 + $0xa8] sm:$0xff]  ;;  %v1985_v31 = vld [vmem:[#allocation3 + $0xf0] sm:$0xff] }
 0x31a   : > { %2862 = vst.msk [vmem:[#allocation4 + $0x30] sm:$0xff] %vm466_vm0, %v2830_v35  ;;  %v2831_v60 = vadd.f32 %v3976_v13, %v2379_v30  ;;  %v2131_v49 = vadd.f32 %v2069_v63, %v2003_v45  ;;  %v2509_v37 = vpop.f32.mrb[39].mxu1  ;;  %3026 = vperm.xlu0 %4103, %v4307_v38   ;;  %3041 = vperm.xlu1 %4104, %v4309_v56   ;;  %v2932_v53 = vld [vmem:[#allocation3 + $0x48] sm:$0xff]  ;;  %v4311_v10 = vpop.eup %4310  ;;  %v2190_v45 = vld [vmem:[#allocation4 + $0x50] sm:$0xff]  ;;  %v2191_v13 = vld [vmem:[#allocation4 + $0x58] sm:$0xff] }
 0x31b   : > { %2860 = vst.msk [vmem:[#allocation4 + $0x20] sm:$0xff] %vm466_vm0, %v2828_v11  ;;  %v2829_v32 = vadd.f32 %v2509_v37, %v2377_v34  ;;  %v2935_v22 = vld [vmem:[#allocation3 + $0x60] sm:$0xff]  ;;  %v4313_v9 = vpop.eup %4312  ;;  %4322 = vrcp.f32 %v2932_v53  ;;  %v2013_v35 = vmul.f32 %v5458_v42, %v1981_v39  ;;  %v2008_v63 = vmul.f32 %v5442_v24, %v1976_v2  ;;  %v2189_v42 = vld [vmem:[#allocation4 + $0x48] sm:$0xff] }
 0x31c   : > { %2161 = vst.msk [vmem:[#allocation3 + $0x68] sm:$0xff] %vm401_vm2, %v2128_v15  ;;  %2164 = vst.msk [vmem:[#allocation3 + $0x80] sm:$0xff] %vm401_vm2, %v2131_v49  ;;  %v2078_v50 = vpop.xlane.xlu1 %2077  ;;  %4324 = vrcp.f32 %v2935_v22  ;;  %v1979_v34 = vld [vmem:[#allocation3 + $0xc0] sm:$0xff]  ;;  %v2383_v24 = vmul.f32 %v5659_v27, %v2191_v13  ;;  %v2193_v2 = vld [vmem:[#allocation4 + $0x68] sm:$0xff] }
 0x31d   : > { %2863 = vst.msk [vmem:[#allocation4 + $0x38] sm:$0xff] %vm466_vm0, %v2831_v60  ;;  %2861 = vst.msk [vmem:[#allocation4 + $0x28] sm:$0xff] %vm466_vm0, %v2829_v32  ;;  %v2134_v0 = vadd.f32 %v2078_v50, %v2006_v17  ;;  %v2087_v44 = vpop.xlane.xlu0 %2086  ;;  %v2188_v11 = vld [vmem:[#allocation4 + $0x40] sm:$0xff]  ;;  %v2382_v60 = vmul.f32 %v5661_v21, %v2190_v45  ;;  %v2011_v53 = vmul.f32 %v5474_v25, %v1979_v34  ;;  %v1982_v32 = vld [vmem:[#allocation3 + $0xd8] sm:$0xff] }
 0x31e   : > { %v2137_v5 = vadd.f32 %v2087_v44, %v2009_v16  ;;  %3056 = vperm.xlu0 %4103, %v4311_v10   ;;  %3071 = vperm.xlu1 %4104, %v4313_v9   ;;  %v2938_v55 = vld [vmem:[#allocation3 + $0x78] sm:$0xff]  ;;  %v4315_v59 = vpop.eup %4314  ;;  %v2380_v10 = vmul.f32 %v5654_v47, %v2188_v11  ;;  %v2381_v44 = vmul.f32 %v5652_v1, %v2189_v42  ;;  %v1980_v1 = vld [vmem:[#allocation3 + $0xc8] sm:$0xff] }
 0x31f   : > { %2167 = vst.msk [vmem:[#allocation3 + $0x98] sm:$0xff] %vm401_vm2, %v2134_v0  ;;  %v2941_v6 = vld [vmem:[#allocation3 + $0x90] sm:$0xff]  ;;  %v4317_v61 = vpop.eup %4316  ;;  %4326 = vrcp.f32 %v2938_v55  ;;  %v1986_v11 = vld [vmem:[#allocation3 + $0xf8] sm:$0xff] }
 0x320   : > { %2170 = vst.msk [vmem:[#allocation3 + $0xb0] sm:$0xff] %vm401_vm2, %v2137_v5  ;;  %v2072_v20 = vpop.xlane.xlu1 %2071  ;;  %4328 = vrcp.f32 %v2941_v6  ;;  %v2014_v5 = vmul.f32 %v5462_v40, %v1982_v32  ;;  %v1983_v40 = vld [vmem:[#allocation3 + $0xe0] sm:$0xff] }
 0x321   : > { %v2132_v12 = vadd.f32 %v2072_v20, %v2004_v8  ;;  %v2081_v54 = vpop.xlane.xlu0 %2080  ;;  %v4319_v30 = vpop.eup %4318  ;;  %v6088_v20 = vld [vmem:[#allocation33_spill] sm:$0xff] }
 0x322   : > { %v2135_v51 = vadd.f32 %v2081_v54, %v2007_v19  ;;  %3046 = vperm.xlu0 %4103, %v4315_v59   ;;  %3061 = vperm.xlu1 %4104, %v4317_v61   ;;  %v4321_v43 = vpop.eup %4320  ;;  %v2017_v19 = vmul.f32 %v6088_v20, %v1985_v31  ;;  %v2194_v61 = vld [vmem:[#allocation4 + $0x70] sm:$0xff]  ;;  %v1984_v31 = vld [vmem:[#allocation3 + $0xe8] sm:$0xff] }
 0x323   : > { %v2936_v38 = vld [vmem:[#allocation3 + $0x68] sm:$0xff]  ;;  %2165 = vst.msk [vmem:[#allocation3 + $0x88] sm:$0xff] %vm401_vm2, %v2132_v12  ;;  %v2939_v52 = vld [vmem:[#allocation3 + $0x80] sm:$0xff] }
 0x324   : > { %2168 = vst.msk [vmem:[#allocation3 + $0xa0] sm:$0xff] %vm401_vm2, %v2135_v51  ;;  %v2090_v48 = vpop.xlane.xlu1 %2089  ;;  %4330 = vrcp.f32 %v2936_v38  ;;  %v2192_v51 = vld [vmem:[#allocation4 + $0x60] sm:$0xff] }
 0x325   : > { %v2138_v3 = vadd.f32 %v2090_v48, %v2010_v4  ;;  %v2099_v56 = vpop.xlane.xlu0 %2098  ;;  %4332 = vrcp.f32 %v2939_v52  ;;  %v4323_v26 = vpop.eup %4322  ;;  %v2195_v4 = vld [vmem:[#allocation4 + $0x78] sm:$0xff]  ;;  %v6089_v52 = vld [vmem:[#allocation35_spill] sm:$0xff]  ;;  %v2384_v13 = vmul.f32 %v5665_v41, %v2192_v51  ;;  %v2018_v41 = vmul.f32 %v5656_v36, %v1986_v11  ;;  %v6091_v36 = vld [vmem:[#allocation34_spill] sm:$0xff] }
 0x326   : > { %v2141_v15 = vadd.f32 %v2099_v56, %v2013_v35  ;;  %3076 = vperm.xlu0 %4103, %v4319_v30   ;;  %3091 = vperm.xlu1 %4104, %v4321_v43   ;;  %v2942_v62 = vld [vmem:[#allocation3 + $0x98] sm:$0xff]  ;;  %v4325_v17 = vpop.eup %4324  ;;  %v2012_v48 = vmul.f32 %v6089_v52, %v1980_v1  ;;  %v2386_v43 = vmul.f32 %v5669_v28, %v2194_v61  ;;  %v2198_v61 = vld [vmem:[#allocation4 + $0x90] sm:$0xff] }
 0x327   : > { %2171 = vst.msk [vmem:[#allocation3 + $0xb8] sm:$0xff] %vm401_vm2, %v2138_v3  ;;  %v2945_v49 = vld [vmem:[#allocation3 + $0xb0] sm:$0xff]  ;;  %4334 = vrcp.f32 %v2942_v62  ;;  %v6090_v56 = vld [vmem:[#allocation36_spill] sm:$0xff]  ;;  %v2387_v42 = vmul.f32 %v5667_v57, %v2195_v4  ;;  %v2385_v28 = vmul.f32 %v5663_v33, %v2193_v2  ;;  %v2390_v51 = vmul.f32 %v5677_v29, %v2198_v61  ;;  %v6099_v61 = vld [vmem:[#allocation9_spill] sm:$0xff] }
 0x328   : > { %2174 = vst.msk [vmem:[#allocation3 + $0xd0] sm:$0xff] %vm401_vm2, %v2141_v15  ;;  %v2084_v37 = vpop.xlane.xlu1 %2083  ;;  %4336 = vrcp.f32 %v2945_v49  ;;  %v2015_v34 = vmul.f32 %v6090_v56, %v1983_v40  ;;  %v2197_v40 = vld [vmem:[#allocation4 + $0x88] sm:$0xff]  ;;  %v2202_v11 = vld [vmem:[#allocation4 + $0xb0] sm:$0xff] }
 0x329   : > { %v2136_v22 = vadd.f32 %v2084_v37, %v2008_v63  ;;  %v3987_v50 = vpop.f32.mrb[40].mxu1  ;;  %v2093_v16 = vpop.xlane.xlu0 %2092 }
 0x32a   : > { %v2834_v9 = vadd.f32 %v3987_v50, %v2382_v60  ;;  %v2139_v0 = vadd.f32 %v2093_v16, %v2011_v53  ;;  %v2591_v21 = vpop.f32.mrb[41].mxu1  ;;  %3066 = vperm.xlu0 %4103, %v4323_v26   ;;  %3081 = vperm.xlu1 %4104, %v4325_v17   ;;  %v2940_v25 = vld [vmem:[#allocation3 + $0x88] sm:$0xff]  ;;  %v4327_v55 = vpop.eup %4326 }
 0x32b   : > { %2169 = vst.msk [vmem:[#allocation3 + $0xa8] sm:$0xff] %vm401_vm2, %v2136_v22  ;;  %v2832_v23 = vadd.f32 %v2591_v21, %v2380_v10  ;;  %v3988_v47 = vpop.f32.mrb[42].mxu1  ;;  %v2943_v8 = vld [vmem:[#allocation3 + $0xa0] sm:$0xff]  ;;  %v4329_v58 = vpop.eup %4328  ;;  %4338 = vrcp.f32 %v2940_v25 }
 0x32c   : > { %2866 = vst.msk [vmem:[#allocation4 + $0x50] sm:$0xff] %vm466_vm0, %v2834_v9  ;;  %v2835_v27 = vadd.f32 %v3988_v47, %v2383_v24  ;;  %v2594_v59 = vpop.f32.mrb[43].mxu1  ;;  %v2102_v6 = vpop.xlane.xlu1 %2101  ;;  %4340 = vrcp.f32 %v2943_v8 }
 0x32d   : > { %2172 = vst.msk [vmem:[#allocation3 + $0xc0] sm:$0xff] %vm401_vm2, %v2139_v0  ;;  %v2833_v12 = vadd.f32 %v2594_v59, %v2381_v44  ;;  %v2142_v54 = vadd.f32 %v2102_v6, %v2014_v5  ;;  %v2111_v39 = vpop.xlane.xlu0 %2110  ;;  %v2016_v0 = vmul.f32 %v6091_v36, %v1984_v31  ;;  %v6095_v31 = vld [vmem:[#allocation38_spill] sm:$0xff] }
 0x32e   : > { %2864 = vst.msk [vmem:[#allocation4 + $0x40] sm:$0xff] %vm466_vm0, %v2832_v23  ;;  %2867 = vst.msk [vmem:[#allocation4 + $0x58] sm:$0xff] %vm466_vm0, %v2835_v27  ;;  %v2145_v38 = vadd.f32 %v2111_v39, %v2017_v19  ;;  %3096 = vperm.xlu0 %4103, %v4327_v55   ;;  %3111 = vperm.xlu1 %4104, %v4329_v58   ;;  %v2946_v30 = vld [vmem:[#allocation3 + $0xb8] sm:$0xff]  ;;  %v4331_v35 = vpop.eup %4330 }
 0x32f   : > { %2865 = vst.msk [vmem:[#allocation4 + $0x48] sm:$0xff] %vm466_vm0, %v2833_v12  ;;  %v2949_v45 = vld [vmem:[#allocation3 + $0xd0] sm:$0xff]  ;;  %v4333_v15 = vpop.eup %4332  ;;  %4342 = vrcp.f32 %v2946_v30  ;;  %v2199_v39 = vld [vmem:[#allocation4 + $0x98] sm:$0xff] }
 0x330   : > { %2175 = vst.msk [vmem:[#allocation3 + $0xd8] sm:$0xff] %vm401_vm2, %v2142_v54  ;;  %2178 = vst.msk [vmem:[#allocation3 + $0xf0] sm:$0xff] %vm401_vm2, %v2145_v38  ;;  %v2096_v3 = vpop.xlane.xlu1 %2095  ;;  %4344 = vrcp.f32 %v2949_v45  ;;  %v2196_v54 = vld [vmem:[#allocation4 + $0x80] sm:$0xff] }
 0x331   : > { %v2140_v62 = vadd.f32 %v2096_v3, %v2012_v48  ;;  %v3991_v63 = vpop.f32.mrb[44].mxu1  ;;  %v2105_v26 = vpop.xlane.xlu0 %2104  ;;  %v2388_v4 = vmul.f32 %v5673_v18, %v2196_v54  ;;  %v2391_v48 = vmul.f32 %v5675_v14, %v2199_v39  ;;  %v2203_v14 = vld [vmem:[#allocation4 + $0xb8] sm:$0xff]  ;;  %v2209_v54 = vld [vmem:[#allocation4 + $0xe8] sm:$0xff]  ;;  %v6100_v39 = vld [vmem:[#allocation11_spill] sm:$0xff] }
 0x332   : > { %v2838_v60 = vadd.f32 %v3991_v63, %v2386_v43  ;;  %v2143_v49 = vadd.f32 %v2105_v26, %v2015_v34  ;;  %v2607_v37 = vpop.f32.mrb[45].mxu1  ;;  %3086 = vperm.xlu0 %4103, %v4331_v35   ;;  %3101 = vperm.xlu1 %4104, %v4333_v15   ;;  %v2944_v53 = vld [vmem:[#allocation3 + $0xa8] sm:$0xff]  ;;  %v4335_v10 = vpop.eup %4334  ;;  %v2389_v43 = vmul.f32 %v5671_v46, %v2197_v40  ;;  %v2200_v15 = vld [vmem:[#allocation4 + $0xa0] sm:$0xff]  ;;  %v6092_v63 = vld [vmem:[#allocation7_spill] sm:$0xff] }
 0x333   : > { %2173 = vst.msk [vmem:[#allocation3 + $0xc8] sm:$0xff] %vm401_vm2, %v2140_v62  ;;  %v2836_v32 = vadd.f32 %v2607_v37, %v2384_v13  ;;  %v3992_v17 = vpop.f32.mrb[46].mxu1  ;;  %v4337_v24 = vpop.eup %4336  ;;  %4346 = vrcp.f32 %v2944_v53  ;;  %v2201_v46 = vld [vmem:[#allocation4 + $0xa8] sm:$0xff]  ;;  %v2394_v13 = vmul.f32 %v5685_v7, %v2202_v11  ;;  %v2392_v26 = vmul.f32 %v6092_v63, %v2200_v15  ;;  %v6094_v53 = vld [vmem:[#allocation5_spill] sm:$0xff]  ;;  %v2990_v63 = vld [vmem:[#allocation4 + $0x18] sm:$0xff] }
 0x334   : > { %v2947_v22 = vld [vmem:[#allocation3 + $0xc0] sm:$0xff]  ;;  %2870 = vst.msk [vmem:[#allocation4 + $0x70] sm:$0xff] %vm466_vm0, %v2838_v60  ;;  %v2839_v57 = vadd.f32 %v3992_v17, %v2387_v42  ;;  %v2610_v50 = vpop.f32.mrb[47].mxu1  ;;  %v2114_v16 = vpop.xlane.xlu1 %2113  ;;  %v6093_v60 = vld [vmem:[#allocation39_spill] sm:$0xff] }
 0x335   : > { %2176 = vst.msk [vmem:[#allocation3 + $0xe0] sm:$0xff] %vm401_vm2, %v2143_v49  ;;  %v2837_v33 = vadd.f32 %v2610_v50, %v2385_v28  ;;  %v2146_v9 = vadd.f32 %v2114_v16, %v2018_v41  ;;  %4348 = vrcp.f32 %v2947_v22  ;;  %v4339_v21 = vpop.eup %4338  ;;  %v2395_v49 = vmul.f32 %v6093_v60, %v2203_v14  ;;  %v2204_v50 = vld [vmem:[#allocation4 + $0xc0] sm:$0xff]  ;;  %v2207_v16 = vld [vmem:[#allocation4 + $0xd8] sm:$0xff] }
 0x336   : > { %2868 = vst.msk [vmem:[#allocation4 + $0x60] sm:$0xff] %vm466_vm0, %v2836_v32  ;;  %2871 = vst.msk [vmem:[#allocation4 + $0x78] sm:$0xff] %vm466_vm0, %v2839_v57  ;;  %3116 = vperm.xlu0 %4103, %v4335_v10   ;;  %3131 = vperm.xlu1 %4104, %v4337_v24   ;;  %v4341_v23 = vpop.eup %4340  ;;  %v2393_v32 = vmul.f32 %v6094_v53, %v2201_v46  ;;  %v2206_v57 = vld [vmem:[#allocation4 + $0xd0] sm:$0xff] }
 0x337   : > { %2869 = vst.msk [vmem:[#allocation4 + $0x68] sm:$0xff] %vm466_vm0, %v2837_v33  ;;  %v2950_v44 = vld [vmem:[#allocation3 + $0xd8] sm:$0xff]  ;;  %v2953_v59 = vld [vmem:[#allocation3 + $0xf0] sm:$0xff]  ;;  %v2398_v24 = vmul.f32 %v6095_v31, %v2206_v57  ;;  %v2205_v33 = vld [vmem:[#allocation4 + $0xc8] sm:$0xff] }
 0x338   : > { %2179 = vst.msk [vmem:[#allocation3 + $0xf8] sm:$0xff] %vm401_vm2, %v2146_v9  ;;  %v2108_v25 = vpop.xlane.xlu1 %2107  ;;  %4350 = vrcp.f32 %v2950_v44  ;;  %v6096_v9 = vld [vmem:[#allocation40_spill] sm:$0xff]  ;;  %v2997_v57 = vld [vmem:[#allocation4 + $0x50] sm:$0xff] }
 0x339   : > { %v2144_v47 = vadd.f32 %v2108_v25, %v2016_v0  ;;  %v4343_v55 = vpop.eup %4342  ;;  %v2396_v36 = vmul.f32 %v6096_v9, %v2204_v50 }
 0x33a   : > { %3106 = vperm.xlu0 %4103, %v4339_v21   ;;  %3121 = vperm.xlu1 %4104, %v4341_v23   ;;  %v2948_v8 = vld [vmem:[#allocation3 + $0xc8] sm:$0xff]  ;;  %v4345_v27 = vpop.eup %4344  ;;  %v6097_v21 = vld [vmem:[#allocation37_spill] sm:$0xff] }
 0x33b   : > { %2177 = vst.msk [vmem:[#allocation3 + $0xe8] sm:$0xff] %vm401_vm2, %v2144_v47  ;;  %v2399_v44 = vmul.f32 %v6097_v21, %v2207_v16  ;;  %v6098_v47 = vld [vmem:[#allocation6_spill] sm:$0xff]  ;;  %v2994_v16 = vld [vmem:[#allocation4 + $0x38] sm:$0xff] }
 0x33c   : > { %v2951_v5 = vld [vmem:[#allocation3 + $0xe0] sm:$0xff] }
 0x33d   : > { %4352 = vrcp.f32 %v2951_v5  ;;  %v4347_v6 = vpop.eup %4346  ;;  %v2397_v5 = vmul.f32 %v6098_v47, %v2205_v33 }
 0x33e   : > { %3136 = vperm.xlu0 %4103, %v4343_v55   ;;  %3151 = vperm.xlu1 %4104, %v4345_v27   ;;  %4354 = vrcp.f32 %v2948_v8 }
 0x33f   : > { %4356 = vrcp.f32 %v2953_v59  ;;  %v4349_v20 = vpop.eup %4348  ;;  %v2954_v1 = vld [vmem:[#allocation3 + $0xf8] sm:$0xff] }
 0x342   : > { %v2952_v19 = vld [vmem:[#allocation3 + $0xe8] sm:$0xff]  ;;  %3126 = vperm.xlu0 %4103, %v4347_v6   ;;  %3141 = vperm.xlu1 %4104, %v4349_v20   ;;  %v4351_v58 = vpop.eup %4350  ;;  %v2210_v6 = vld [vmem:[#allocation4 + $0xf0] sm:$0xff] }
 0x343   : > { %4358 = vrcp.f32 %v2952_v19  ;;  %v2208_v19 = vld [vmem:[#allocation4 + $0xe0] sm:$0xff] }
 0x344   : > { %4360 = vrcp.f32 %v2954_v1  ;;  %v2211_v1 = vld [vmem:[#allocation4 + $0xf8] sm:$0xff]  ;;  %v2400_v40 = vmul.f32 %v6100_v39, %v2208_v19 }
 0x346   : > { %3156 = vperm.xlu0 %4103, %v4351_v58   ;;  %v2370_v58 = vpop.permute.xlu0 %2369 }
 0x347   : > { %v4353_v12 = vpop.eup %4352 }
 0x348   : > { %3161 = vperm.xlu1 %4104, %v4353_v12   ;;  %v4355_v38 = vpop.eup %4354  ;;  %v2402_v12 = vmul.f32 %v6099_v61, %v2210_v6  ;;  %v2999_v61 = vld [vmem:[#allocation4 + $0x60] sm:$0xff] }
 0x349   : > { %v4003_v30 = vpop.f32.mrb[48].mxu1  ;;  %v4357_v52 = vpop.eup %4356 }
 0x34a   : > { %v2842_v35 = vadd.f32 %v4003_v30, %v2390_v51  ;;  %v2692_v2 = vpop.f32.mrb[49].mxu1  ;;  %3146 = vperm.xlu0 %4103, %v4355_v38   ;;  %v2403_v38 = vmul.f32 %v2370_v58, %v2211_v1 }
 0x34b   : > { %v2840_v45 = vadd.f32 %v2692_v2, %v2388_v4  ;;  %v4004_v3 = vpop.f32.mrb[50].mxu1 }
 0x34c   : > { %3171 = vperm.xlu1 %4104, %v4357_v52   ;;  %2874 = vst.msk [vmem:[#allocation4 + $0x90] sm:$0xff] %vm466_vm0, %v2842_v35  ;;  %v2843_v56 = vadd.f32 %v4004_v3, %v2391_v48  ;;  %v2695_v34 = vpop.f32.mrb[51].mxu1  ;;  %v6101_v52 = vld [vmem:[#allocation32_spill] sm:$0xff] }
 0x34d   : > { %v4359_v29 = vpop.eup %4358  ;;  %2872 = vst.msk [vmem:[#allocation4 + $0x80] sm:$0xff] %vm466_vm0, %v2840_v45  ;;  %v2841_v18 = vadd.f32 %v2695_v34, %v2389_v43  ;;  %v2401_v48 = vmul.f32 %v6101_v52, %v2209_v54  ;;  %v2996_v54 = vld [vmem:[#allocation4 + $0x48] sm:$0xff] }
 0x34e   : > { %2875 = vst.msk [vmem:[#allocation4 + $0x98] sm:$0xff] %vm466_vm0, %v2843_v56  ;;  %3166 = vperm.xlu0 %4103, %v4359_v29   ;;  %v4361_v62 = vpop.eup %4360  ;;  %v2989_v56 = vld [vmem:[#allocation4 + $0x10] sm:$0xff] }
 0x34f   : > { %2873 = vst.msk [vmem:[#allocation4 + $0x88] sm:$0xff] %vm466_vm0, %v2841_v18  ;;  %v2987_v18 = vld [vmem:[#allocation4] sm:$0xff] }
 0x351   : > { %v4007_v42 = vpop.f32.mrb[52].mxu1 }
 0x352   : > { %v2846_v37 = vadd.f32 %v4007_v42, %v2394_v13  ;;  %v2708_v28 = vpop.f32.mrb[53].mxu1  ;;  %3176 = vperm.xlu0 %4103, %v4361_v62   ;;  %v2993_v13 = vld [vmem:[#allocation4 + $0x30] sm:$0xff] }
 0x353   : > { %v2844_v17 = vadd.f32 %v2708_v28, %v2392_v26  ;;  %v4008_v41 = vpop.f32.mrb[54].mxu1  ;;  %v2991_v28 = vld [vmem:[#allocation4 + $0x20] sm:$0xff] }
 0x354   : > { %2878 = vst.msk [vmem:[#allocation4 + $0xb0] sm:$0xff] %vm466_vm0, %v2846_v37  ;;  %v2847_v10 = vadd.f32 %v4008_v41, %v2395_v49  ;;  %v2711_v22 = vpop.f32.mrb[55].mxu1 }
 0x355   : > { %2876 = vst.msk [vmem:[#allocation4 + $0xa0] sm:$0xff] %vm466_vm0, %v2844_v17  ;;  %v2845_v7 = vadd.f32 %v2711_v22, %v2393_v32  ;;  %v2988_v32 = vld [vmem:[#allocation4 + $0x8] sm:$0xff] }
 0x356   : > { %2879 = vst.msk [vmem:[#allocation4 + $0xb8] sm:$0xff] %vm466_vm0, %v2847_v10 }
 0x357   : > { %2877 = vst.msk [vmem:[#allocation4 + $0xa8] sm:$0xff] %vm466_vm0, %v2845_v7 }
 0x369   : > { %v4019_v0 = vpop.f32.mrb[56].mxu1 }
 0x36a   : > { %v2850_v25 = vadd.f32 %v4019_v0, %v2398_v24  ;;  %v2793_v23 = vpop.f32.mrb[57].mxu1  ;;  %v2995_v0 = vld [vmem:[#allocation4 + $0x40] sm:$0xff] }
 0x36b   : > { %v2848_v55 = vadd.f32 %v2793_v23, %v2396_v36  ;;  %v4020_v8 = vpop.f32.mrb[58].mxu1 }
 0x36c   : > { %2882 = vst.msk [vmem:[#allocation4 + $0xd0] sm:$0xff] %vm466_vm0, %v2850_v25  ;;  %v2851_v27 = vadd.f32 %v4020_v8, %v2399_v44  ;;  %v2796_v59 = vpop.f32.mrb[59].mxu1  ;;  %v2992_v44 = vld [vmem:[#allocation4 + $0x28] sm:$0xff]  ;;  %v3001_v8 = vld [vmem:[#allocation4 + $0x70] sm:$0xff] }
 0x36d   : > { %2880 = vst.msk [vmem:[#allocation4 + $0xc0] sm:$0xff] %vm466_vm0, %v2848_v55  ;;  %v2849_v20 = vadd.f32 %v2796_v59, %v2397_v5  ;;  %v2998_v59 = vld [vmem:[#allocation4 + $0x58] sm:$0xff] }
 0x36e   : > { %2883 = vst.msk [vmem:[#allocation4 + $0xd8] sm:$0xff] %vm466_vm0, %v2851_v27 }
 0x36f   : > { %2881 = vst.msk [vmem:[#allocation4 + $0xc8] sm:$0xff] %vm466_vm0, %v2849_v20 }
 0x371   : > { %v4023_v51 = vpop.f32.mrb[60].mxu1 }
 0x372   : > { %v2854_v4 = vadd.f32 %v4023_v51, %v2402_v12  ;;  %v2809_v30 = vpop.f32.mrb[61].mxu1 }
 0x373   : > { %v2852_v35 = vadd.f32 %v2809_v30, %v2400_v40  ;;  %v4024_v2 = vpop.f32.mrb[62].mxu1  ;;  %v3005_v30 = vld [vmem:[#allocation4 + $0x90] sm:$0xff] }
 0x374   : > { %2886 = vst.msk [vmem:[#allocation4 + $0xf0] sm:$0xff] %vm466_vm0, %v2854_v4  ;;  %v2855_v43 = vadd.f32 %v4024_v2, %v2403_v38  ;;  %v2812_v45 = vpop.f32.mrb[63].mxu1 }
 0x375   : > { %2884 = vst.msk [vmem:[#allocation4 + $0xe0] sm:$0xff] %vm466_vm0, %v2852_v35  ;;  %v2853_v3 = vadd.f32 %v2812_v45, %v2401_v48  ;;  %v3002_v48 = vld [vmem:[#allocation4 + $0x78] sm:$0xff] }
 0x376   : > { %2887 = vst.msk [vmem:[#allocation4 + $0xf8] sm:$0xff] %vm466_vm0, %v2855_v43 }
 0x377   : > { %2885 = vst.msk [vmem:[#allocation4 + $0xe8] sm:$0xff] %vm466_vm0, %v2853_v3 }
 0x38a   : > { %v3032_v34 = vpop.permute.xlu1 %3031 }
 0x38b   : > { %v3181_v29 = vmul.f32 %v3032_v34, %v2989_v56  ;;  %v3003_v56 = vld [vmem:[#allocation4 + $0x80] sm:$0xff] }
 0x38d   : > { %v3752_v11 = vpack.c.bf16 %v3181_v29, %v3181_v29  ;;  %v3000_v29 = vld [vmem:[#allocation4 + $0x68] sm:$0xff] }
 0x38f   : > { %3258 = vst.msk [vmem:[%s5832_s15 + $0x8] sm:$0xf] %vm3255_vm4, %v3752_v11 }
 0x391   : > { %v3022_v15 = vpop.permute.xlu1 %3021 }
 0x392   : > { %v3179_v14 = vmul.f32 %v3022_v15, %v2987_v18 }
 0x394   : > { %v3750_v46 = vpack.c.bf16 %v3179_v14, %v3179_v14 }
 0x395   : > { %v3052_v62 = vpop.permute.xlu1 %3051  ;;  %v3037_v26 = vpop.permute.xlu0 %3036 }
 0x396   : > { %3256 = vst.msk [vmem:[%s5832_s15] sm:$0xf] %vm3255_vm4, %v3750_v46  ;;  %v3185_v42 = vmul.f32 %v3052_v62, %v2993_v13  ;;  %v3182_v60 = vmul.f32 %v3037_v26, %v2990_v63  ;;  %v3009_v13 = vld [vmem:[#allocation4 + $0xb0] sm:$0xff]  ;;  %v3006_v63 = vld [vmem:[#allocation4 + $0x98] sm:$0xff] }
 0x398   : > { %v3756_v49 = vpack.c.bf16 %v3185_v42, %v3185_v42  ;;  %v3753_v37 = vpack.c.bf16 %v3182_v60, %v3182_v60 }
 0x399   : > { %v3042_v53 = vpop.permute.xlu1 %3041  ;;  %v3027_v17 = vpop.permute.xlu0 %3026 }
 0x39a   : > { %3262 = vst.msk [vmem:[%s5832_s15 + $0x18] sm:$0xf] %vm3255_vm4, %v3756_v49  ;;  %3259 = vst.msk [vmem:[%s5832_s15 + $0xc] sm:$0xf] %vm3255_vm4, %v3753_v37  ;;  %v3183_v41 = vmul.f32 %v3042_v53, %v2991_v28  ;;  %v3180_v10 = vmul.f32 %v3027_v17, %v2988_v32  ;;  %v3007_v28 = vld [vmem:[#allocation4 + $0xa0] sm:$0xff]  ;;  %v3004_v32 = vld [vmem:[#allocation4 + $0x88] sm:$0xff] }
 0x39c   : > { %v3754_v22 = vpack.c.bf16 %v3183_v41, %v3183_v41  ;;  %v3751_v7 = vpack.c.bf16 %v3180_v10, %v3180_v10 }
 0x39d   : > { %v3072_v50 = vpop.permute.xlu1 %3071  ;;  %v3057_v31 = vpop.permute.xlu0 %3056 }
 0x39e   : > { %3260 = vst.msk [vmem:[%s5832_s15 + $0x10] sm:$0xf] %vm3255_vm4, %v3754_v22  ;;  %3257 = vst.msk [vmem:[%s5832_s15 + $0x4] sm:$0xf] %vm3255_vm4, %v3751_v7  ;;  %v3189_v24 = vmul.f32 %v3072_v50, %v2997_v57  ;;  %v3186_v33 = vmul.f32 %v3057_v31, %v2994_v16  ;;  %v3013_v57 = vld [vmem:[#allocation4 + $0xd0] sm:$0xff]  ;;  %v3010_v16 = vld [vmem:[#allocation4 + $0xb8] sm:$0xff] }
 0x3a0   : > { %v3760_v9 = vpack.c.bf16 %v3189_v24, %v3189_v24  ;;  %v3757_v36 = vpack.c.bf16 %v3186_v33, %v3186_v33 }
 0x3a1   : > { %v3062_v21 = vpop.permute.xlu1 %3061  ;;  %v3047_v25 = vpop.permute.xlu0 %3046 }
 0x3a2   : > { %3263 = vst.msk [vmem:[%s5832_s15 + $0x1c] sm:$0xf] %vm3255_vm4, %v3757_v36  ;;  %v3187_v23 = vmul.f32 %v3062_v21, %v2995_v0  ;;  %v3184_v47 = vmul.f32 %v3047_v25, %v2992_v44  ;;  %3288 = vrot.lane.b32.xlu1 %v3760_v9, %s4389_s16  ;;  %v3011_v0 = vld [vmem:[#allocation4 + $0xc0] sm:$0xff]  ;;  %v3008_v44 = vld [vmem:[#allocation4 + $0xa8] sm:$0xff] }
 0x3a4   : > { %v3758_v5 = vpack.c.bf16 %v3187_v23, %v3187_v23  ;;  %v3755_v55 = vpack.c.bf16 %v3184_v47, %v3184_v47 }
 0x3a5   : > { %v3092_v27 = vpop.permute.xlu1 %3091  ;;  %v3077_v6 = vpop.permute.xlu0 %3076 }
 0x3a6   : > { %3261 = vst.msk [vmem:[%s5832_s15 + $0x14] sm:$0xf] %vm3255_vm4, %v3755_v55  ;;  %v3193_v20 = vmul.f32 %v3092_v27, %v3001_v8  ;;  %v3190_v19 = vmul.f32 %v3077_v6, %v2998_v59  ;;  %3284 = vrot.lane.b32.xlu1 %v3758_v5, %s4389_s16  ;;  %v3014_v8 = vld [vmem:[#allocation4 + $0xd8] sm:$0xff]  ;;  %v3015_v6 = vld [vmem:[#allocation4 + $0xe0] sm:$0xff] }
 0x3a8   : > { %v3764_v1 = vpack.c.bf16 %v3193_v20, %v3193_v20  ;;  %v3761_v58 = vpack.c.bf16 %v3190_v19, %v3190_v19 }
 0x3a9   : > { %v3082_v12 = vpop.permute.xlu1 %3081  ;;  %v3067_v39 = vpop.permute.xlu0 %3066 }
 0x3aa   : > { %v3191_v40 = vmul.f32 %v3082_v12, %v2999_v61  ;;  %v3188_v51 = vmul.f32 %v3067_v39, %v2996_v54  ;;  %3296 = vrot.lane.b32.xlu1 %v3764_v1, %s4389_s16  ;;  %3290 = vrot.lane.b32.xlu0 %v3761_v58, %s4389_s16  ;;  %v3012_v61 = vld [vmem:[#allocation4 + $0xc8] sm:$0xff]  ;;  %v3017_v39 = vld [vmem:[#allocation4 + $0xf0] sm:$0xff] }
 0x3ac   : > { %v3762_v38 = vpack.c.bf16 %v3191_v40, %v3191_v40  ;;  %v3759_v4 = vpack.c.bf16 %v3188_v51, %v3188_v51 }
 0x3ad   : > { %v3112_v52 = vpop.permute.xlu1 %3111  ;;  %v3097_v35 = vpop.permute.xlu0 %3096 }
 0x3ae   : > { %v3197_v2 = vmul.f32 %v3112_v52, %v3005_v30  ;;  %v3194_v43 = vmul.f32 %v3097_v35, %v3002_v48  ;;  %3292 = vrot.lane.b32.xlu1 %v3762_v38, %s4389_s16  ;;  %3286 = vrot.lane.b32.xlu0 %v3759_v4, %s4389_s16  ;;  %v3016_v30 = vld [vmem:[#allocation4 + $0xe8] sm:$0xff] }
 0x3b0   : > { %v3768_v45 = vpack.c.bf16 %v3197_v2, %v3197_v2  ;;  %v3765_v3 = vpack.c.bf16 %v3194_v43, %v3194_v43  ;;  %v3018_v2 = vld [vmem:[#allocation4 + $0xf8] sm:$0xff] }
 0x3b1   : > { %v3102_v34 = vpop.permute.xlu1 %3101  ;;  %v3087_v11 = vpop.permute.xlu0 %3086 }
 0x3b2   : > { %v3195_v18 = vmul.f32 %v3102_v34, %v3003_v56  ;;  %v3192_v15 = vmul.f32 %v3087_v11, %v3000_v29  ;;  %3341 = vrot.lane.b32.xlu1 %v3768_v45, %s4390_s17  ;;  %3298 = vrot.lane.b32.xlu0 %v3765_v3, %s4389_s16 }
 0x3b4   : > { %v3766_v14 = vpack.c.bf16 %v3195_v18, %v3195_v18  ;;  %v3763_v46 = vpack.c.bf16 %v3192_v15, %v3192_v15 }
 0x3b5   : > { %v3132_v62 = vpop.permute.xlu1 %3131  ;;  %v3117_v26 = vpop.permute.xlu0 %3116 }
 0x3b6   : > { %v3201_v42 = vmul.f32 %v3132_v62, %v3009_v13  ;;  %v3198_v60 = vmul.f32 %v3117_v26, %v3006_v63  ;;  %3337 = vrot.lane.b32.xlu1 %v3766_v14, %s4390_s17  ;;  %3294 = vrot.lane.b32.xlu0 %v3763_v46, %s4389_s16 }
 0x3b8   : > { %v3772_v49 = vpack.c.bf16 %v3201_v42, %v3201_v42  ;;  %v3769_v37 = vpack.c.bf16 %v3198_v60, %v3198_v60 }
 0x3b9   : > { %v3122_v53 = vpop.permute.xlu1 %3121  ;;  %v3107_v17 = vpop.permute.xlu0 %3106 }
 0x3ba   : > { %v3199_v41 = vmul.f32 %v3122_v53, %v3007_v28  ;;  %v3196_v10 = vmul.f32 %v3107_v17, %v3004_v32  ;;  %3349 = vrot.lane.b32.xlu1 %v3772_v49, %s4390_s17  ;;  %3343 = vrot.lane.b32.xlu0 %v3769_v37, %s4390_s17 }
 0x3bc   : > { %v3770_v22 = vpack.c.bf16 %v3199_v41, %v3199_v41  ;;  %v3767_v7 = vpack.c.bf16 %v3196_v10, %v3196_v10 }
 0x3bd   : > { %v3152_v50 = vpop.permute.xlu1 %3151  ;;  %v3137_v31 = vpop.permute.xlu0 %3136 }
 0x3be   : > { %v3205_v24 = vmul.f32 %v3152_v50, %v3013_v57  ;;  %v3202_v33 = vmul.f32 %v3137_v31, %v3010_v16  ;;  %3345 = vrot.lane.b32.xlu1 %v3770_v22, %s4390_s17  ;;  %3339 = vrot.lane.b32.xlu0 %v3767_v7, %s4390_s17 }
 0x3c0   : > { %v3776_v9 = vpack.c.bf16 %v3205_v24, %v3205_v24  ;;  %v3773_v36 = vpack.c.bf16 %v3202_v33, %v3202_v33 }
 0x3c1   : > { %v3142_v21 = vpop.permute.xlu1 %3141  ;;  %v3127_v25 = vpop.permute.xlu0 %3126 }
 0x3c2   : > { %v3203_v23 = vmul.f32 %v3142_v21, %v3011_v0  ;;  %v3200_v47 = vmul.f32 %v3127_v25, %v3008_v44  ;;  %3394 = vrot.lane.b32.xlu1 %v3776_v9, %s4391_s18  ;;  %3351 = vrot.lane.b32.xlu0 %v3773_v36, %s4390_s17 }
 0x3c4   : > { %v3774_v5 = vpack.c.bf16 %v3203_v23, %v3203_v23  ;;  %v3771_v55 = vpack.c.bf16 %v3200_v47, %v3200_v47 }
 0x3c5   : > { %v3157_v27 = vpop.permute.xlu0 %3156 }
 0x3c6   : > { %v3206_v59 = vmul.f32 %v3157_v27, %v3014_v8  ;;  %3390 = vrot.lane.b32.xlu1 %v3774_v5, %s4391_s18  ;;  %3347 = vrot.lane.b32.xlu0 %v3771_v55, %s4390_s17 }
 0x3c7   : > { %v3162_v20 = vpop.permute.xlu1 %3161 }
 0x3c8   : > { %v3207_v19 = vmul.f32 %v3162_v20, %v3015_v6  ;;  %v3777_v1 = vpack.c.bf16 %v3206_v59, %v3206_v59 }
 0x3c9   : > { %v3147_v12 = vpop.permute.xlu0 %3146 }
 0x3ca   : > { %v3778_v58 = vpack.c.bf16 %v3207_v19, %v3207_v19  ;;  %v3204_v54 = vmul.f32 %v3147_v12, %v3012_v61  ;;  %3396 = vrot.lane.b32.xlu0 %v3777_v1, %s4391_s18 }
 0x3cb   : > { %v3172_v40 = vpop.permute.xlu1 %3171 }
 0x3cc   : > { %v3209_v51 = vmul.f32 %v3172_v40, %v3017_v39  ;;  %3398 = vrot.lane.b32.xlu1 %v3778_v58, %s4391_s18  ;;  %v3775_v38 = vpack.c.bf16 %v3204_v54, %v3204_v54 }
 0x3cd   : > { %v3167_v52 = vpop.permute.xlu0 %3166 }
 0x3ce   : > { %v3780_v4 = vpack.c.bf16 %v3209_v51, %v3209_v51  ;;  %v3208_v48 = vmul.f32 %v3167_v52, %v3016_v30  ;;  %3392 = vrot.lane.b32.xlu0 %v3775_v38, %s4391_s18 }
 0x3d0   : > { %3402 = vrot.lane.b32.xlu1 %v3780_v4, %s4391_s18  ;;  %v3779_v35 = vpack.c.bf16 %v3208_v48, %v3208_v48 }
 0x3d1   : > { %v3177_v43 = vpop.permute.xlu0 %3176 }
 0x3d2   : > { %v3210_v45 = vmul.f32 %v3177_v43, %v3018_v2  ;;  %3400 = vrot.lane.b32.xlu0 %v3779_v35, %s4391_s18 }
 0x3d4   : > { %v3781_v3 = vpack.c.bf16 %v3210_v45, %v3210_v45 }
 0x3d6   : > { %3404 = vrot.lane.b32.xlu0 %v3781_v3, %s4391_s18 }
 0x414   : > { %v3289_v56 = vpop.permute.xlu1 %3288 }
 0x415   : > { %3311 = vst.msk [vmem:[%s5832_s15 + $0x8] sm:$0xf] %vm3308_vm5, %v3289_v56 }
 0x418   : > { %v3285_v34 = vpop.permute.xlu1 %3284 }
 0x419   : > { %3309 = vst.msk [vmem:[%s5832_s15] sm:$0xf] %vm3308_vm5, %v3285_v34 }
 0x41c   : > { %v3297_v29 = vpop.permute.xlu1 %3296  ;;  %v3291_v11 = vpop.permute.xlu0 %3290 }
 0x41d   : > { %3315 = vst.msk [vmem:[%s5832_s15 + $0x18] sm:$0xf] %vm3308_vm5, %v3297_v29  ;;  %3312 = vst.msk [vmem:[%s5832_s15 + $0xc] sm:$0xf] %vm3308_vm5, %v3291_v11 }
 0x420   : > { %v3293_v18 = vpop.permute.xlu1 %3292  ;;  %v3287_v15 = vpop.permute.xlu0 %3286 }
 0x421   : > { %3313 = vst.msk [vmem:[%s5832_s15 + $0x10] sm:$0xf] %vm3308_vm5, %v3293_v18  ;;  %3310 = vst.msk [vmem:[%s5832_s15 + $0x4] sm:$0xf] %vm3308_vm5, %v3287_v15 }
 0x424   : > { %v3342_v14 = vpop.permute.xlu1 %3341  ;;  %v3299_v46 = vpop.permute.xlu0 %3298 }
 0x425   : > { %3364 = vst.msk [vmem:[%s5832_s15 + $0x8] sm:$0xf] %vm3361_vm6, %v3342_v14 }
 0x426   : > { %3316 = vst.msk [vmem:[%s5832_s15 + $0x1c] sm:$0xf] %vm3308_vm5, %v3299_v46 }
 0x428   : > { %v3338_v13 = vpop.permute.xlu1 %3337  ;;  %v3295_v62 = vpop.permute.xlu0 %3294 }
 0x429   : > { %3362 = vst.msk [vmem:[%s5832_s15] sm:$0xf] %vm3361_vm6, %v3338_v13 }
 0x42a   : > { %3314 = vst.msk [vmem:[%s5832_s15 + $0x14] sm:$0xf] %vm3308_vm5, %v3295_v62 }
 0x42c   : > { %v3350_v63 = vpop.permute.xlu1 %3349  ;;  %v3344_v26 = vpop.permute.xlu0 %3343 }
 0x42d   : > { %3368 = vst.msk [vmem:[%s5832_s15 + $0x18] sm:$0xf] %vm3361_vm6, %v3350_v63  ;;  %3365 = vst.msk [vmem:[%s5832_s15 + $0xc] sm:$0xf] %vm3361_vm6, %v3344_v26 }
 0x430   : > { %v3346_v42 = vpop.permute.xlu1 %3345  ;;  %v3340_v60 = vpop.permute.xlu0 %3339 }
 0x431   : > { %3366 = vst.msk [vmem:[%s5832_s15 + $0x10] sm:$0xf] %vm3361_vm6, %v3346_v42  ;;  %3363 = vst.msk [vmem:[%s5832_s15 + $0x4] sm:$0xf] %vm3361_vm6, %v3340_v60 }
 0x434   : > { %v3395_v49 = vpop.permute.xlu1 %3394  ;;  %v3352_v37 = vpop.permute.xlu0 %3351 }
 0x435   : > { %3417 = vst.msk [vmem:[%s5832_s15 + $0x8] sm:$0xf] %vm3414_vm7, %v3395_v49 }
 0x436   : > { %3369 = vst.msk [vmem:[%s5832_s15 + $0x1c] sm:$0xf] %vm3361_vm6, %v3352_v37 }
 0x438   : > { %v3391_v28 = vpop.permute.xlu1 %3390  ;;  %v3348_v53 = vpop.permute.xlu0 %3347 }
 0x439   : > { %3415 = vst.msk [vmem:[%s5832_s15] sm:$0xf] %vm3414_vm7, %v3391_v28 }
 0x43a   : > { %3367 = vst.msk [vmem:[%s5832_s15 + $0x14] sm:$0xf] %vm3361_vm6, %v3348_v53 }
 0x43c   : > { %v3397_v32 = vpop.permute.xlu0 %3396 }
 0x43d   : > { %3418 = vst.msk [vmem:[%s5832_s15 + $0xc] sm:$0xf] %vm3414_vm7, %v3397_v32 }
 0x43e   : > { %v3399_v17 = vpop.permute.xlu1 %3398 }
 0x43f   : > { %3419 = vst.msk [vmem:[%s5832_s15 + $0x10] sm:$0xf] %vm3414_vm7, %v3399_v17 }
 0x440   : > { %v3393_v41 = vpop.permute.xlu0 %3392 }
 0x441   : > { %3416 = vst.msk [vmem:[%s5832_s15 + $0x4] sm:$0xf] %vm3414_vm7, %v3393_v41 }
 0x442   : > { %v3403_v10 = vpop.permute.xlu1 %3402 }
 0x443   : > { %3421 = vst.msk [vmem:[%s5832_s15 + $0x18] sm:$0xf] %vm3414_vm7, %v3403_v10 }
 0x444   : > { %v3401_v22 = vpop.permute.xlu0 %3400 }
 0x445   : > { %3420 = vst.msk [vmem:[%s5832_s15 + $0x14] sm:$0xf] %vm3414_vm7, %v3401_v22 }
 0x448   : > { %v3405_v7 = vpop.permute.xlu0 %3404 }
 0x449   : > { %3422 = vst.msk [vmem:[%s5832_s15 + $0x1c] sm:$0xf] %vm3414_vm7, %v3405_v7 }
 0x44a PF: > { %s15_s20 = sadd.s32 1, %s4384_s20   ;;  %s6102_s18 = smov %s4380_s19 }
 0x44b   : > { %p12_p5 = scmp.ge.s32.totalorder %s15_s20, 4   ;;  %s6103_s19 = smov %s6105_s21 }
 0x44d   :  { %14 = sbr.rel (!%p12_p5) target bundleno = 2 (0x2), region = 90 }

</bundles_post_ra>
